<compile_context>
chip_gen: v7x
topology: tpu7x:2x2x1
jax: 0.10.0
libtpu: 0.0.40
codegen_flags: <defaults>
</compile_context>

<pallas_src>
import jax
import jax.numpy as jnp
from jax.experimental import pallas as pl
from jax.experimental.pallas import tpu as pltpu

EPS = 1e-5  # PyTorch BatchNorm default eps


# --------------------------- Pallas kernels ---------------------------------

def conv_bn_relu_pool_kernel(p_ref, w_ref, scale_ref, shift_ref, o_ref):
    """Fused 5x5 'same' conv (one im2col matmul over all 4 pool quadrants)
    + 2x2 max-pool + folded BatchNorm + ReLU.

    p_ref:     (1, 4*HW4, Kp) bf16 -- rows: quadrant q = 2*dh+dw, then pooled pixel
    w_ref:     (Kp, 128)      bf16 -- zero-padded (K -> Kp, Cout -> 128)
    scale_ref: (1, 128)       f32  -- gamma / sqrt(var + eps)   (0 on pad channels)
    shift_ref: (1, 128)       f32  -- beta + scale*(bias - mean) (0 on pad channels)
    o_ref:     (1, HW4, 128)  bf16
    """
    hw4 = o_ref.shape[1]
    # One big MXU matmul for the whole sample (all 4 quadrants at once).
    z = jnp.dot(p_ref[0], w_ref[...], preferred_element_type=jnp.float32)  # (4*HW4, 128)
    z0 = z[0 * hw4:1 * hw4]
    z1 = z[1 * hw4:2 * hw4]
    z2 = z[2 * hw4:3 * hw4]
    z3 = z[3 * hw4:4 * hw4]
    zmax = jnp.maximum(jnp.maximum(z0, z1), jnp.maximum(z2, z3))
    zmin = jnp.minimum(jnp.minimum(z0, z1), jnp.minimum(z2, z3))
    scale = scale_ref[...]
    shift = shift_ref[...]
    # BN affine hoisted after the max-pool; the min/max select keeps this exact
    # even if a folded scale (gamma/sqrt(var+eps)) were negative.
    pooled = jnp.where(scale >= 0.0, scale * zmax, scale * zmin) + shift
    o_ref[0] = jnp.maximum(pooled, 0.0).astype(o_ref.dtype)


def mlp_kernel(x_ref, w1_ref, b1_ref, w2_ref, s2_ref, t2_ref, w3_ref, b3_ref, o_ref):
    """fc1 -> ReLU -> (dropout=identity) -> fc2 -> BN1d(folded) -> ReLU -> fc3.

    x_ref: (1, 1, 4096) bf16; weights bf16 zero-padded to lane multiples;
    biases / BN scale-shift f32; o_ref: (1, 1, 10) f32.
    """
    x = x_ref[0]                                                     # (1, 4096) bf16
    h1 = jnp.dot(x, w1_ref[...], preferred_element_type=jnp.float32) + b1_ref[...]
    h1 = jnp.maximum(h1, 0.0)                                        # (1, 256) f32
    # TODO(synk): Dropout(p=0.5) implemented as identity (eval-mode semantics);
    # training-mode RNG masking omitted.
    h2 = jnp.dot(h1.astype(jnp.bfloat16), w2_ref[...],
                 preferred_element_type=jnp.float32)                 # (1, 128)
    h2 = jnp.maximum(h2 * s2_ref[...] + t2_ref[...], 0.0)
    out = jnp.dot(h2.astype(jnp.bfloat16), w3_ref[...],
                  preferred_element_type=jnp.float32) + b3_ref[...]  # (1, 10)
    o_ref[0] = out


# --------------------------- JAX glue / wrappers -----------------------------

def _im2col_pooled(x_nhwc, ksize=5, pad=2):
    """Extract 5x5 'same' patches, grouped by 2x2 pooling quadrant.

    Returns (N, 4*(H//2)*(W//2), 25*C); row = q*HW4 + i*(W//2) + j, q = 2*dh+dw.
    """
    N, H, W, C = x_nhwc.shape
    xp = jnp.pad(x_nhwc, ((0, 0), (pad, pad), (pad, pad), (0, 0)))
    cols = [xp[:, kh:kh + H, kw:kw + W, :]
            for kh in range(ksize) for kw in range(ksize)]
    patches = jnp.stack(cols, axis=3)                       # (N, H, W, 25, C)
    K = ksize * ksize * C
    patches = patches.reshape(N, H, W, K)
    patches = patches.reshape(N, H // 2, 2, W // 2, 2, K)
    patches = patches.transpose(0, 2, 4, 1, 3, 5)           # (N, dh, dw, i, j, K)
    return patches.reshape(N, 4 * (H // 2) * (W // 2), K)


def conv_block(x_nhwc, w_pad, scale, shift):
    """One Conv2d(5x5, same) + BatchNorm2d + ReLU + MaxPool2d(2,2) block."""
    # im2col is thin XLA glue (bf16); all matmul/BN/pool math is in the kernel.
    N, H, W, Cin = x_nhwc.shape
    HW4 = (H // 2) * (W // 2)
    K = 25 * Cin
    Kp, Cp = w_pad.shape                                     # Kp multiple of 128, Cp=128

    patches = _im2col_pooled(x_nhwc)                         # (N, 4*HW4, K) bf16
    if Kp > K:
        patches = jnp.pad(patches, ((0, 0), (0, 0), (0, Kp - K)))

    out = pl.pallas_call(
        conv_bn_relu_pool_kernel,
        out_shape=jax.ShapeDtypeStruct((N, HW4, Cp), jnp.bfloat16),
        grid=(N,),
        in_specs=[
            pl.BlockSpec((1, 4 * HW4, Kp), lambda n: (n, 0, 0)),
            pl.BlockSpec((Kp, Cp), lambda n: (0, 0)),
            pl.BlockSpec((1, Cp), lambda n: (0, 0)),
            pl.BlockSpec((1, Cp), lambda n: (0, 0)),
        ],
        out_specs=pl.BlockSpec((1, HW4, Cp), lambda n: (n, 0, 0)),
        compiler_params=pltpu.CompilerParams(dimension_semantics=("parallel",)),
    )(patches, w_pad, scale, shift)
    return out.reshape(N, H // 2, W // 2, Cp)                # NHWC pooled (padded channels = 0)


def mlp_head(x_flat, fp):
    N, D = x_flat.shape
    x3 = x_flat.reshape(N, 1, D)
    weight_args = (fp["w_fc1"], fp["b_fc1"], fp["w_fc2"], fp["s_fc2"], fp["t_fc2"],
                   fp["w_fc3"], fp["b_fc3"])
    in_specs = [pl.BlockSpec((1, 1, D), lambda n: (n, 0, 0))]
    in_specs += [pl.BlockSpec(a.shape, lambda n: (0, 0)) for a in weight_args]
    out = pl.pallas_call(
        mlp_kernel,
        out_shape=jax.ShapeDtypeStruct((N, 1, 10), jnp.float32),
        grid=(N,),
        in_specs=in_specs,
        out_specs=pl.BlockSpec((1, 1, 10), lambda n: (n, 0, 0)),
        compiler_params=pltpu.CompilerParams(dimension_semantics=("parallel",)),
    )(x3, *weight_args)
    return out.reshape(N, 10)


def convnet_forward(x_nchw, fp):
    x = jnp.transpose(x_nchw, (0, 2, 3, 1)).astype(jnp.bfloat16)      # NCHW -> NHWC, bf16
    x = conv_block(x, fp["cw1"], fp["scale1"], fp["shift1"])          # (N, 16, 16, 128)
    x = conv_block(x[..., :32], fp["cw2"], fp["scale2"], fp["shift2"])  # (N, 8, 8, 128)
    N = x.shape[0]
    # NHWC flatten; fc1 rows were permuted once in prepare_params, so no NCHW
    # transpose of the activations is needed here.
    x = x[..., :64].reshape(N, 64 * 8 * 8)                            # (N, 4096) bf16
    return mlp_head(x, fp)


# --------------------------- one-time weight prep ----------------------------

def _fold_bn(gamma, beta, mean, var, bias, cpad):
    scale = gamma / jnp.sqrt(var + EPS)
    shift = beta + scale * (bias - mean)
    c = scale.shape[0]
    scale = jnp.pad(scale, (0, cpad - c)).reshape(1, cpad).astype(jnp.float32)
    shift = jnp.pad(shift, (0, cpad - c)).reshape(1, cpad).astype(jnp.float32)
    return scale, shift


def _pad2d_bf16(w, rpad, cpad):
    r, c = w.shape
    return jnp.pad(w, ((0, rpad - r), (0, cpad - c))).astype(jnp.bfloat16)


def prepare_params(p):
    """Fold BN into scale/shift, permute fc1 rows to NHWC-flatten order,
    zero-pad contraction/output dims to 128-lane multiples, cast weights to bf16."""
    fp = {}
    # conv1: K = 25*3 = 75 -> 128, Cout 32 -> 128
    fp["cw1"] = _pad2d_bf16(p["w_conv1"].reshape(25 * 3, 32), 128, 128)
    fp["scale1"], fp["shift1"] = _fold_bn(p["bn1_gamma"], p["bn1_beta"],
                                          p["bn1_mean"], p["bn1_var"],
                                          p["b_conv1"], 128)
    # conv2: K = 25*32 = 800 -> 896, Cout 64 -> 128
    fp["cw2"] = _pad2d_bf16(p["w_conv2"].reshape(25 * 32, 64), 896, 128)
    fp["scale2"], fp["shift2"] = _fold_bn(p["bn2_gamma"], p["bn2_beta"],
                                          p["bn2_mean"], p["bn2_var"],
                                          p["b_conv2"], 128)
    # fc1: reorder rows from PyTorch NCHW flatten (c*64 + pos) to the NHWC
    # flatten (pos*64 + c) produced by the conv path; pad 250 -> 256 outputs.
    w_fc1 = p["w_fc1"].reshape(64, 64, 250).transpose(1, 0, 2).reshape(4096, 250)
    fp["w_fc1"] = _pad2d_bf16(w_fc1, 4096, 256)
    fp["b_fc1"] = jnp.pad(p["b_fc1"], (0, 6)).reshape(1, 256).astype(jnp.float32)
    # fc2 + BatchNorm1d(100): pad 250 -> 256 rows, 100 -> 128 cols
    fp["w_fc2"] = _pad2d_bf16(p["w_fc2"], 256, 128)
    s2 = p["fcbn_gamma"] / jnp.sqrt(p["fcbn_var"] + EPS)
    t2 = p["fcbn_beta"] + s2 * (p["b_fc2"] - p["fcbn_mean"])
    fp["s_fc2"] = jnp.pad(s2, (0, 28)).reshape(1, 128).astype(jnp.float32)
    fp["t_fc2"] = jnp.pad(t2, (0, 28)).reshape(1, 128).astype(jnp.float32)
    # fc3: pad 100 -> 128 rows; output stays 10-wide (tiny)
    fp["w_fc3"] = _pad2d_bf16(p["w_fc3"], 128, 10)
    fp["b_fc3"] = p["b_fc3"].reshape(1, 10).astype(jnp.float32)
    return fp


# --------------------------- deterministic params ----------------------------

def init_params(key):
    ks = jax.random.split(key, 24)

    def u(k, shape, s=0.05):
        return (jax.random.uniform(k, shape, jnp.float32) - 0.5) * 2.0 * s

    p = {}
    # conv1: Conv2d(3 -> 32, k=5, pad=2); weights in (kh, kw, cin, cout)
    p["w_conv1"] = u(ks[0], (5, 5, 3, 32))
    p["b_conv1"] = u(ks[1], (32,))
    p["bn1_gamma"] = 1.0 + u(ks[2], (32,))
    p["bn1_beta"] = u(ks[3], (32,))
    p["bn1_mean"] = u(ks[4], (32,))
    p["bn1_var"] = 1.0 + jnp.abs(u(ks[5], (32,)))
    # conv2: Conv2d(32 -> 64, k=5, pad=2)
    p["w_conv2"] = u(ks[6], (5, 5, 32, 64))
    p["b_conv2"] = u(ks[7], (64,))
    p["bn2_gamma"] = 1.0 + u(ks[8], (64,))
    p["bn2_beta"] = u(ks[9], (64,))
    p["bn2_mean"] = u(ks[10], (64,))
    p["bn2_var"] = 1.0 + jnp.abs(u(ks[11], (64,)))
    # fc1: Linear(4096 -> 250); rows in PyTorch NCHW-flatten order
    p["w_fc1"] = u(ks[12], (64 * 8 * 8, 250))
    p["b_fc1"] = u(ks[13], (250,))
    # fc2: Linear(250 -> 100) + BatchNorm1d(100)
    p["w_fc2"] = u(ks[14], (250, 100))
    p["b_fc2"] = u(ks[15], (100,))
    p["fcbn_gamma"] = 1.0 + u(ks[16], (100,))
    p["fcbn_beta"] = u(ks[17], (100,))
    p["fcbn_mean"] = u(ks[18], (100,))
    p["fcbn_var"] = 1.0 + jnp.abs(u(ks[19], (100,)))
    # fc3: Linear(100 -> 10)
    p["w_fc3"] = u(ks[20], (100, 10))
    p["b_fc3"] = u(ks[21], (10,))
    return p


if __name__ == "__main__":
    key = jax.random.PRNGKey(0)
    pkey, xkey = jax.random.split(key)
    params = init_params(pkey)
    fparams = prepare_params(params)   # one-time: fold BN, permute/pad/bf16 weights
    # 32x32 spatial is required by the module (64*8*8 flatten after two 2x pools).
    x = jax.random.normal(xkey, (2, 3, 32, 32), dtype=jnp.float32)

    out = jax.jit(convnet_forward)(x, fparams)
    out = jax.block_until_ready(out)

    assert out.shape == (2, 10), out.shape
    assert bool(jnp.all(jnp.isfinite(out)))
    print("KERNEL_OK")
</pallas_src>

<mosaic_0001>
module attributes {stable_mosaic.version = 11 : i64} {
  func.func @conv_bn_relu_pool_kernel(%arg0: i32, %arg1: memref<1x1024x128xbf16, #tpu.memory_space<vmem>>, %arg2: memref<128x128xbf16, #tpu.memory_space<vmem>>, %arg3: memref<1x128xf32, #tpu.memory_space<vmem>>, %arg4: memref<1x128xf32, #tpu.memory_space<vmem>>, %arg5: memref<1x256x128xbf16, #tpu.memory_space<vmem>>) attributes {dimension_semantics = [#tpu.dimension_semantics<parallel>], iteration_bounds = array<i64: 2>, scalar_prefetch = 0 : i64, scratch_operands = 0 : i64, tpu.core_type = #tpu.core_type<tc>, window_params = [{transform_indices = @transform_0, window_bounds = array<i64: 1, 1024, 128>}, {pipeline_mode = #tpu.pipeline_mode<synchronous>, transform_indices = @transform_1, window_bounds = array<i64: 128, 128>}, {pipeline_mode = #tpu.pipeline_mode<synchronous>, transform_indices = @transform_2, window_bounds = array<i64: 1, 128>}, {pipeline_mode = #tpu.pipeline_mode<synchronous>, transform_indices = @transform_3, window_bounds = array<i64: 1, 128>}, {transform_indices = @transform_4, window_bounds = array<i64: 1, 256, 128>}]} {
    %c0 = arith.constant 0 : index
    %c0_0 = arith.constant 0 : index
    %c0_1 = arith.constant 0 : index
    %0 = vector.load %arg1[%c0, %c0_0, %c0_1] : memref<1x1024x128xbf16, #tpu.memory_space<vmem>>, vector<1x1024x128xbf16>
    %1 = vector.shape_cast %0 : vector<1x1024x128xbf16> to vector<1024x128xbf16>
    %c0_2 = arith.constant 0 : index
    %c0_3 = arith.constant 0 : index
    %2 = vector.load %arg2[%c0_2, %c0_3] : memref<128x128xbf16, #tpu.memory_space<vmem>>, vector<128x128xbf16>
    %cst = arith.constant dense<0.000000e+00> : vector<1024x128xf32>
    %3 = tpu.matmul %1, %2, %cst {dimension_numbers = #tpu.dot_dimension_numbers<[1], [0], [0], [1], [0, 0, 1, 1], [], []>} : vector<1024x128xbf16>, vector<128x128xbf16>, vector<1024x128xf32> -> vector<1024x128xf32>
    %4 = vector.extract_strided_slice %3 {offsets = [0, 0], sizes = [256, 128], strides = [1, 1]} : vector<1024x128xf32> to vector<256x128xf32>
    %5 = vector.extract_strided_slice %3 {offsets = [256, 0], sizes = [256, 128], strides = [1, 1]} : vector<1024x128xf32> to vector<256x128xf32>
    %6 = vector.extract_strided_slice %3 {offsets = [512, 0], sizes = [256, 128], strides = [1, 1]} : vector<1024x128xf32> to vector<256x128xf32>
    %7 = vector.extract_strided_slice %3 {offsets = [768, 0], sizes = [256, 128], strides = [1, 1]} : vector<1024x128xf32> to vector<256x128xf32>
    %8 = arith.maximumf %4, %5 : vector<256x128xf32>
    %9 = arith.maximumf %6, %7 : vector<256x128xf32>
    %10 = arith.maximumf %8, %9 : vector<256x128xf32>
    %11 = arith.minimumf %4, %5 : vector<256x128xf32>
    %12 = arith.minimumf %6, %7 : vector<256x128xf32>
    %13 = arith.minimumf %11, %12 : vector<256x128xf32>
    %c0_4 = arith.constant 0 : index
    %c0_5 = arith.constant 0 : index
    %14 = vector.load %arg3[%c0_4, %c0_5] : memref<1x128xf32, #tpu.memory_space<vmem>>, vector<1x128xf32>
    %c0_6 = arith.constant 0 : index
    %c0_7 = arith.constant 0 : index
    %15 = vector.load %arg4[%c0_6, %c0_7] : memref<1x128xf32, #tpu.memory_space<vmem>>, vector<1x128xf32>
    %cst_8 = arith.constant 0.000000e+00 : f32
    %16 = vector.broadcast %cst_8 : f32 to vector<1x128xf32>
    %17 = arith.cmpf oge, %14, %16 : vector<1x128xf32>
    %18 = vector.broadcast %14 : vector<1x128xf32> to vector<256x128xf32>
    %19 = arith.mulf %18, %10 : vector<256x128xf32>
    %20 = vector.broadcast %14 : vector<1x128xf32> to vector<256x128xf32>
    %21 = arith.mulf %20, %13 : vector<256x128xf32>
    %22 = vector.shape_cast %17 : vector<1x128xi1> to vector<1x128xi1>
    %23 = vector.broadcast %22 : vector<1x128xi1> to vector<256x128xi1>
    %24 = arith.select %23, %19, %21 : vector<256x128xi1>, vector<256x128xf32>
    %25 = vector.broadcast %15 : vector<1x128xf32> to vector<256x128xf32>
    %26 = arith.addf %24, %25 : vector<256x128xf32>
    %cst_9 = arith.constant 0.000000e+00 : f32
    %27 = vector.broadcast %cst_9 : f32 to vector<256x128xf32>
    %28 = arith.maximumf %26, %27 : vector<256x128xf32>
    %29 = arith.truncf %28 : vector<256x128xf32> to vector<256x128xbf16>
    %c0_10 = arith.constant 0 : index
    %c0_11 = arith.constant 0 : index
    %c0_12 = arith.constant 0 : index
    %30 = vector.load %arg5[%c0_10, %c0_11, %c0_12] : memref<1x256x128xbf16, #tpu.memory_space<vmem>>, vector<1x256x128xbf16>
    %31 = vector.shape_cast %30 : vector<1x256x128xbf16> to vector<256x128xbf16>
    %32 = vector.shape_cast %29 : vector<256x128xbf16> to vector<1x256x128xbf16>
    tpu.vector_store %arg5[%c0_10, %c0_11, %c0_12], %32 {strides = array<i32>} : memref<1x256x128xbf16, #tpu.memory_space<vmem>>, vector<1x256x128xbf16>,
    return
  }
  func.func @transform_0(%arg0: i32) -> (i32, i32, i32) {
    %c0_i32 = arith.constant 0 : i32
    %c0_i32_0 = arith.constant 0 : i32
    %c0_i32_1 = arith.constant 0 : i32
    return %arg0, %c0_i32, %c0_i32_0 : i32, i32, i32
  }
  func.func @transform_1(%arg0: i32) -> (i32, i32) {
    %c0_i32 = arith.constant 0 : i32
    %c0_i32_0 = arith.constant 0 : i32
    %c0_i32_1 = arith.constant 0 : i32
    return %c0_i32, %c0_i32_0 : i32, i32
  }
  func.func @transform_2(%arg0: i32) -> (i32, i32) {
    %c0_i32 = arith.constant 0 : i32
    %c0_i32_0 = arith.constant 0 : i32
    %c0_i32_1 = arith.constant 0 : i32
    return %c0_i32, %c0_i32_0 : i32, i32
  }
  func.func @transform_3(%arg0: i32) -> (i32, i32) {
    %c0_i32 = arith.constant 0 : i32
    %c0_i32_0 = arith.constant 0 : i32
    %c0_i32_1 = arith.constant 0 : i32
    return %c0_i32, %c0_i32_0 : i32, i32
  }
  func.func @transform_4(%arg0: i32) -> (i32, i32, i32) {
    %c0_i32 = arith.constant 0 : i32
    %c0_i32_0 = arith.constant 0 : i32
    %c0_i32_1 = arith.constant 0 : i32
    return %arg0, %c0_i32, %c0_i32_0 : i32, i32, i32
  }
}

module attributes {stable_mosaic.version = 11 : i64} {
  func.func @conv_bn_relu_pool_kernel(%arg0: i32, %arg1: memref<1x256x896xbf16, #tpu.memory_space<vmem>>, %arg2: memref<896x128xbf16, #tpu.memory_space<vmem>>, %arg3: memref<1x128xf32, #tpu.memory_space<vmem>>, %arg4: memref<1x128xf32, #tpu.memory_space<vmem>>, %arg5: memref<1x64x128xbf16, #tpu.memory_space<vmem>>) attributes {dimension_semantics = [#tpu.dimension_semantics<parallel>], iteration_bounds = array<i64: 2>, scalar_prefetch = 0 : i64, scratch_operands = 0 : i64, tpu.core_type = #tpu.core_type<tc>, window_params = [{transform_indices = @transform_0, window_bounds = array<i64: 1, 256, 896>}, {pipeline_mode = #tpu.pipeline_mode<synchronous>, transform_indices = @transform_1, window_bounds = array<i64: 896, 128>}, {pipeline_mode = #tpu.pipeline_mode<synchronous>, transform_indices = @transform_2, window_bounds = array<i64: 1, 128>}, {pipeline_mode = #tpu.pipeline_mode<synchronous>, transform_indices = @transform_3, window_bounds = array<i64: 1, 128>}, {transform_indices = @transform_4, window_bounds = array<i64: 1, 64, 128>}]} {
    %c0 = arith.constant 0 : index
    %c0_0 = arith.constant 0 : index
    %c0_1 = arith.constant 0 : index
    %0 = vector.load %arg1[%c0, %c0_0, %c0_1] : memref<1x256x896xbf16, #tpu.memory_space<vmem>>, vector<1x256x896xbf16>
    %1 = vector.shape_cast %0 : vector<1x256x896xbf16> to vector<256x896xbf16>
    %c0_2 = arith.constant 0 : index
    %c0_3 = arith.constant 0 : index
    %2 = vector.load %arg2[%c0_2, %c0_3] : memref<896x128xbf16, #tpu.memory_space<vmem>>, vector<896x128xbf16>
    %cst = arith.constant dense<0.000000e+00> : vector<256x128xf32>
    %3 = tpu.matmul %1, %2, %cst {dimension_numbers = #tpu.dot_dimension_numbers<[1], [0], [0], [1], [0, 0, 1, 1], [], []>} : vector<256x896xbf16>, vector<896x128xbf16>, vector<256x128xf32> -> vector<256x128xf32>
    %4 = vector.extract_strided_slice %3 {offsets = [0, 0], sizes = [64, 128], strides = [1, 1]} : vector<256x128xf32> to vector<64x128xf32>
    %5 = vector.extract_strided_slice %3 {offsets = [64, 0], sizes = [64, 128], strides = [1, 1]} : vector<256x128xf32> to vector<64x128xf32>
    %6 = vector.extract_strided_slice %3 {offsets = [128, 0], sizes = [64, 128], strides = [1, 1]} : vector<256x128xf32> to vector<64x128xf32>
    %7 = vector.extract_strided_slice %3 {offsets = [192, 0], sizes = [64, 128], strides = [1, 1]} : vector<256x128xf32> to vector<64x128xf32>
    %8 = arith.maximumf %4, %5 : vector<64x128xf32>
    %9 = arith.maximumf %6, %7 : vector<64x128xf32>
    %10 = arith.maximumf %8, %9 : vector<64x128xf32>
    %11 = arith.minimumf %4, %5 : vector<64x128xf32>
    %12 = arith.minimumf %6, %7 : vector<64x128xf32>
    %13 = arith.minimumf %11, %12 : vector<64x128xf32>
    %c0_4 = arith.constant 0 : index
    %c0_5 = arith.constant 0 : index
    %14 = vector.load %arg3[%c0_4, %c0_5] : memref<1x128xf32, #tpu.memory_space<vmem>>, vector<1x128xf32>
    %c0_6 = arith.constant 0 : index
    %c0_7 = arith.constant 0 : index
    %15 = vector.load %arg4[%c0_6, %c0_7] : memref<1x128xf32, #tpu.memory_space<vmem>>, vector<1x128xf32>
    %cst_8 = arith.constant 0.000000e+00 : f32
    %16 = vector.broadcast %cst_8 : f32 to vector<1x128xf32>
    %17 = arith.cmpf oge, %14, %16 : vector<1x128xf32>
    %18 = vector.broadcast %14 : vector<1x128xf32> to vector<64x128xf32>
    %19 = arith.mulf %18, %10 : vector<64x128xf32>
    %20 = vector.broadcast %14 : vector<1x128xf32> to vector<64x128xf32>
    %21 = arith.mulf %20, %13 : vector<64x128xf32>
    %22 = vector.shape_cast %17 : vector<1x128xi1> to vector<1x128xi1>
    %23 = vector.broadcast %22 : vector<1x128xi1> to vector<64x128xi1>
    %24 = arith.select %23, %19, %21 : vector<64x128xi1>, vector<64x128xf32>
    %25 = vector.broadcast %15 : vector<1x128xf32> to vector<64x128xf32>
    %26 = arith.addf %24, %25 : vector<64x128xf32>
    %cst_9 = arith.constant 0.000000e+00 : f32
    %27 = vector.broadcast %cst_9 : f32 to vector<64x128xf32>
    %28 = arith.maximumf %26, %27 : vector<64x128xf32>
    %29 = arith.truncf %28 : vector<64x128xf32> to vector<64x128xbf16>
    %c0_10 = arith.constant 0 : index
    %c0_11 = arith.constant 0 : index
    %c0_12 = arith.constant 0 : index
    %30 = vector.load %arg5[%c0_10, %c0_11, %c0_12] : memref<1x64x128xbf16, #tpu.memory_space<vmem>>, vector<1x64x128xbf16>
    %31 = vector.shape_cast %30 : vector<1x64x128xbf16> to vector<64x128xbf16>
    %32 = vector.shape_cast %29 : vector<64x128xbf16> to vector<1x64x128xbf16>
    tpu.vector_store %arg5[%c0_10, %c0_11, %c0_12], %32 {strides = array<i32>} : memref<1x64x128xbf16, #tpu.memory_space<vmem>>, vector<1x64x128xbf16>,
    return
  }
  func.func @transform_0(%arg0: i32) -> (i32, i32, i32) {
    %c0_i32 = arith.constant 0 : i32
    %c0_i32_0 = arith.constant 0 : i32
    %c0_i32_1 = arith.constant 0 : i32
    return %arg0, %c0_i32, %c0_i32_0 : i32, i32, i32
  }
  func.func @transform_1(%arg0: i32) -> (i32, i32) {
    %c0_i32 = arith.constant 0 : i32
    %c0_i32_0 = arith.constant 0 : i32
    %c0_i32_1 = arith.constant 0 : i32
    return %c0_i32, %c0_i32_0 : i32, i32
  }
  func.func @transform_2(%arg0: i32) -> (i32, i32) {
    %c0_i32 = arith.constant 0 : i32
    %c0_i32_0 = arith.constant 0 : i32
    %c0_i32_1 = arith.constant 0 : i32
    return %c0_i32, %c0_i32_0 : i32, i32
  }
  func.func @transform_3(%arg0: i32) -> (i32, i32) {
    %c0_i32 = arith.constant 0 : i32
    %c0_i32_0 = arith.constant 0 : i32
    %c0_i32_1 = arith.constant 0 : i32
    return %c0_i32, %c0_i32_0 : i32, i32
  }
  func.func @transform_4(%arg0: i32) -> (i32, i32, i32) {
    %c0_i32 = arith.constant 0 : i32
    %c0_i32_0 = arith.constant 0 : i32
    %c0_i32_1 = arith.constant 0 : i32
    return %arg0, %c0_i32, %c0_i32_0 : i32, i32, i32
  }
}

module attributes {stable_mosaic.version = 11 : i64} {
  func.func @mlp_kernel(%arg0: i32, %arg1: memref<1x1x4096xbf16, #tpu.memory_space<vmem>>, %arg2: memref<4096x256xbf16, #tpu.memory_space<vmem>>, %arg3: memref<1x256xf32, #tpu.memory_space<vmem>>, %arg4: memref<256x128xbf16, #tpu.memory_space<vmem>>, %arg5: memref<1x128xf32, #tpu.memory_space<vmem>>, %arg6: memref<1x128xf32, #tpu.memory_space<vmem>>, %arg7: memref<128x10xbf16, #tpu.memory_space<vmem>>, %arg8: memref<1x10xf32, #tpu.memory_space<vmem>>, %arg9: memref<1x1x10xf32, #tpu.memory_space<vmem>>) attributes {dimension_semantics = [#tpu.dimension_semantics<parallel>], iteration_bounds = array<i64: 2>, scalar_prefetch = 0 : i64, scratch_operands = 0 : i64, tpu.core_type = #tpu.core_type<tc>, window_params = [{transform_indices = @transform_0, window_bounds = array<i64: 1, 1, 4096>}, {pipeline_mode = #tpu.pipeline_mode<synchronous>, transform_indices = @transform_1, window_bounds = array<i64: 4096, 256>}, {pipeline_mode = #tpu.pipeline_mode<synchronous>, transform_indices = @transform_2, window_bounds = array<i64: 1, 256>}, {pipeline_mode = #tpu.pipeline_mode<synchronous>, transform_indices = @transform_3, window_bounds = array<i64: 256, 128>}, {pipeline_mode = #tpu.pipeline_mode<synchronous>, transform_indices = @transform_4, window_bounds = array<i64: 1, 128>}, {pipeline_mode = #tpu.pipeline_mode<synchronous>, transform_indices = @transform_5, window_bounds = array<i64: 1, 128>}, {pipeline_mode = #tpu.pipeline_mode<synchronous>, transform_indices = @transform_6, window_bounds = array<i64: 128, 10>}, {pipeline_mode = #tpu.pipeline_mode<synchronous>, transform_indices = @transform_7, window_bounds = array<i64: 1, 10>}, {transform_indices = @transform_8, window_bounds = array<i64: 1, 1, 10>}]} {
    %c0 = arith.constant 0 : index
    %c0_0 = arith.constant 0 : index
    %c0_1 = arith.constant 0 : index
    %0 = vector.load %arg1[%c0, %c0_0, %c0_1] : memref<1x1x4096xbf16, #tpu.memory_space<vmem>>, vector<1x1x4096xbf16>
    %1 = vector.shape_cast %0 : vector<1x1x4096xbf16> to vector<1x4096xbf16>
    %c0_2 = arith.constant 0 : index
    %c0_3 = arith.constant 0 : index
    %2 = vector.load %arg2[%c0_2, %c0_3] : memref<4096x256xbf16, #tpu.memory_space<vmem>>, vector<4096x256xbf16>
    %cst = arith.constant dense<0.000000e+00> : vector<1x256xf32>
    %3 = tpu.matmul %1, %2, %cst {dimension_numbers = #tpu.dot_dimension_numbers<[1], [0], [0], [1], [0, 0, 1, 1], [], []>} : vector<1x4096xbf16>, vector<4096x256xbf16>, vector<1x256xf32> -> vector<1x256xf32>
    %c0_4 = arith.constant 0 : index
    %c0_5 = arith.constant 0 : index
    %4 = vector.load %arg3[%c0_4, %c0_5] : memref<1x256xf32, #tpu.memory_space<vmem>>, vector<1x256xf32>
    %5 = arith.addf %3, %4 : vector<1x256xf32>
    %cst_6 = arith.constant 0.000000e+00 : f32
    %6 = vector.broadcast %cst_6 : f32 to vector<1x256xf32>
    %7 = arith.maximumf %5, %6 : vector<1x256xf32>
    %8 = arith.truncf %7 : vector<1x256xf32> to vector<1x256xbf16>
    %c0_7 = arith.constant 0 : index
    %c0_8 = arith.constant 0 : index
    %9 = vector.load %arg4[%c0_7, %c0_8] : memref<256x128xbf16, #tpu.memory_space<vmem>>, vector<256x128xbf16>
    %cst_9 = arith.constant dense<0.000000e+00> : vector<1x128xf32>
    %10 = tpu.matmul %8, %9, %cst_9 {dimension_numbers = #tpu.dot_dimension_numbers<[1], [0], [0], [1], [0, 0, 1, 1], [], []>} : vector<1x256xbf16>, vector<256x128xbf16>, vector<1x128xf32> -> vector<1x128xf32>
    %c0_10 = arith.constant 0 : index
    %c0_11 = arith.constant 0 : index
    %11 = vector.load %arg5[%c0_10, %c0_11] : memref<1x128xf32, #tpu.memory_space<vmem>>, vector<1x128xf32>
    %12 = arith.mulf %10, %11 : vector<1x128xf32>
    %c0_12 = arith.constant 0 : index
    %c0_13 = arith.constant 0 : index
    %13 = vector.load %arg6[%c0_12, %c0_13] : memref<1x128xf32, #tpu.memory_space<vmem>>, vector<1x128xf32>
    %14 = arith.addf %12, %13 : vector<1x128xf32>
    %cst_14 = arith.constant 0.000000e+00 : f32
    %15 = vector.broadcast %cst_14 : f32 to vector<1x128xf32>
    %16 = arith.maximumf %14, %15 : vector<1x128xf32>
    %17 = arith.truncf %16 : vector<1x128xf32> to vector<1x128xbf16>
    %c0_15 = arith.constant 0 : index
    %c0_16 = arith.constant 0 : index
    %18 = vector.load %arg7[%c0_15, %c0_16] : memref<128x10xbf16, #tpu.memory_space<vmem>>, vector<128x10xbf16>
    %cst_17 = arith.constant dense<0.000000e+00> : vector<1x10xf32>
    %19 = tpu.matmul %17, %18, %cst_17 {dimension_numbers = #tpu.dot_dimension_numbers<[1], [0], [0], [1], [0, 0, 1, 1], [], []>} : vector<1x128xbf16>, vector<128x10xbf16>, vector<1x10xf32> -> vector<1x10xf32>
    %c0_18 = arith.constant 0 : index
    %c0_19 = arith.constant 0 : index
    %20 = vector.load %arg8[%c0_18, %c0_19] : memref<1x10xf32, #tpu.memory_space<vmem>>, vector<1x10xf32>
    %21 = arith.addf %19, %20 : vector<1x10xf32>
    %c0_20 = arith.constant 0 : index
    %c0_21 = arith.constant 0 : index
    %c0_22 = arith.constant 0 : index
    %22 = vector.load %arg9[%c0_20, %c0_21, %c0_22] : memref<1x1x10xf32, #tpu.memory_space<vmem>>, vector<1x1x10xf32>
    %23 = vector.shape_cast %22 : vector<1x1x10xf32> to vector<1x10xf32>
    %24 = vector.shape_cast %21 : vector<1x10xf32> to vector<1x1x10xf32>
    tpu.vector_store %arg9[%c0_20, %c0_21, %c0_22], %24 {strides = array<i32>} : memref<1x1x10xf32, #tpu.memory_space<vmem>>, vector<1x1x10xf32>,
    return
  }
  func.func @transform_0(%arg0: i32) -> (i32, i32, i32) {
    %c0_i32 = arith.constant 0 : i32
    %c0_i32_0 = arith.constant 0 : i32
    %c0_i32_1 = arith.constant 0 : i32
    return %arg0, %c0_i32, %c0_i32_0 : i32, i32, i32
  }
  func.func @transform_1(%arg0: i32) -> (i32, i32) {
    %c0_i32 = arith.constant 0 : i32
    %c0_i32_0 = arith.constant 0 : i32
    %c0_i32_1 = arith.constant 0 : i32
    return %c0_i32, %c0_i32_0 : i32, i32
  }
  func.func @transform_2(%arg0: i32) -> (i32, i32) {
    %c0_i32 = arith.constant 0 : i32
    %c0_i32_0 = arith.constant 0 : i32
    %c0_i32_1 = arith.constant 0 : i32
    return %c0_i32, %c0_i32_0 : i32, i32
  }
  func.func @transform_3(%arg0: i32) -> (i32, i32) {
    %c0_i32 = arith.constant 0 : i32
    %c0_i32_0 = arith.constant 0 : i32
    %c0_i32_1 = arith.constant 0 : i32
    return %c0_i32, %c0_i32_0 : i32, i32
  }
  func.func @transform_4(%arg0: i32) -> (i32, i32) {
    %c0_i32 = arith.constant 0 : i32
    %c0_i32_0 = arith.constant 0 : i32
    %c0_i32_1 = arith.constant 0 : i32
    return %c0_i32, %c0_i32_0 : i32, i32
  }
  func.func @transform_5(%arg0: i32) -> (i32, i32) {
    %c0_i32 = arith.constant 0 : i32
    %c0_i32_0 = arith.constant 0 : i32
    %c0_i32_1 = arith.constant 0 : i32
    return %c0_i32, %c0_i32_0 : i32, i32
  }
  func.func @transform_6(%arg0: i32) -> (i32, i32) {
    %c0_i32 = arith.constant 0 : i32
    %c0_i32_0 = arith.constant 0 : i32
    %c0_i32_1 = arith.constant 0 : i32
    return %c0_i32, %c0_i32_0 : i32, i32
  }
  func.func @transform_7(%arg0: i32) -> (i32, i32) {
    %c0_i32 = arith.constant 0 : i32
    %c0_i32_0 = arith.constant 0 : i32
    %c0_i32_1 = arith.constant 0 : i32
    return %c0_i32, %c0_i32_0 : i32, i32
  }
  func.func @transform_8(%arg0: i32) -> (i32, i32, i32) {
    %c0_i32 = arith.constant 0 : i32
    %c0_i32_0 = arith.constant 0 : i32
    %c0_i32_1 = arith.constant 0 : i32
    return %arg0, %c0_i32, %c0_i32_0 : i32, i32, i32
  }
}

</mosaic_0001>

<bundles_post_ra>
// kernel: convnet_forward.3
= control target key start
LH: loop header
LB: loop body
LE: loop exit
PB: predicated region body
PF: predicated region fallthrough
CT: control target
= control target key end

     0   :  { %s2500_s15 = smov 0   ;;  %s3218_s0 = inlined_call_operand.vmem [shape: bf16[2,1024,128], index: 0, kind: input, shape index: {}]   ;;  %s3219_s1 = inlined_call_operand.vmem [shape: bf16[128,128], index: 1, kind: input, shape index: {}]   ;;  %s3220_s2 = inlined_call_operand.vmem [shape: f32[1,128], index: 2, kind: input, shape index: {}]   ;;  %s3221_s3 = inlined_call_operand.vmem [shape: f32[1,128], index: 3, kind: input, shape index: {}]   ;;  %s3222_s4 = inlined_call_operand.vmem [shape: bf16[2,256,128], index: 4, kind: output, shape index: {}]  }
   0x1 LB: > { %s1908_s16 = sadd.s32 4294967295, %s2472_s15   ;;  %p1912_p0 = scmp.ge.s32.totalorder %s2472_s15, 1  ;;  %s2472_s15 = sphi %s2500_s15, %s14_s15  }
   0x2   : > { %p162_p1 = scmp.lt.s32.totalorder %s2472_s15, 3 }
   0x4   : > { %p163_p2 = pnand %p1912_p0, %p162_p1 }
   0x6   : > { %166 = sbr.rel (%p163_p2) target bundleno = 423 (0x1a7), region = 36 }
   0xd   : > { %v2394_v0 = vld [vmem:[%s3219_s1] sm:$0xff]   ;;  %p188_p3 = scmp.lt.s32.totalorder %s1908_s16, 1  ;;  %v2395_v1 = vld [vmem:[%s3219_s1 + $0x8] sm:$0xff]   ;;  %v2396_v2 = vld [vmem:[%s3219_s1 + $0x10] sm:$0xff]  }
   0xe   : > { %2225 = vmatprep.subr.bf16.mxu0 %v2394_v0  ;;  %2369 = vmatprep.subr.bf16.mxu1 %v2394_v0  ;;  %v2397_v3 = vld [vmem:[%s3219_s1 + $0x18] sm:$0xff]   ;;  %v2398_v6 = vld [vmem:[%s3219_s1 + $0x20] sm:$0xff]   ;;  %v2399_v7 = vld [vmem:[%s3219_s1 + $0x28] sm:$0xff]  }
   0xf   : > { %s3287_s16 = smov (!%p188_p3, %s1908_s16), 1  ;;  %2226 = vmatpush3.bf16.msra.mxu0 %v2394_v0  ;;  %2377 = vmatpush3.bf16.msra.mxu1 %v2394_v0  ;;  %v2400_v8 = vld [vmem:[%s3219_s1 + $0x30] sm:$0xff]   ;;  %v2401_v9 = vld [vmem:[%s3219_s1 + $0x38] sm:$0xff]  }
  0x10   : > { %2227 = vmatprep.subr.bf16.mxu0 %v2395_v1  ;;  %2370 = vmatprep.subr.bf16.mxu1 %v2395_v1  ;;  %s2024_s23 = sshll.u32 %s3287_s16, 9  ;;  %s2025_s17 = sshll.u32 %s3287_s16, 7 }
  0x11   : > { %s2523_s26 = scalar_lea.vmem %s3218_s0, %s2024_s23  ;;  %s2792_s19 = scalar_lea.vmem %s3222_s4, %s2025_s17 }
  0x12   : > { %v2402_v4 = vld [vmem:[%s2523_s26] sm:$0xff]   ;;  %v2404_v10 = vld [vmem:[%s2523_s26 + $0x8] sm:$0xff]   ;;  %v2406_v12 = vld [vmem:[%s2523_s26 + $0x10] sm:$0xff]  }
  0x13   : > { %2228 = vmatpush3.bf16.msra.mxu0 %v2395_v1  ;;  %2378 = vmatpush3.bf16.msra.mxu1 %v2395_v1  ;;  %v2403_v5 = vld [vmem:[%s2523_s26 + $0x100] sm:$0xff]   ;;  %v2405_v11 = vld [vmem:[%s2523_s26 + $0x108] sm:$0xff]   ;;  %v2407_v13 = vld [vmem:[%s2523_s26 + $0x110] sm:$0xff]  }
  0x14   : > { %2229 = vmatprep.subr.bf16.mxu0 %v2396_v2  ;;  %2371 = vmatprep.subr.bf16.mxu1 %v2396_v2  ;;  %v2408_v14 = vld [vmem:[%s2523_s26 + $0x18] sm:$0xff]   ;;  %v2410_v16 = vld [vmem:[%s2523_s26 + $0x20] sm:$0xff]   ;;  %v2412_v18 = vld [vmem:[%s2523_s26 + $0x28] sm:$0xff]  }
  0x15   : > { %2241 = vmatprep.mubr.bf16.mxu0 %v2402_v4  ;;  %2305 = vmatprep.mubr.bf16.mxu1 %v2403_v5  ;;  %v2409_v15 = vld [vmem:[%s2523_s26 + $0x118] sm:$0xff]   ;;  %v2411_v17 = vld [vmem:[%s2523_s26 + $0x120] sm:$0xff]   ;;  %v2413_v19 = vld [vmem:[%s2523_s26 + $0x128] sm:$0xff]  }
  0x16   : > { %v2414_v20 = vld [vmem:[%s2523_s26 + $0x30] sm:$0xff]   ;;  %v2416_v22 = vld [vmem:[%s2523_s26 + $0x38] sm:$0xff]   ;;  %v2418_v24 = vld [vmem:[%s2523_s26 + $0x40] sm:$0xff]  }
  0x17   : > { %2230 = vmatpush3.bf16.msra.mxu0 %v2396_v2  ;;  %2379 = vmatpush3.bf16.msra.mxu1 %v2396_v2  ;;  %v2415_v21 = vld [vmem:[%s2523_s26 + $0x130] sm:$0xff]   ;;  %v2417_v23 = vld [vmem:[%s2523_s26 + $0x138] sm:$0xff]   ;;  %v2419_v25 = vld [vmem:[%s2523_s26 + $0x140] sm:$0xff]  }
  0x18   : > { %2231 = vmatprep.subr.bf16.mxu0 %v2397_v3  ;;  %2372 = vmatprep.subr.bf16.mxu1 %v2397_v3  ;;  %v2420_v26 = vld [vmem:[%s2523_s26 + $0x48] sm:$0xff]   ;;  %v2422_v28 = vld [vmem:[%s2523_s26 + $0x50] sm:$0xff]   ;;  %v2424_v30 = vld [vmem:[%s2523_s26 + $0x58] sm:$0xff]  }
  0x19   : > { %v2421_v27 = vld [vmem:[%s2523_s26 + $0x148] sm:$0xff]   ;;  %v2423_v29 = vld [vmem:[%s2523_s26 + $0x150] sm:$0xff]   ;;  %v2425_v31 = vld [vmem:[%s2523_s26 + $0x158] sm:$0xff]  }
  0x1a   : > { %v2426_v32 = vld [vmem:[%s2523_s26 + $0x60] sm:$0xff]   ;;  %v2428_v34 = vld [vmem:[%s2523_s26 + $0x68] sm:$0xff]   ;;  %v2430_v36 = vld [vmem:[%s2523_s26 + $0x70] sm:$0xff]  }
  0x1b   : > { %2232 = vmatpush3.bf16.msra.mxu0 %v2397_v3  ;;  %2380 = vmatpush3.bf16.msra.mxu1 %v2397_v3  ;;  %v2427_v33 = vld [vmem:[%s2523_s26 + $0x160] sm:$0xff]   ;;  %v2429_v35 = vld [vmem:[%s2523_s26 + $0x168] sm:$0xff]   ;;  %v2431_v37 = vld [vmem:[%s2523_s26 + $0x170] sm:$0xff]  }
  0x1c   : > { %2233 = vmatprep.subr.bf16.mxu0 %v2398_v6  ;;  %2373 = vmatprep.subr.bf16.mxu1 %v2398_v6  ;;  %v2432_v38 = vld [vmem:[%s2523_s26 + $0x78] sm:$0xff]   ;;  %v2434_v40 = vld [vmem:[%s2523_s26 + $0x80] sm:$0xff]   ;;  %v2436_v42 = vld [vmem:[%s2523_s26 + $0x88] sm:$0xff]  }
  0x1d   : > { %v2433_v39 = vld [vmem:[%s2523_s26 + $0x178] sm:$0xff]   ;;  %v2435_v41 = vld [vmem:[%s2523_s26 + $0x180] sm:$0xff]   ;;  %v2437_v43 = vld [vmem:[%s2523_s26 + $0x188] sm:$0xff]  }
  0x1e   : > { %v2438_v44 = vld [vmem:[%s2523_s26 + $0x90] sm:$0xff]   ;;  %v2440_v46 = vld [vmem:[%s2523_s26 + $0x98] sm:$0xff]   ;;  %v2442_v48 = vld [vmem:[%s2523_s26 + $0xa0] sm:$0xff]  }
  0x1f   : > { %2234 = vmatpush3.bf16.msra.mxu0 %v2398_v6  ;;  %2381 = vmatpush3.bf16.msra.mxu1 %v2398_v6  ;;  %v2439_v45 = vld [vmem:[%s2523_s26 + $0x190] sm:$0xff]   ;;  %v2441_v47 = vld [vmem:[%s2523_s26 + $0x198] sm:$0xff]   ;;  %v2443_v49 = vld [vmem:[%s2523_s26 + $0x1a0] sm:$0xff]  }
  0x20   : > { %2235 = vmatprep.subr.bf16.mxu0 %v2399_v7  ;;  %2374 = vmatprep.subr.bf16.mxu1 %v2399_v7  ;;  %v2444_v50 = vld [vmem:[%s2523_s26 + $0xa8] sm:$0xff]   ;;  %v2446_v52 = vld [vmem:[%s2523_s26 + $0xb0] sm:$0xff]   ;;  %v2448_v54 = vld [vmem:[%s2523_s26 + $0xb8] sm:$0xff]  }
  0x21   : > { %v2445_v51 = vld [vmem:[%s2523_s26 + $0x1a8] sm:$0xff]   ;;  %v2447_v53 = vld [vmem:[%s2523_s26 + $0x1b0] sm:$0xff]   ;;  %v2449_v55 = vld [vmem:[%s2523_s26 + $0x1b8] sm:$0xff]  }
  0x22   : > { %v2450_v56 = vld [vmem:[%s2523_s26 + $0xc0] sm:$0xff]   ;;  %v2452_v58 = vld [vmem:[%s2523_s26 + $0xc8] sm:$0xff]   ;;  %v2454_v60 = vld [vmem:[%s2523_s26 + $0xd0] sm:$0xff]  }
  0x23   : > { %2236 = vmatpush3.bf16.msra.mxu0 %v2399_v7  ;;  %2382 = vmatpush3.bf16.msra.mxu1 %v2399_v7  ;;  %v2451_v57 = vld [vmem:[%s2523_s26 + $0x1c0] sm:$0xff]   ;;  %v2453_v59 = vld [vmem:[%s2523_s26 + $0x1c8] sm:$0xff]   ;;  %v2455_v61 = vld [vmem:[%s2523_s26 + $0x1d0] sm:$0xff]  }
  0x24   : > { %2237 = vmatprep.subr.bf16.mxu0 %v2400_v8  ;;  %2375 = vmatprep.subr.bf16.mxu1 %v2400_v8  ;;  %v2456_v62 = vld [vmem:[%s2523_s26 + $0xd8] sm:$0xff]   ;;  %v2458_v0 = vld [vmem:[%s2523_s26 + $0xe0] sm:$0xff]   ;;  %v2460_v2 = vld [vmem:[%s2523_s26 + $0xe8] sm:$0xff]  }
  0x25   : > { %v2457_v63 = vld [vmem:[%s2523_s26 + $0x1d8] sm:$0xff]   ;;  %v2459_v1 = vld [vmem:[%s2523_s26 + $0x1e0] sm:$0xff]   ;;  %v2461_v3 = vld [vmem:[%s2523_s26 + $0x1e8] sm:$0xff]  }
  0x26   : > { %v2462_v4 = vld [vmem:[%s2523_s26 + $0xf0] sm:$0xff]   ;;  %v2464_v6 = vld [vmem:[%s2523_s26 + $0xf8] sm:$0xff]  }
  0x27   : > { %2238 = vmatpush3.bf16.msra.mxu0 %v2400_v8  ;;  %2383 = vmatpush3.bf16.msra.mxu1 %v2400_v8  ;;  %v2463_v5 = vld [vmem:[%s2523_s26 + $0x1f0] sm:$0xff]   ;;  %v2465_v7 = vld [vmem:[%s2523_s26 + $0x1f8] sm:$0xff]  }
  0x28   : > { %2239 = vmatprep.subr.bf16.mxu0 %v2401_v9  ;;  %2376 = vmatprep.subr.bf16.mxu1 %v2401_v9 }
  0x2b   : > { %2240 = vmatpush3.bf16.msra.mxu0 %v2401_v9  ;;  %2384 = vmatpush3.bf16.msra.mxu1 %v2401_v9 }
  0x2e   : > { %2242 = vmatmul.mubr.bf16.vlgmr.msra.gmra.mrb[0].mxu0 %v2404_v10  ;;  %2306 = vmatmul.mubr.bf16.vlgmr.msra.gmra.mrb[0].mxu1 %v2405_v11 }
  0x2f   : > { %2245 = vmatprep.mubr.bf16.mxu0 %v2406_v12  ;;  %2309 = vmatprep.mubr.bf16.mxu1 %v2407_v13 }
  0x36   : > { %2246 = vmatmul.mubr.bf16.gmra.mrb[4].mxu0 %v2408_v14  ;;  %2310 = vmatmul.mubr.bf16.gmra.mrb[4].mxu1 %v2409_v15 }
  0x37   : > { %2249 = vmatprep.mubr.bf16.mxu0 %v2410_v16  ;;  %2313 = vmatprep.mubr.bf16.mxu1 %v2411_v17 }
  0x3e   : > { %2250 = vmatmul.mubr.bf16.gmra.mrb[8].mxu0 %v2412_v18  ;;  %2314 = vmatmul.mubr.bf16.gmra.mrb[8].mxu1 %v2413_v19 }
  0x3f   : > { %2253 = vmatprep.mubr.bf16.mxu0 %v2414_v20  ;;  %2317 = vmatprep.mubr.bf16.mxu1 %v2415_v21 }
  0x46   : > { %2254 = vmatmul.mubr.bf16.gmra.mrb[12].mxu0 %v2416_v22  ;;  %2318 = vmatmul.mubr.bf16.gmra.mrb[12].mxu1 %v2417_v23 }
  0x47   : > { %2257 = vmatprep.mubr.bf16.mxu0 %v2418_v24  ;;  %2321 = vmatprep.mubr.bf16.mxu1 %v2419_v25 }
  0x4e   : > { %2258 = vmatmul.mubr.bf16.gmra.mrb[16].mxu0 %v2420_v26  ;;  %2322 = vmatmul.mubr.bf16.gmra.mrb[16].mxu1 %v2421_v27 }
  0x4f   : > { %2261 = vmatprep.mubr.bf16.mxu0 %v2422_v28  ;;  %2325 = vmatprep.mubr.bf16.mxu1 %v2423_v29 }
  0x56   : > { %2262 = vmatmul.mubr.bf16.gmra.mrb[20].mxu0 %v2424_v30  ;;  %2326 = vmatmul.mubr.bf16.gmra.mrb[20].mxu1 %v2425_v31 }
  0x57   : > { %2265 = vmatprep.mubr.bf16.mxu0 %v2426_v32  ;;  %2329 = vmatprep.mubr.bf16.mxu1 %v2427_v33 }
  0x5e   : > { %2266 = vmatmul.mubr.bf16.gmra.mrb[24].mxu0 %v2428_v34  ;;  %2330 = vmatmul.mubr.bf16.gmra.mrb[24].mxu1 %v2429_v35 }
  0x5f   : > { %2269 = vmatprep.mubr.bf16.mxu0 %v2430_v36  ;;  %2333 = vmatprep.mubr.bf16.mxu1 %v2431_v37 }
  0x66   : > { %2270 = vmatmul.mubr.bf16.gmra.mrb[28].mxu0 %v2432_v38  ;;  %2334 = vmatmul.mubr.bf16.gmra.mrb[28].mxu1 %v2433_v39 }
  0x67   : > { %2273 = vmatprep.mubr.bf16.mxu0 %v2434_v40  ;;  %2337 = vmatprep.mubr.bf16.mxu1 %v2435_v41 }
  0x6e   : > { %2274 = vmatmul.mubr.bf16.gmra.mrb[32].mxu0 %v2436_v42  ;;  %2338 = vmatmul.mubr.bf16.gmra.mrb[32].mxu1 %v2437_v43 }
  0x6f   : > { %2277 = vmatprep.mubr.bf16.mxu0 %v2438_v44  ;;  %2341 = vmatprep.mubr.bf16.mxu1 %v2439_v45 }
  0x76   : > { %2278 = vmatmul.mubr.bf16.gmra.mrb[36].mxu0 %v2440_v46  ;;  %2342 = vmatmul.mubr.bf16.gmra.mrb[36].mxu1 %v2441_v47 }
  0x77   : > { %2281 = vmatprep.mubr.bf16.mxu0 %v2442_v48  ;;  %2345 = vmatprep.mubr.bf16.mxu1 %v2443_v49 }
  0x7e   : > { %2282 = vmatmul.mubr.bf16.gmra.mrb[40].mxu0 %v2444_v50  ;;  %2346 = vmatmul.mubr.bf16.gmra.mrb[40].mxu1 %v2445_v51 }
  0x7f   : > { %2285 = vmatprep.mubr.bf16.mxu0 %v2446_v52  ;;  %2349 = vmatprep.mubr.bf16.mxu1 %v2447_v53 }
  0x86   : > { %2286 = vmatmul.mubr.bf16.gmra.mrb[44].mxu0 %v2448_v54  ;;  %2350 = vmatmul.mubr.bf16.gmra.mrb[44].mxu1 %v2449_v55 }
  0x87   : > { %2289 = vmatprep.mubr.bf16.mxu0 %v2450_v56  ;;  %2353 = vmatprep.mubr.bf16.mxu1 %v2451_v57 }
  0x8e   : > { %2290 = vmatmul.mubr.bf16.gmra.mrb[48].mxu0 %v2452_v58  ;;  %2354 = vmatmul.mubr.bf16.gmra.mrb[48].mxu1 %v2453_v59  ;;  %v1516_v58 = vlaneseq }
  0x8f   : > { %2293 = vmatprep.mubr.bf16.mxu0 %v2454_v60  ;;  %2357 = vmatprep.mubr.bf16.mxu1 %v2455_v61 }
  0x96   : > { %2294 = vmatmul.mubr.bf16.gmra.mrb[52].mxu0 %v2456_v62  ;;  %2358 = vmatmul.mubr.bf16.gmra.mrb[52].mxu1 %v2457_v63 }
  0x97   : > { %2297 = vmatprep.mubr.bf16.mxu0 %v2458_v0  ;;  %2361 = vmatprep.mubr.bf16.mxu1 %v2459_v1  ;;  %v1512_v1 = vld [vmem:[%s3220_s2] sm:$0x1] }
  0x98   : > { %vm1514_vm0 = vcmp.ge.f32.partialorder %v1512_v1, 0.0 }
  0x9e   : > { %2298 = vmatmul.mubr.bf16.gmra.mrb[56].mxu0 %v2460_v2  ;;  %2362 = vmatmul.mubr.bf16.gmra.mrb[56].mxu1 %v2461_v3  ;;  %v1517_v2 = vshrl.u32 %v1516_v58, 7 }
  0x9f   : > { %2301 = vmatprep.mubr.bf16.mxu0 %v2462_v4  ;;  %2365 = vmatprep.mubr.bf16.mxu1 %v2463_v5 }
  0xa0   : > { %v1518_v5 = vsub.s32 0, %v1517_v2 }
  0xa6   : > { %2302 = vmatmul.mubr.bf16.gmra.mrb[60].mxu0 %v2464_v6  ;;  %2366 = vmatmul.mubr.bf16.gmra.mrb[60].mxu1 %v2465_v7 }
 0x101   : > { %v2604_v8 = vpop.f32.mrb[0].mxu0  ;;  %v2606_v9 = vpop.f32.mrb[0].mxu1 }
 0x102   : > { %v2608_v10 = vpop.f32.mrb[1].mxu0  ;;  %v2610_v11 = vpop.f32.mrb[1].mxu1 }
 0x103   : > { %v2612_v12 = vpop.f32.mrb[2].mxu0  ;;  %v2614_v13 = vpop.f32.mrb[2].mxu1 }
 0x104   : > { %v2616_v14 = vpop.f32.mrb[3].mxu0  ;;  %v2618_v15 = vpop.f32.mrb[3].mxu1 }
 0x109   : > { %v2620_v16 = vpop.f32.mrb[4].mxu0  ;;  %v2622_v17 = vpop.f32.mrb[4].mxu1 }
 0x10a   : > { %v2624_v18 = vpop.f32.mrb[5].mxu0  ;;  %v2626_v19 = vpop.f32.mrb[5].mxu1 }
 0x10b   : > { %v2628_v20 = vpop.f32.mrb[6].mxu0  ;;  %v2630_v21 = vpop.f32.mrb[6].mxu1 }
 0x10c   : > { %v2632_v22 = vpop.f32.mrb[7].mxu0  ;;  %v2634_v23 = vpop.f32.mrb[7].mxu1 }
 0x111   : > { %v2636_v24 = vpop.f32.mrb[8].mxu0  ;;  %v2638_v25 = vpop.f32.mrb[8].mxu1 }
 0x112   : > { %v2640_v26 = vpop.f32.mrb[9].mxu0  ;;  %v2642_v27 = vpop.f32.mrb[9].mxu1 }
 0x113   : > { %v2644_v28 = vpop.f32.mrb[10].mxu0  ;;  %v2646_v29 = vpop.f32.mrb[10].mxu1 }
 0x114   : > { %v2648_v30 = vpop.f32.mrb[11].mxu0  ;;  %v2650_v31 = vpop.f32.mrb[11].mxu1 }
 0x119   : > { %v2652_v32 = vpop.f32.mrb[12].mxu0  ;;  %v2654_v33 = vpop.f32.mrb[12].mxu1 }
 0x11a   : > { %v2656_v34 = vpop.f32.mrb[13].mxu0  ;;  %v2658_v35 = vpop.f32.mrb[13].mxu1 }
 0x11b   : > { %v2660_v36 = vpop.f32.mrb[14].mxu0  ;;  %v2662_v37 = vpop.f32.mrb[14].mxu1 }
 0x11c   : > { %v2664_v38 = vpop.f32.mrb[15].mxu0  ;;  %v2666_v39 = vpop.f32.mrb[15].mxu1 }
 0x121   : > { %v2668_v40 = vpop.f32.mrb[16].mxu0  ;;  %v2670_v41 = vpop.f32.mrb[16].mxu1 }
 0x122   : > { %v2672_v42 = vpop.f32.mrb[17].mxu0  ;;  %v2674_v43 = vpop.f32.mrb[17].mxu1 }
 0x123   : > { %v2676_v44 = vpop.f32.mrb[18].mxu0  ;;  %v2678_v45 = vpop.f32.mrb[18].mxu1 }
 0x124   : > { %v2680_v46 = vpop.f32.mrb[19].mxu0  ;;  %v2682_v47 = vpop.f32.mrb[19].mxu1 }
 0x129   : > { %v2684_v48 = vpop.f32.mrb[20].mxu0  ;;  %v2686_v49 = vpop.f32.mrb[20].mxu1 }
 0x12a   : > { %v2688_v50 = vpop.f32.mrb[21].mxu0  ;;  %v2690_v51 = vpop.f32.mrb[21].mxu1 }
 0x12b   : > { %3244 = vst [vmem:[#allocation2_spill] sm:$0xff] %v2690_v51  ;;  %v2692_v52 = vpop.f32.mrb[22].mxu0  ;;  %v2694_v53 = vpop.f32.mrb[22].mxu1 }
 0x12c   : > { %3245 = vst [vmem:[#allocation3_spill] sm:$0xff] %v2692_v52  ;;  %3246 = vst [vmem:[#allocation4_spill] sm:$0xff] %v2694_v53  ;;  %v2696_v54 = vpop.f32.mrb[23].mxu0  ;;  %v2698_v55 = vpop.f32.mrb[23].mxu1 }
 0x12d   : > { %3247 = vst [vmem:[#allocation5_spill] sm:$0xff] %v2696_v54  ;;  %3248 = vst [vmem:[#allocation6_spill] sm:$0xff] %v2698_v55 }
 0x131   : > { %v2700_v56 = vpop.f32.mrb[24].mxu0  ;;  %v2702_v57 = vpop.f32.mrb[24].mxu1 }
 0x132   : > { %3249 = vst [vmem:[#allocation7_spill] sm:$0xff] %v2700_v56  ;;  %3250 = vst [vmem:[#allocation8_spill] sm:$0xff] %v2702_v57  ;;  %v2704_v59 = vpop.f32.mrb[25].mxu0  ;;  %v2706_v60 = vpop.f32.mrb[25].mxu1 }
 0x133   : > { %3251 = vst [vmem:[#allocation9_spill] sm:$0xff] %v2704_v59  ;;  %3252 = vst [vmem:[#allocation10_spill] sm:$0xff] %v2706_v60  ;;  %v2708_v61 = vpop.f32.mrb[26].mxu0  ;;  %v2710_v62 = vpop.f32.mrb[26].mxu1 }
 0x134   : > { %3253 = vst [vmem:[#allocation11_spill] sm:$0xff] %v2708_v61  ;;  %3254 = vst [vmem:[#allocation12_spill] sm:$0xff] %v2710_v62  ;;  %v2712_v63 = vpop.f32.mrb[27].mxu0  ;;  %v2714_v0 = vpop.f32.mrb[27].mxu1  ;;  %v2474_v62 = vmov 0  }
 0x135   : > { %3255 = vst [vmem:[#allocation13_spill] sm:$0xff] %v2712_v63  ;;  %3256 = vst [vmem:[#allocation14_spill] sm:$0xff] %v2714_v0  ;;  %v1585_v61 = vsel %vm1514_vm0, 1, %v2474_v62 }
 0x136   : > { %v2735_v58 = vrot.slane %v1585_v61, %v1518_v5 }
 0x138   : > { %vm1590_vm1 = vcmp.eq.s32.totalorder %v2735_v58, 1 }
 0x139   : > { %v2719_v3 = vpop.f32.mrb[28].mxu0  ;;  %v2721_v4 = vpop.f32.mrb[28].mxu1 }
 0x13a   : > { %3257 = vst [vmem:[#allocation15_spill] sm:$0xff] %v2719_v3  ;;  %3258 = vst [vmem:[#allocation16_spill] sm:$0xff] %v2721_v4  ;;  %v2723_v6 = vpop.f32.mrb[29].mxu0  ;;  %v2725_v7 = vpop.f32.mrb[29].mxu1  ;;  %v2737_v4 = vrot.slane %v1512_v1, %v1518_v5 }
 0x13b   : > { %3259 = vst [vmem:[#allocation17_spill] sm:$0xff] %v2723_v6  ;;  %3260 = vst [vmem:[#allocation18_spill] sm:$0xff] %v2725_v7  ;;  %v2727_v63 = vpop.f32.mrb[30].mxu0  ;;  %v2729_v0 = vpop.f32.mrb[30].mxu1 }
 0x13c   : > { %3261 = vst [vmem:[#allocation19_spill] sm:$0xff] %v2727_v63  ;;  %3262 = vst [vmem:[#allocation20_spill] sm:$0xff] %v2729_v0  ;;  %v2731_v60 = vpop.f32.mrb[31].mxu0  ;;  %v2733_v59 = vpop.f32.mrb[31].mxu1 }
 0x13d   : > { %3263 = vst [vmem:[#allocation21_spill] sm:$0xff] %v2731_v60  ;;  %3264 = vst [vmem:[#allocation22_spill] sm:$0xff] %v2733_v59 }
 0x141   : > { %v2275_v3 = vpop.f32.mrb[32].mxu0  ;;  %v2339_v57 = vpop.f32.mrb[32].mxu1 }
 0x142   : > { %v1322_v2 = vmax.f32 %v2604_v8, %v2275_v3  ;;  %v1418_v62 = vmin.f32 %v2604_v8, %v2275_v3  ;;  %v1354_v63 = vmax.f32 %v2606_v9, %v2339_v57  ;;  %v1450_v0 = vmin.f32 %v2606_v9, %v2339_v57  ;;  %v937_v7 = vpop.f32.mrb[33].mxu0  ;;  %v1193_v60 = vpop.f32.mrb[33].mxu1 }
 0x143   : > { %v1320_v59 = vmax.f32 %v2608_v10, %v937_v7  ;;  %v1416_v61 = vmin.f32 %v2608_v10, %v937_v7  ;;  %v1352_v6 = vmax.f32 %v2610_v11, %v1193_v60  ;;  %v1448_v1 = vmin.f32 %v2610_v11, %v1193_v60  ;;  %v2276_v5 = vpop.f32.mrb[34].mxu0  ;;  %v2340_v56 = vpop.f32.mrb[34].mxu1  ;;  %v2755_v11 = vld [vmem:[%s3221_s3] ss:$0 sm:$0xff] }
 0x144   : > { %v1386_v55 = vmax.f32 %v1322_v2, %v1354_v63  ;;  %v1482_v54 = vmin.f32 %v1418_v62, %v1450_v0  ;;  %v1323_v8 = vmax.f32 %v2612_v12, %v2276_v5  ;;  %v1419_v3 = vmin.f32 %v2612_v12, %v2276_v5  ;;  %v940_v53 = vpop.f32.mrb[35].mxu0  ;;  %v1196_v9 = vpop.f32.mrb[35].mxu1 }
 0x145   : > { %v1384_v57 = vmax.f32 %v1320_v59, %v1352_v6  ;;  %v1480_v52 = vmin.f32 %v1416_v61, %v1448_v1  ;;  %v1355_v51 = vmax.f32 %v2614_v13, %v2340_v56  ;;  %v1451_v10 = vmin.f32 %v2614_v13, %v2340_v56 }
 0x146   : > { %v1523_v60 = vmul.f32 %v2737_v4, %v1386_v55  ;;  %v1555_v63 = vmul.f32 %v2737_v4, %v1482_v54  ;;  %v1321_v0 = vmax.f32 %v2616_v14, %v940_v53  ;;  %v1417_v12 = vmin.f32 %v2616_v14, %v940_v53 }
 0x147   : > { %v1521_v59 = vmul.f32 %v2737_v4, %v1384_v57  ;;  %v1553_v6 = vmul.f32 %v2737_v4, %v1480_v52  ;;  %v1387_v7 = vmax.f32 %v1323_v8, %v1355_v51  ;;  %v1483_v2 = vmin.f32 %v1419_v3, %v1451_v10 }
 0x148   : > { %v1593_v13 = vsel %vm1590_vm1, %v1523_v60, %v1555_v63  ;;  %v1353_v56 = vmax.f32 %v2618_v15, %v1196_v9  ;;  %v1449_v62 = vmin.f32 %v2618_v15, %v1196_v9 }
 0x149   : > { %v1631_v55 = vadd.f32 %v2755_v11, %v1593_v13  ;;  %v1591_v54 = vsel %vm1590_vm1, %v1521_v59, %v1553_v6  ;;  %v1524_v14 = vmul.f32 %v2737_v4, %v1387_v7  ;;  %v1556_v53 = vmul.f32 %v2737_v4, %v1483_v2  ;;  %v2279_v52 = vpop.f32.mrb[36].mxu0  ;;  %v2343_v51 = vpop.f32.mrb[36].mxu1 }
 0x14a   : > { %v1629_v61 = vadd.f32 %v2755_v11, %v1591_v54  ;;  %v1385_v1 = vmax.f32 %v1321_v0, %v1353_v56  ;;  %v1481_v5 = vmin.f32 %v1417_v12, %v1449_v62  ;;  %v1326_v8 = vmax.f32 %v2620_v16, %v2279_v52  ;;  %v953_v3 = vpop.f32.mrb[37].mxu0  ;;  %v1209_v15 = vpop.f32.mrb[37].mxu1 }
 0x14b   : > { %v1663_v9 = vmax.f32 %v1631_v55, 0.0  ;;  %v1594_v57 = vsel %vm1590_vm1, %v1524_v14, %v1556_v53  ;;  %v1422_v10 = vmin.f32 %v2620_v16, %v2279_v52  ;;  %v1358_v60 = vmax.f32 %v2622_v17, %v2343_v51  ;;  %v2280_v63 = vpop.f32.mrb[38].mxu0  ;;  %v2344_v59 = vpop.f32.mrb[38].mxu1 }
 0x14c   : > { %v1661_v6 = vmax.f32 %v1629_v61, 0.0  ;;  %v1632_v7 = vadd.f32 %v2755_v11, %v1594_v57  ;;  %v1522_v0 = vmul.f32 %v2737_v4, %v1385_v1  ;;  %v1554_v12 = vmul.f32 %v2737_v4, %v1481_v5  ;;  %v956_v2 = vpop.f32.mrb[39].mxu0  ;;  %v1212_v13 = vpop.f32.mrb[39].mxu1 }
 0x14d   : > { %v1390_v56 = vmax.f32 %v1326_v8, %v1358_v60  ;;  %v1454_v62 = vmin.f32 %v2622_v17, %v2343_v51  ;;  %v1324_v55 = vmax.f32 %v2624_v18, %v953_v3  ;;  %v1420_v16 = vmin.f32 %v2624_v18, %v953_v3 }
 0x14e   : > { %v1664_v54 = vmax.f32 %v1632_v7, 0.0  ;;  %v1592_v14 = vsel %vm1590_vm1, %v1522_v0, %v1554_v12  ;;  %v1356_v53 = vmax.f32 %v2626_v19, %v1209_v15  ;;  %v1452_v52 = vmin.f32 %v2626_v19, %v1209_v15 }
 0x14f   : > { %v1630_v17 = vadd.f32 %v2755_v11, %v1592_v14  ;;  %v1486_v51 = vmin.f32 %v1422_v10, %v1454_v62  ;;  %v1527_v61 = vmul.f32 %v2737_v4, %v1390_v56  ;;  %v1327_v18 = vmax.f32 %v2628_v20, %v2280_v63 }
 0x150   : > { %v2066_v1 = vpack.c.bf16 %v1664_v54, %v1663_v9  ;;  %v1388_v5 = vmax.f32 %v1324_v55, %v1356_v53  ;;  %v1484_v8 = vmin.f32 %v1420_v16, %v1452_v52  ;;  %v1423_v3 = vmin.f32 %v2628_v20, %v2280_v63 }
 0x151   : > { %v1662_v57 = vmax.f32 %v1630_v17, 0.0  ;;  %v1559_v19 = vmul.f32 %v2737_v4, %v1486_v51  ;;  %v1359_v15 = vmax.f32 %v2630_v21, %v2344_v59  ;;  %v1455_v60 = vmin.f32 %v2630_v21, %v2344_v59  ;;  %v2283_v7 = vpop.f32.mrb[40].mxu0  ;;  %v2347_v0 = vpop.f32.mrb[40].mxu1 }
 0x152   : > { %2138 = vst [vmem:[%s2792_s19 + $0x8] sm:$0xff] %v2066_v1   ;;  %v1525_v10 = vmul.f32 %v2737_v4, %v1388_v5  ;;  %v1557_v12 = vmul.f32 %v2737_v4, %v1484_v8  ;;  %v1325_v9 = vmax.f32 %v2632_v22, %v956_v2  ;;  %v1421_v56 = vmin.f32 %v2632_v22, %v956_v2  ;;  %v969_v20 = vpop.f32.mrb[41].mxu0  ;;  %v1225_v63 = vpop.f32.mrb[41].mxu1 }
 0x153   : > { %v2061_v62 = vpack.c.bf16 %v1662_v57, %v1661_v6  ;;  %v1597_v55 = vsel %vm1590_vm1, %v1527_v61, %v1559_v19  ;;  %v1391_v16 = vmax.f32 %v1327_v18, %v1359_v15  ;;  %v1487_v21 = vmin.f32 %v1423_v3, %v1455_v60  ;;  %v2284_v59 = vpop.f32.mrb[42].mxu0  ;;  %v2348_v54 = vpop.f32.mrb[42].mxu1 }
 0x154   : > { %v1635_v14 = vadd.f32 %v2755_v11, %v1597_v55  ;;  %v1595_v53 = vsel %vm1590_vm1, %v1525_v10, %v1557_v12  ;;  %v1357_v52 = vmax.f32 %v2634_v23, %v1212_v13  ;;  %v1453_v17 = vmin.f32 %v2634_v23, %v1212_v13  ;;  %v2813_v22 = vpop.f32.mrb[43].mxu0  ;;  %v2815_v2 = vpop.f32.mrb[43].mxu1 }
 0x155   : > { %2062 = vst [vmem:[%s2792_s19] sm:$0xff] %v2061_v62   ;;  %v1633_v6 = vadd.f32 %v2755_v11, %v1595_v53  ;;  %v1528_v51 = vmul.f32 %v2737_v4, %v1391_v16  ;;  %v1560_v61 = vmul.f32 %v2737_v4, %v1487_v21  ;;  %v1330_v18 = vmax.f32 %v2636_v24, %v2283_v7 }
 0x156   : > { %v1667_v1 = vmax.f32 %v1635_v14, 0.0  ;;  %v1389_v5 = vmax.f32 %v1325_v9, %v1357_v52  ;;  %v1485_v8 = vmin.f32 %v1421_v56, %v1453_v17  ;;  %v1426_v3 = vmin.f32 %v2636_v24, %v2283_v7 }
 0x157   : > { %v1665_v57 = vmax.f32 %v1633_v6, 0.0  ;;  %v1598_v23 = vsel %vm1590_vm1, %v1528_v51, %v1560_v61  ;;  %v1362_v13 = vmax.f32 %v2638_v25, %v2347_v0  ;;  %v1458_v19 = vmin.f32 %v2638_v25, %v2347_v0 }
 0x158   : > { %v1636_v15 = vadd.f32 %v2755_v11, %v1598_v23  ;;  %v1526_v60 = vmul.f32 %v2737_v4, %v1389_v5  ;;  %v1558_v10 = vmul.f32 %v2737_v4, %v1485_v8  ;;  %v1328_v12 = vmax.f32 %v2640_v26, %v969_v20 }
 0x159   : > { %v1394_v9 = vmax.f32 %v1330_v18, %v1362_v13  ;;  %v1490_v56 = vmin.f32 %v1426_v3, %v1458_v19  ;;  %v1424_v24 = vmin.f32 %v2640_v26, %v969_v20  ;;  %v1360_v7 = vmax.f32 %v2642_v27, %v1225_v63  ;;  %v2287_v62 = vpop.f32.mrb[44].mxu0  ;;  %v2351_v55 = vpop.f32.mrb[44].mxu1 }
 0x15a   : > { %v1668_v16 = vmax.f32 %v1636_v15, 0.0  ;;  %v1596_v25 = vsel %vm1590_vm1, %v1526_v60, %v1558_v10  ;;  %v1456_v0 = vmin.f32 %v2642_v27, %v1225_v63  ;;  %v1331_v21 = vmax.f32 %v2644_v28, %v2284_v59  ;;  %v2837_v14 = vpop.f32.mrb[45].mxu0  ;;  %v2839_v53 = vpop.f32.mrb[45].mxu1 }
 0x15b   : > { %v1634_v52 = vadd.f32 %v2755_v11, %v1596_v25  ;;  %v1531_v26 = vmul.f32 %v2737_v4, %v1394_v9  ;;  %v1563_v20 = vmul.f32 %v2737_v4, %v1490_v56  ;;  %v1392_v17 = vmax.f32 %v1328_v12, %v1360_v7  ;;  %v2844_v6 = vpop.f32.mrb[46].mxu0  ;;  %v2846_v51 = vpop.f32.mrb[46].mxu1 }
 0x15c   : > { %v2076_v61 = vpack.c.bf16 %v1668_v16, %v1667_v1  ;;  %v1488_v27 = vmin.f32 %v1424_v24, %v1456_v0  ;;  %v1427_v63 = vmin.f32 %v2644_v28, %v2284_v59  ;;  %v1363_v18 = vmax.f32 %v2646_v29, %v2348_v54  ;;  %v2850_v5 = vpop.f32.mrb[47].mxu0  ;;  %v2852_v8 = vpop.f32.mrb[47].mxu1 }
 0x15d   : > { %v1666_v3 = vmax.f32 %v1634_v52, 0.0  ;;  %v1601_v23 = vsel %vm1590_vm1, %v1531_v26, %v1563_v20  ;;  %v1529_v13 = vmul.f32 %v2737_v4, %v1392_v17  ;;  %v1459_v19 = vmin.f32 %v2646_v29, %v2348_v54 }
 0x15e   : > { %2140 = vst [vmem:[%s2792_s19 + $0x18] sm:$0xff] %v2076_v61   ;;  %v1639_v1 = vadd.f32 %v2755_v11, %v1601_v23  ;;  %v1561_v28 = vmul.f32 %v2737_v4, %v1488_v27  ;;  %v1395_v59 = vmax.f32 %v1331_v21, %v1363_v18  ;;  %v1329_v15 = vmax.f32 %v2648_v30, %v2813_v22 }
 0x15f   : > { %v2071_v60 = vpack.c.bf16 %v1666_v3, %v1665_v57  ;;  %v1491_v10 = vmin.f32 %v1427_v63, %v1459_v19  ;;  %v1425_v12 = vmin.f32 %v2648_v30, %v2813_v22  ;;  %v1361_v9 = vmax.f32 %v2650_v31, %v2815_v2 }
 0x160   : > { %v1671_v56 = vmax.f32 %v1639_v1, 0.0  ;;  %v1599_v29 = vsel %vm1590_vm1, %v1529_v13, %v1561_v28  ;;  %v1532_v54 = vmul.f32 %v2737_v4, %v1395_v59  ;;  %v1457_v24 = vmin.f32 %v2650_v31, %v2815_v2 }
 0x161   : > { %2139 = vst [vmem:[%s2792_s19 + $0x10] sm:$0xff] %v2071_v60   ;;  %v1637_v7 = vadd.f32 %v2755_v11, %v1599_v29  ;;  %v1564_v57 = vmul.f32 %v2737_v4, %v1491_v10  ;;  %v1393_v16 = vmax.f32 %v1329_v15, %v1361_v9  ;;  %v1334_v30 = vmax.f32 %v2652_v32, %v2287_v62  ;;  %v2876_v22 = vpop.f32.mrb[48].mxu0  ;;  %v2878_v25 = vpop.f32.mrb[48].mxu1 }
 0x162   : > { %v1489_v0 = vmin.f32 %v1425_v12, %v1457_v24  ;;  %v1430_v21 = vmin.f32 %v2652_v32, %v2287_v62  ;;  %v1366_v52 = vmax.f32 %v2654_v33, %v2351_v55  ;;  %v1462_v26 = vmin.f32 %v2654_v33, %v2351_v55  ;;  %v2883_v31 = vpop.f32.mrb[49].mxu0  ;;  %v2885_v2 = vpop.f32.mrb[49].mxu1 }
 0x163   : > { %v1669_v20 = vmax.f32 %v1637_v7, 0.0  ;;  %v1602_v17 = vsel %vm1590_vm1, %v1532_v54, %v1564_v57  ;;  %v1530_v61 = vmul.f32 %v2737_v4, %v1393_v16  ;;  %v1332_v27 = vmax.f32 %v2656_v34, %v2837_v14  ;;  %v2892_v63 = vpop.f32.mrb[50].mxu0  ;;  %v2894_v32 = vpop.f32.mrb[50].mxu1 }
 0x164   : > { %v1640_v62 = vadd.f32 %v2755_v11, %v1602_v17  ;;  %v1562_v33 = vmul.f32 %v2737_v4, %v1489_v0  ;;  %v1398_v55 = vmax.f32 %v1334_v30, %v1366_v52  ;;  %v1494_v18 = vmin.f32 %v1430_v21, %v1462_v26  ;;  %v2898_v3 = vpop.f32.mrb[51].mxu0  ;;  %v2900_v23 = vpop.f32.mrb[51].mxu1 }
 0x165   : > { %v1428_v13 = vmin.f32 %v2656_v34, %v2837_v14  ;;  %v1364_v19 = vmax.f32 %v2658_v35, %v2839_v53  ;;  %v1460_v1 = vmin.f32 %v2658_v35, %v2839_v53  ;;  %v1335_v28 = vmax.f32 %v2660_v36, %v2844_v6 }
 0x166   : > { %v1672_v59 = vmax.f32 %v1640_v62, 0.0  ;;  %v1600_v15 = vsel %vm1590_vm1, %v1530_v61, %v1562_v33  ;;  %v1535_v60 = vmul.f32 %v2737_v4, %v1398_v55  ;;  %v1567_v10 = vmul.f32 %v2737_v4, %v1494_v18 }
 0x167   : > { %v1638_v34 = vadd.f32 %v2755_v11, %v1600_v15  ;;  %v1396_v14 = vmax.f32 %v1332_v27, %v1364_v19  ;;  %v1492_v12 = vmin.f32 %v1428_v13, %v1460_v1  ;;  %v1431_v9 = vmin.f32 %v2660_v36, %v2844_v6 }
 0x168   : > { %v2086_v35 = vpack.c.bf16 %v1672_v59, %v1671_v56  ;;  %v1605_v53 = vsel %vm1590_vm1, %v1535_v60, %v1567_v10  ;;  %v1367_v29 = vmax.f32 %v2662_v37, %v2846_v51  ;;  %v1463_v54 = vmin.f32 %v2662_v37, %v2846_v51 }
 0x169   : > { %v1670_v24 = vmax.f32 %v1638_v34, 0.0  ;;  %v1643_v7 = vadd.f32 %v2755_v11, %v1605_v53  ;;  %v1533_v57 = vmul.f32 %v2737_v4, %v1396_v14  ;;  %v1565_v16 = vmul.f32 %v2737_v4, %v1492_v12  ;;  %v2926_v30 = vpop.f32.mrb[52].mxu0  ;;  %v2928_v36 = vpop.f32.mrb[52].mxu1 }
 0x16a   : > { %2142 = vst [vmem:[%s2792_s19 + $0x28] sm:$0xff] %v2086_v35   ;;  %v1399_v6 = vmax.f32 %v1335_v28, %v1367_v29  ;;  %v1495_v56 = vmin.f32 %v1431_v9, %v1463_v54  ;;  %v1333_v0 = vmax.f32 %v2664_v38, %v2850_v5  ;;  %v1429_v37 = vmin.f32 %v2664_v38, %v2850_v5  ;;  %v2935_v51 = vpop.f32.mrb[53].mxu0  ;;  %v2937_v21 = vpop.f32.mrb[53].mxu1 }
 0x16b   : > { %v2081_v52 = vpack.c.bf16 %v1670_v24, %v1669_v20  ;;  %v1675_v26 = vmax.f32 %v1643_v7, 0.0  ;;  %v1603_v17 = vsel %vm1590_vm1, %v1533_v57, %v1565_v16  ;;  %v1365_v61 = vmax.f32 %v2666_v39, %v2852_v8  ;;  %v2943_v27 = vpop.f32.mrb[54].mxu0  ;;  %v2945_v62 = vpop.f32.mrb[54].mxu1 }
 0x16c   : > { %v1641_v33 = vadd.f32 %v2755_v11, %v1603_v17  ;;  %v1536_v38 = vmul.f32 %v2737_v4, %v1399_v6  ;;  %v1568_v5 = vmul.f32 %v2737_v4, %v1495_v56  ;;  %v1461_v20 = vmin.f32 %v2666_v39, %v2852_v8  ;;  %v2952_v55 = vpop.f32.mrb[55].mxu0  ;;  %v2954_v18 = vpop.f32.mrb[55].mxu1 }
 0x16d   : > { %2141 = vst [vmem:[%s2792_s19 + $0x20] sm:$0xff] %v2081_v52   ;;  %v1397_v13 = vmax.f32 %v1333_v0, %v1365_v61  ;;  %v1338_v19 = vmax.f32 %v2668_v40, %v2876_v22  ;;  %v1434_v1 = vmin.f32 %v2668_v40, %v2876_v22  ;;  %v1370_v28 = vmax.f32 %v2670_v41, %v2878_v25 }
 0x16e   : > { %v1673_v59 = vmax.f32 %v1641_v33, 0.0  ;;  %v1606_v15 = vsel %vm1590_vm1, %v1536_v38, %v1568_v5  ;;  %v1493_v39 = vmin.f32 %v1429_v37, %v1461_v20  ;;  %v1466_v8 = vmin.f32 %v2670_v41, %v2878_v25 }
 0x16f   : > { %v1644_v60 = vadd.f32 %v2755_v11, %v1606_v15  ;;  %v1534_v10 = vmul.f32 %v2737_v4, %v1397_v13  ;;  %v1402_v34 = vmax.f32 %v1338_v19, %v1370_v28  ;;  %v1336_v14 = vmax.f32 %v2672_v42, %v2883_v31 }
 0x170   : > { %v1566_v40 = vmul.f32 %v2737_v4, %v1493_v39  ;;  %v1498_v22 = vmin.f32 %v1434_v1, %v1466_v8  ;;  %v1432_v12 = vmin.f32 %v2672_v42, %v2883_v31  ;;  %v1368_v9 = vmax.f32 %v2674_v43, %v2885_v2 }
 0x171   : > { %v1676_v35 = vmax.f32 %v1644_v60, 0.0  ;;  %v1539_v41 = vmul.f32 %v2737_v4, %v1402_v34  ;;  %v1464_v25 = vmin.f32 %v2674_v43, %v2885_v2  ;;  %v1339_v53 = vmax.f32 %v2676_v44, %v2892_v63  ;;  %v2981_v29 = vpop.f32.mrb[56].mxu0  ;;  %v2983_v54 = vpop.f32.mrb[56].mxu1 }
 0x172   : > { %v1604_v24 = vsel %vm1590_vm1, %v1534_v10, %v1566_v40  ;;  %v1571_v42 = vmul.f32 %v2737_v4, %v1498_v22  ;;  %v1400_v31 = vmax.f32 %v1336_v14, %v1368_v9  ;;  %v1435_v7 = vmin.f32 %v2676_v44, %v2892_v63  ;;  %v2990_v57 = vpop.f32.mrb[57].mxu0  ;;  %v2992_v43 = vpop.f32.mrb[57].mxu1 }
 0x173   : > { %v2096_v2 = vpack.c.bf16 %v1676_v35, %v1675_v26  ;;  %v1642_v16 = vadd.f32 %v2755_v11, %v1604_v24  ;;  %v1496_v6 = vmin.f32 %v1432_v12, %v1464_v25  ;;  %v1371_v56 = vmax.f32 %v2678_v45, %v2894_v32  ;;  %v2997_v0 = vpop.f32.mrb[58].mxu0  ;;  %v2999_v37 = vpop.f32.mrb[58].mxu1 }
 0x174   : > { %v1609_v52 = vsel %vm1590_vm1, %v1539_v41, %v1571_v42  ;;  %v1537_v44 = vmul.f32 %v2737_v4, %v1400_v31  ;;  %v1467_v63 = vmin.f32 %v2678_v45, %v2894_v32  ;;  %v1337_v26 = vmax.f32 %v2680_v46, %v2898_v3  ;;  %v3008_v17 = vpop.f32.mrb[59].mxu0  ;;  %v3010_v61 = vpop.f32.mrb[59].mxu1  ;;  %v3265_v31 = vld [vmem:[#allocation2_spill] sm:$0xff] }
 0x175   : > { %2144 = vst [vmem:[%s2792_s19 + $0x38] sm:$0xff] %v2096_v2   ;;  %v1674_v33 = vmax.f32 %v1642_v16, 0.0  ;;  %v1647_v38 = vadd.f32 %v2755_v11, %v1609_v52  ;;  %v1569_v5 = vmul.f32 %v2737_v4, %v1496_v6  ;;  %v1403_v20 = vmax.f32 %v1339_v53, %v1371_v56 }
 0x176   : > { %v1499_v13 = vmin.f32 %v1435_v7, %v1467_v63  ;;  %v1433_v19 = vmin.f32 %v2680_v46, %v2898_v3  ;;  %v1369_v45 = vmax.f32 %v2682_v47, %v2900_v23  ;;  %v1465_v32 = vmin.f32 %v2682_v47, %v2900_v23 }
 0x177   : > { %v2091_v1 = vpack.c.bf16 %v1674_v33, %v1673_v59  ;;  %v1679_v28 = vmax.f32 %v1647_v38, 0.0  ;;  %v1607_v15 = vsel %vm1590_vm1, %v1537_v44, %v1569_v5  ;;  %v1540_v39 = vmul.f32 %v2737_v4, %v1403_v20 }
 0x178   : > { %v1645_v8 = vadd.f32 %v2755_v11, %v1607_v15  ;;  %v1572_v60 = vmul.f32 %v2737_v4, %v1499_v13  ;;  %v1401_v10 = vmax.f32 %v1337_v26, %v1369_v45  ;;  %v1497_v34 = vmin.f32 %v1433_v19, %v1465_v32  ;;  %v3267_v13 = vld [vmem:[#allocation4_spill] sm:$0xff] }
 0x179   : > { %2143 = vst [vmem:[%s2792_s19 + $0x30] sm:$0xff] %v2091_v1   ;;  %v1342_v46 = vmax.f32 %v2684_v48, %v2926_v30  ;;  %v1438_v47 = vmin.f32 %v2684_v48, %v2926_v30  ;;  %v1374_v3 = vmax.f32 %v2686_v49, %v2928_v36  ;;  %v1470_v23 = vmin.f32 %v2686_v49, %v2928_v36  ;;  %v3035_v59 = vpop.f32.mrb[60].mxu0  ;;  %v3037_v14 = vpop.f32.mrb[60].mxu1 }
 0x17a   : > { %v1677_v40 = vmax.f32 %v1645_v8, 0.0  ;;  %v1610_v22 = vsel %vm1590_vm1, %v1540_v39, %v1572_v60  ;;  %v1538_v12 = vmul.f32 %v2737_v4, %v1401_v10  ;;  %v1570_v9 = vmul.f32 %v2737_v4, %v1497_v34  ;;  %v3043_v35 = vpop.f32.mrb[61].mxu0  ;;  %v3045_v48 = vpop.f32.mrb[61].mxu1  ;;  %v3268_v39 = vld [vmem:[#allocation5_spill] sm:$0xff] }
 0x17b   : > { %v1648_v30 = vadd.f32 %v2755_v11, %v1610_v22  ;;  %v1406_v41 = vmax.f32 %v1342_v46, %v1374_v3  ;;  %v1502_v49 = vmin.f32 %v1438_v47, %v1470_v23  ;;  %v1340_v36 = vmax.f32 %v2688_v50, %v2935_v51  ;;  %v3050_v25 = vpop.f32.mrb[62].mxu0  ;;  %v3052_v53 = vpop.f32.mrb[62].mxu1  ;;  %v3269_v47 = vld [vmem:[#allocation6_spill] sm:$0xff]  ;;  %v3270_v22 = vld [vmem:[#allocation7_spill] sm:$0xff] }
 0x17c   : > { %v1608_v24 = vsel %vm1590_vm1, %v1538_v12, %v1570_v9  ;;  %v1436_v42 = vmin.f32 %v2688_v50, %v2935_v51  ;;  %v1372_v7 = vmax.f32 %v3265_v31, %v2937_v21  ;;  %v1468_v2 = vmin.f32 %v3265_v31, %v2937_v21  ;;  %v3062_v16 = vpop.f32.mrb[63].mxu0  ;;  %v3064_v6 = vpop.f32.mrb[63].mxu1  ;;  %v3266_v51 = vld [vmem:[#allocation3_spill] sm:$0xff]  ;;  %v3272_v31 = vld [vmem:[#allocation9_spill] sm:$0xff] }
 0x17d   : > { %v1680_v56 = vmax.f32 %v1648_v30, 0.0  ;;  %v1646_v52 = vadd.f32 %v2755_v11, %v1608_v24  ;;  %v1543_v44 = vmul.f32 %v2737_v4, %v1406_v41  ;;  %v1575_v63 = vmul.f32 %v2737_v4, %v1502_v49  ;;  %v3271_v41 = vld [vmem:[#allocation8_spill] sm:$0xff] }
 0x17e   : > { %v1404_v26 = vmax.f32 %v1340_v36, %v1372_v7  ;;  %v1500_v50 = vmin.f32 %v1436_v42, %v1468_v2  ;;  %v1343_v33 = vmax.f32 %v3266_v51, %v2943_v27  ;;  %v1439_v21 = vmin.f32 %v3266_v51, %v2943_v27 }
 0x17f   : > { %v2106_v38 = vpack.c.bf16 %v1680_v56, %v1679_v28  ;;  %v1678_v5 = vmax.f32 %v1646_v52, 0.0  ;;  %v1613_v20 = vsel %vm1590_vm1, %v1543_v44, %v1575_v63  ;;  %v1375_v19 = vmax.f32 %v3267_v13, %v2945_v62 }
 0x180   : > { %v1651_v45 = vadd.f32 %v2755_v11, %v1613_v20  ;;  %v1541_v32 = vmul.f32 %v2737_v4, %v1404_v26  ;;  %v1573_v1 = vmul.f32 %v2737_v4, %v1500_v50  ;;  %v1471_v15 = vmin.f32 %v3267_v13, %v2945_v62  ;;  %v3273_v26 = vld [vmem:[#allocation10_spill] sm:$0xff] }
 0x181   : > { %2146 = vst [vmem:[%s2792_s19 + $0x48] sm:$0xff] %v2106_v38   ;;  %v2101_v27 = vpack.c.bf16 %v1678_v5, %v1677_v40  ;;  %v1407_v28 = vmax.f32 %v1343_v33, %v1375_v19  ;;  %v1341_v8 = vmax.f32 %v3268_v39, %v2952_v55  ;;  %v1437_v60 = vmin.f32 %v3268_v39, %v2952_v55  ;;  %v3274_v33 = vld [vmem:[#allocation11_spill] sm:$0xff] }
 0x182   : > { %v1683_v10 = vmax.f32 %v1651_v45, 0.0  ;;  %v1611_v34 = vsel %vm1590_vm1, %v1541_v32, %v1573_v1  ;;  %v1503_v46 = vmin.f32 %v1439_v21, %v1471_v15  ;;  %v1373_v3 = vmax.f32 %v3269_v47, %v2954_v18  ;;  %v3275_v32 = vld [vmem:[#allocation12_spill] sm:$0xff] }
 0x183   : > { %2145 = vst [vmem:[%s2792_s19 + $0x40] sm:$0xff] %v2101_v27   ;;  %v1649_v62 = vadd.f32 %v2755_v11, %v1611_v34  ;;  %v1544_v23 = vmul.f32 %v2737_v4, %v1407_v28  ;;  %v1469_v40 = vmin.f32 %v3269_v47, %v2954_v18  ;;  %v1346_v12 = vmax.f32 %v3270_v22, %v2981_v29  ;;  %v3276_v28 = vld [vmem:[#allocation13_spill] sm:$0xff] }
 0x184   : > { %v1576_v55 = vmul.f32 %v2737_v4, %v1503_v46  ;;  %v1405_v9 = vmax.f32 %v1341_v8, %v1373_v3  ;;  %v1442_v30 = vmin.f32 %v3270_v22, %v2981_v29  ;;  %v1378_v49 = vmax.f32 %v3271_v41, %v2983_v54 }
 0x185   : > { %v1681_v36 = vmax.f32 %v1649_v62, 0.0  ;;  %v1501_v24 = vmin.f32 %v1437_v60, %v1469_v40  ;;  %v1474_v42 = vmin.f32 %v3271_v41, %v2983_v54  ;;  %v1344_v18 = vmax.f32 %v3272_v31, %v2990_v57 }
 0x186   : > { %v1614_v7 = vsel %vm1590_vm1, %v1544_v23, %v1576_v55  ;;  %v1542_v2 = vmul.f32 %v2737_v4, %v1405_v9  ;;  %v1410_v56 = vmax.f32 %v1346_v12, %v1378_v49  ;;  %v1440_v29 = vmin.f32 %v3272_v31, %v2990_v57 }
 0x187   : > { %v1652_v52 = vadd.f32 %v2755_v11, %v1614_v7  ;;  %v1574_v44 = vmul.f32 %v2737_v4, %v1501_v24  ;;  %v1506_v63 = vmin.f32 %v1442_v30, %v1474_v42  ;;  %v1376_v54 = vmax.f32 %v3273_v26, %v2992_v43 }
 0x188   : > { %v1547_v50 = vmul.f32 %v2737_v4, %v1410_v56  ;;  %v1472_v51 = vmin.f32 %v3273_v26, %v2992_v43  ;;  %v1347_v21 = vmax.f32 %v3274_v33, %v2997_v0  ;;  %v1443_v38 = vmin.f32 %v3274_v33, %v2997_v0  ;;  %v3281_v26 = vld [vmem:[#allocation18_spill] sm:$0xff] }
 0x189   : > { %v1684_v57 = vmax.f32 %v1652_v52, 0.0  ;;  %v1612_v5 = vsel %vm1590_vm1, %v1542_v2, %v1574_v44  ;;  %v1579_v20 = vmul.f32 %v2737_v4, %v1506_v63  ;;  %v1408_v13 = vmax.f32 %v1344_v18, %v1376_v54 }
 0x18a   : > { %v1650_v19 = vadd.f32 %v2755_v11, %v1612_v5  ;;  %v1504_v45 = vmin.f32 %v1440_v29, %v1472_v51  ;;  %v1379_v43 = vmax.f32 %v3275_v32, %v2999_v37  ;;  %v1475_v1 = vmin.f32 %v3275_v32, %v2999_v37  ;;  %v3283_v32 = vld [vmem:[#allocation20_spill] sm:$0xff] }
 0x18b   : > { %v2116_v15 = vpack.c.bf16 %v1684_v57, %v1683_v10  ;;  %v1617_v0 = vsel %vm1590_vm1, %v1547_v50, %v1579_v20  ;;  %v1545_v27 = vmul.f32 %v2737_v4, %v1408_v13  ;;  %v1345_v39 = vmax.f32 %v3276_v28, %v3008_v17  ;;  %v3277_v10 = vld [vmem:[#allocation14_spill] sm:$0xff]  ;;  %v3282_v20 = vld [vmem:[#allocation19_spill] sm:$0xff] }
 0x18c   : > { %v1682_v8 = vmax.f32 %v1650_v19, 0.0  ;;  %v1655_v60 = vadd.f32 %v2755_v11, %v1617_v0  ;;  %v1577_v34 = vmul.f32 %v2737_v4, %v1504_v45  ;;  %v1411_v46 = vmax.f32 %v1347_v21, %v1379_v43 }
 0x18d   : > { %2148 = vst [vmem:[%s2792_s19 + $0x58] sm:$0xff] %v2116_v15   ;;  %v1507_v47 = vmin.f32 %v1443_v38, %v1475_v1  ;;  %v1441_v37 = vmin.f32 %v3276_v28, %v3008_v17  ;;  %v1377_v3 = vmax.f32 %v3277_v10, %v3010_v61  ;;  %v1473_v62 = vmin.f32 %v3277_v10, %v3010_v61  ;;  %v3278_v17 = vld [vmem:[#allocation15_spill] sm:$0xff] }
 0x18e   : > { %v2111_v23 = vpack.c.bf16 %v1682_v8, %v1681_v36  ;;  %v1687_v40 = vmax.f32 %v1655_v60, 0.0  ;;  %v1615_v22 = vsel %vm1590_vm1, %v1545_v27, %v1577_v34  ;;  %v1548_v12 = vmul.f32 %v2737_v4, %v1411_v46  ;;  %v3279_v36 = vld [vmem:[#allocation16_spill] sm:$0xff]  ;;  %v3285_v46 = vld [vmem:[#allocation22_spill] sm:$0xff] }
 0x18f   : > { %v1653_v55 = vadd.f32 %v2755_v11, %v1615_v22  ;;  %v1580_v9 = vmul.f32 %v2737_v4, %v1507_v47  ;;  %v1409_v30 = vmax.f32 %v1345_v39, %v1377_v3  ;;  %v1505_v41 = vmin.f32 %v1441_v37, %v1473_v62 }
 0x190   : > { %2147 = vst [vmem:[%s2792_s19 + $0x50] sm:$0xff] %v2111_v23   ;;  %v1350_v49 = vmax.f32 %v3278_v17, %v3035_v59  ;;  %v1446_v61 = vmin.f32 %v3278_v17, %v3035_v59  ;;  %v1382_v24 = vmax.f32 %v3279_v36, %v3037_v14  ;;  %v1478_v42 = vmin.f32 %v3279_v36, %v3037_v14  ;;  %v3280_v59 = vld [vmem:[#allocation17_spill] sm:$0xff] }
 0x191   : > { %v1685_v31 = vmax.f32 %v1653_v55, 0.0  ;;  %v1618_v18 = vsel %vm1590_vm1, %v1548_v12, %v1580_v9  ;;  %v1546_v7 = vmul.f32 %v2737_v4, %v1409_v30  ;;  %v1578_v2 = vmul.f32 %v2737_v4, %v1505_v41 }
 0x192   : > { %v1656_v56 = vadd.f32 %v2755_v11, %v1618_v18  ;;  %v1414_v29 = vmax.f32 %v1350_v49, %v1382_v24  ;;  %v1510_v52 = vmin.f32 %v1446_v61, %v1478_v42  ;;  %v1348_v44 = vmax.f32 %v3280_v59, %v3043_v35 }
 0x193   : > { %v1616_v63 = vsel %vm1590_vm1, %v1546_v7, %v1578_v2  ;;  %v1444_v14 = vmin.f32 %v3280_v59, %v3043_v35  ;;  %v1380_v54 = vmax.f32 %v3281_v26, %v3045_v48  ;;  %v1476_v50 = vmin.f32 %v3281_v26, %v3045_v48 }
 0x194   : > { %v1688_v51 = vmax.f32 %v1656_v56, 0.0  ;;  %v1654_v33 = vadd.f32 %v2755_v11, %v1616_v63  ;;  %v1551_v21 = vmul.f32 %v2737_v4, %v1414_v29  ;;  %v1583_v38 = vmul.f32 %v2737_v4, %v1510_v52 }
 0x195   : > { %v1412_v57 = vmax.f32 %v1348_v44, %v1380_v54  ;;  %v1508_v5 = vmin.f32 %v1444_v14, %v1476_v50  ;;  %v1351_v13 = vmax.f32 %v3282_v20, %v3050_v25  ;;  %v1447_v35 = vmin.f32 %v3282_v20, %v3050_v25  ;;  %v3284_v25 = vld [vmem:[#allocation21_spill] sm:$0xff] }
 0x196   : > { %v2126_v19 = vpack.c.bf16 %v1688_v51, %v1687_v40  ;;  %v1686_v45 = vmax.f32 %v1654_v33, 0.0  ;;  %v1621_v48 = vsel %vm1590_vm1, %v1551_v21, %v1583_v38  ;;  %v1383_v43 = vmax.f32 %v3283_v32, %v3052_v53 }
 0x197   : > { %v1549_v1 = vmul.f32 %v2737_v4, %v1412_v57  ;;  %v1581_v15 = vmul.f32 %v2737_v4, %v1508_v5  ;;  %v1479_v0 = vmin.f32 %v3283_v32, %v3052_v53  ;;  %v1349_v39 = vmax.f32 %v3284_v25, %v3062_v16 }
 0x198   : > { %2150 = vst [vmem:[%s2792_s19 + $0x68] sm:$0xff] %v2126_v19   ;;  %v2121_v27 = vpack.c.bf16 %v1686_v45, %v1685_v31  ;;  %v1415_v28 = vmax.f32 %v1351_v13, %v1383_v43  ;;  %v1445_v8 = vmin.f32 %v3284_v25, %v3062_v16  ;;  %v1381_v47 = vmax.f32 %v3285_v46, %v3064_v6 }
 0x199   : > { %v1619_v60 = vsel %vm1590_vm1, %v1549_v1, %v1581_v15  ;;  %v1511_v34 = vmin.f32 %v1447_v35, %v1479_v0  ;;  %v1477_v53 = vmin.f32 %v3285_v46, %v3064_v6  ;;  %v1659_v62 = vadd.f32 %v2755_v11, %v1621_v48 }
 0x19a   : > { %2149 = vst [vmem:[%s2792_s19 + $0x60] sm:$0xff] %v2121_v27   ;;  %v1552_v37 = vmul.f32 %v2737_v4, %v1415_v28  ;;  %v1413_v3 = vmax.f32 %v1349_v39, %v1381_v47  ;;  %v1657_v55 = vadd.f32 %v2755_v11, %v1619_v60 }
 0x19b   : > { %v1584_v10 = vmul.f32 %v2737_v4, %v1511_v34  ;;  %v1509_v16 = vmin.f32 %v1445_v8, %v1477_v53  ;;  %v1691_v6 = vmax.f32 %v1659_v62, 0.0 }
 0x19c   : > { %v1550_v40 = vmul.f32 %v2737_v4, %v1413_v3  ;;  %v1689_v49 = vmax.f32 %v1657_v55, 0.0 }
 0x19d   : > { %v1622_v23 = vsel %vm1590_vm1, %v1552_v37, %v1584_v10  ;;  %v1582_v12 = vmul.f32 %v2737_v4, %v1509_v16 }
 0x19e   : > { %v1660_v22 = vadd.f32 %v2755_v11, %v1622_v23 }
 0x19f   : > { %v1620_v30 = vsel %vm1590_vm1, %v1550_v40, %v1582_v12 }
 0x1a0   : > { %v1692_v9 = vmax.f32 %v1660_v22, 0.0  ;;  %v1658_v41 = vadd.f32 %v2755_v11, %v1620_v30 }
 0x1a2   : > { %v2136_v17 = vpack.c.bf16 %v1692_v9, %v1691_v6  ;;  %v1690_v61 = vmax.f32 %v1658_v41, 0.0 }
 0x1a4   : > { %2152 = vst [vmem:[%s2792_s19 + $0x78] sm:$0xff] %v2136_v17   ;;  %v2131_v36 = vpack.c.bf16 %v1690_v61, %v1689_v49 }
 0x1a6   : > { %2151 = vst [vmem:[%s2792_s19 + $0x70] sm:$0xff] %v2131_v36  }
 0x1a7 PF: > { %s14_s15 = sadd.s32 1, %s2472_s15  }
 0x1a8   : > { %p11_p4 = scmp.ge.s32.totalorder %s14_s15, 4  }
 0x1aa   :  { %13 = sbr.rel (!%p11_p4) target bundleno = 1 (0x1), region = 66 }

// kernel: convnet_forward.4
= control target key start
LH: loop header
LB: loop body
LE: loop exit
PB: predicated region body
PF: predicated region fallthrough
CT: control target
= control target key end

     0   :  { %s3102_s15 = smov 0   ;;  %s3786_s0 = inlined_call_operand.vmem [shape: bf16[2,256,896], index: 0, kind: input, shape index: {}]   ;;  %s3787_s1 = inlined_call_operand.vmem [shape: bf16[896,128], index: 1, kind: input, shape index: {}]   ;;  %s3788_s2 = inlined_call_operand.vmem [shape: f32[1,128], index: 2, kind: input, shape index: {}]   ;;  %s3789_s3 = inlined_call_operand.vmem [shape: f32[1,128], index: 3, kind: input, shape index: {}]   ;;  %s3790_s4 = inlined_call_operand.vmem [shape: bf16[2,64,128], index: 4, kind: output, shape index: {}]  }
   0x1 LB: > { %s2199_s16 = sadd.s32 4294967295, %s3074_s15   ;;  %p2203_p0 = scmp.ge.s32.totalorder %s3074_s15, 1  ;;  %s3074_s15 = sphi %s3102_s15, %s14_s15  }
   0x2   : > { %p162_p1 = scmp.lt.s32.totalorder %s3074_s15, 3 }
   0x4   : > { %p163_p2 = pnand %p2203_p0, %p162_p1 }
   0x5   : > { %v2852_v0 = vld [vmem:[%s3787_s1 + $0x40] sm:$0xff] (!%p163_p2)   ;;  %v2854_v2 = vld [vmem:[%s3787_s1 + $0x48] sm:$0xff] (!%p163_p2)   ;;  %p188_p3 = scmp.lt.s32.totalorder (!%p163_p2), %s2199_s16, 1  ;;  %v2856_v4 = vld [vmem:[%s3787_s1 + $0x50] sm:$0xff] (!%p163_p2)  }
   0x6   : > { %166 = sbr.rel (%p163_p2) target bundleno = 491 (0x1eb), region = 36  ;;  %v2853_v1 = vld [vmem:[%s3787_s1] sm:$0xff] (!%p163_p2)   ;;  %2418 = vmatprep.subr.bf16.mxu0 (!%p163_p2), %v2852_v0  ;;  %2826 = vmatprep.subr.bf16.mxu1 (!%p163_p2), %v2852_v0  ;;  %v2855_v3 = vld [vmem:[%s3787_s1 + $0x8] sm:$0xff] (!%p163_p2)   ;;  %v2857_v5 = vld [vmem:[%s3787_s1 + $0x10] sm:$0xff] (!%p163_p2)  }
   0x7   : > { %2419 = vmatpush3.bf16.msra.mxu0 (!%p163_p2), %v2853_v1  ;;  %2834 = vmatpush3.bf16.msra.mxu1 (!%p163_p2), %v2853_v1  ;;  %v2858_v6 = vld [vmem:[%s3787_s1 + $0x58] sm:$0xff] (!%p163_p2)   ;;  %v2860_v8 = vld [vmem:[%s3787_s1 + $0x60] sm:$0xff] (!%p163_p2)   ;;  %v2862_v10 = vld [vmem:[%s3787_s1 + $0x68] sm:$0xff] (!%p163_p2)  }
   0x8   : > { %2420 = vmatprep.subr.bf16.mxu0 (!%p163_p2), %v2854_v2  ;;  %2827 = vmatprep.subr.bf16.mxu1 (!%p163_p2), %v2854_v2  ;;  %v2859_v7 = vld [vmem:[%s3787_s1 + $0x18] sm:$0xff] (!%p163_p2)   ;;  %v2861_v9 = vld [vmem:[%s3787_s1 + $0x20] sm:$0xff] (!%p163_p2)   ;;  %v2863_v13 = vld [vmem:[%s3787_s1 + $0x28] sm:$0xff] (!%p163_p2)  }
   0x9   : > { %v2864_v14 = vld [vmem:[%s3787_s1 + $0x70] sm:$0xff] (!%p163_p2)   ;;  %v2866_v16 = vld [vmem:[%s3787_s1 + $0x78] sm:$0xff] (!%p163_p2)   ;;  %v2874_v18 = vld [vmem:[%s3787_s1 + $0xc0] sm:$0xff] (!%p163_p2)  }
   0xa   : > { %v2865_v15 = vld [vmem:[%s3787_s1 + $0x30] sm:$0xff] (!%p163_p2)   ;;  %v2867_v17 = vld [vmem:[%s3787_s1 + $0x38] sm:$0xff] (!%p163_p2)   ;;  %v2875_v21 = vld [vmem:[%s3787_s1 + $0x140] sm:$0xff] (!%p163_p2)  }
   0xb   : > { %2421 = vmatpush3.bf16.msra.mxu0 (!%p163_p2), %v2855_v3  ;;  %2835 = vmatpush3.bf16.msra.mxu1 (!%p163_p2), %v2855_v3  ;;  %v2876_v22 = vld [vmem:[%s3787_s1 + $0x80] sm:$0xff] (!%p163_p2)   ;;  %v2878_v24 = vld [vmem:[%s3787_s1 + $0xc8] sm:$0xff] (!%p163_p2)   ;;  %v2886_v32 = vld [vmem:[%s3787_s1 + $0xd0] sm:$0xff] (!%p163_p2)  }
   0xc   : > { %2422 = vmatprep.subr.bf16.mxu0 (!%p163_p2), %v2856_v4  ;;  %2828 = vmatprep.subr.bf16.mxu1 (!%p163_p2), %v2856_v4  ;;  %v2877_v23 = vld [vmem:[%s3787_s1 + $0x100] sm:$0xff] (!%p163_p2)   ;;  %v2889_v27 = vld [vmem:[%s3787_s1 + $0x148] sm:$0xff] (!%p163_p2)   ;;  %v2887_v33 = vld [vmem:[%s3787_s1 + $0x90] sm:$0xff] (!%p163_p2)  }
   0xd   : > { %s3798_s16 = smov (!%p188_p3, %s2199_s16), 1  ;;  %v2879_v28 = vld [vmem:[%s3787_s1 + $0x88] sm:$0xff]   ;;  %v2888_v34 = vld [vmem:[%s3787_s1 + $0xd8] sm:$0xff]   ;;  %v2898_v38 = vld [vmem:[%s3787_s1 + $0xe0] sm:$0xff]  }
   0xe   : > { %s2842_s5 = smul.u32 896, %s3798_s16  ;;  %v2891_v29 = vld [vmem:[%s3787_s1 + $0x108] sm:$0xff]   ;;  %v2890_v37 = vld [vmem:[%s3787_s1 + $0x98] sm:$0xff]   ;;  %v2909_v41 = vld [vmem:[%s3787_s1 + $0x150] sm:$0xff]   ;;  %s2386_s20 = sshll.u32 %s3798_s16, 5 }
   0xf   : > { %2423 = vmatpush3.bf16.msra.mxu0 %v2857_v5  ;;  %2836 = vmatpush3.bf16.msra.mxu1 %v2857_v5  ;;  %v2899_v42 = vld [vmem:[%s3787_s1 + $0xa0] sm:$0xff]   ;;  %v2900_v43 = vld [vmem:[%s3787_s1 + $0xe8] sm:$0xff]   ;;  %v2911_v44 = vld [vmem:[%s3787_s1 + $0x110] sm:$0xff]   ;;  %s3727_s22 = scalar_lea.vmem %s3790_s4, %s2386_s20 }
  0x10   : > { %2424 = vmatprep.subr.bf16.mxu0 %v2858_v6  ;;  %2829 = vmatprep.subr.bf16.mxu1 %v2858_v6  ;;  %s3143_s12 = scalar_lea.vmem %s3786_s0, %s2842_s5  ;;  %v2901_v47 = vld [vmem:[%s3787_s1 + $0xa8] sm:$0xff]   ;;  %v2908_v48 = vld [vmem:[%s3787_s1 + $0xf0] sm:$0xff]   ;;  %v2920_v51 = vld [vmem:[%s3787_s1 + $0x158] sm:$0xff]  }
  0x11   : > { %v2870_v11 = vld [vmem:[%s3143_s12 + $0x4] ss:$28 sps:$4 sm:$0xff]   ;;  %v2880_v25 = vld [vmem:[%s3143_s12 + $0x3c] ss:$28 sps:$4 sm:$0xff]   ;;  %v2892_v35 = vld [vmem:[%s3143_s12 + $0x74] ss:$28 sps:$4 sm:$0xff]  }
  0x12   : > { %v2873_v12 = vld [vmem:[%s3143_s12 + $0x2a4] ss:$28 sps:$4 sm:$0xff]   ;;  %1383 = vmatprep.mubr.bf16.mxu0 %v2870_v11  ;;  %v2882_v26 = vld [vmem:[%s3143_s12 + $0x2dc] ss:$28 sps:$4 sm:$0xff]   ;;  %v2894_v36 = vld [vmem:[%s3143_s12 + $0x314] ss:$28 sps:$4 sm:$0xff]  }
  0x13   : > { %2425 = vmatpush3.bf16.msra.mxu0 %v2859_v7  ;;  %2837 = vmatpush3.bf16.msra.mxu1 %v2859_v7  ;;  %v2868_v19 = vld [vmem:[%s3143_s12] ss:$28 sps:$4 sm:$0xff]   ;;  %v2884_v30 = vld [vmem:[%s3143_s12 + $0x38] ss:$28 sps:$4 sm:$0xff]   ;;  %v2896_v39 = vld [vmem:[%s3143_s12 + $0x70] ss:$28 sps:$4 sm:$0xff]  }
  0x14   : > { %2426 = vmatprep.subr.bf16.mxu0 %v2860_v8  ;;  %2830 = vmatprep.subr.bf16.mxu1 %v2860_v8  ;;  %v2871_v20 = vld [vmem:[%s3143_s12 + $0x2a0] ss:$28 sps:$4 sm:$0xff]   ;;  %v2885_v31 = vld [vmem:[%s3143_s12 + $0x2d8] ss:$28 sps:$4 sm:$0xff]   ;;  %v2897_v40 = vld [vmem:[%s3143_s12 + $0x310] ss:$28 sps:$4 sm:$0xff]  }
  0x15   : > { %1479 = vmatprep.mubr.bf16.mxu1 %v2873_v12  ;;  %v2902_v45 = vld [vmem:[%s3143_s12 + $0xac] ss:$28 sps:$4 sm:$0xff]   ;;  %v2910_v52 = vld [vmem:[%s3787_s1 + $0xb0] sm:$0xff]   ;;  %v2922_v53 = vld [vmem:[%s3787_s1 + $0x118] sm:$0xff]  }
  0x16   : > { %v2904_v46 = vld [vmem:[%s3143_s12 + $0x34c] ss:$28 sps:$4 sm:$0xff]   ;;  %v2914_v54 = vld [vmem:[%s3143_s12 + $0xe4] ss:$28 sps:$4 sm:$0xff]   ;;  %v2912_v55 = vld [vmem:[%s3787_s1 + $0xf8] sm:$0xff]  }
  0x17   : > { %2427 = vmatpush3.bf16.msra.mxu0 %v2861_v9  ;;  %2838 = vmatpush3.bf16.msra.mxu1 %v2861_v9  ;;  %v2906_v49 = vld [vmem:[%s3143_s12 + $0xa8] ss:$28 sps:$4 sm:$0xff]   ;;  %v2913_v57 = vld [vmem:[%s3787_s1 + $0xb8] sm:$0xff]   ;;  %v2929_v6 = vld [vmem:[%s3143_s12 + $0x154] ss:$28 sps:$4 sm:$0xff]  }
  0x18   : > { %2428 = vmatprep.subr.bf16.mxu0 %v2862_v10  ;;  %2831 = vmatprep.subr.bf16.mxu1 %v2862_v10  ;;  %v2907_v50 = vld [vmem:[%s3143_s12 + $0x348] ss:$28 sps:$4 sm:$0xff]   ;;  %v2919_v62 = vld [vmem:[%s3143_s12 + $0xe0] ss:$28 sps:$4 sm:$0xff]   ;;  %v2927_v4 = vld [vmem:[%s3143_s12 + $0x118] ss:$28 sps:$4 sm:$0xff]  }
  0x19   : > { %v2918_v56 = vld [vmem:[%s3143_s12 + $0xc] ss:$28 sps:$4 sm:$0xff]   ;;  %v2921_v58 = vld [vmem:[%s3787_s1 + $0x180] sm:$0xff]   ;;  %v2923_v63 = vld [vmem:[%s3143_s12 + $0x11c] ss:$28 sps:$4 sm:$0xff]  }
  0x1a   : > { %v2916_v59 = vld [vmem:[%s3143_s12 + $0x8] ss:$28 sps:$4 sm:$0xff]   ;;  %v2928_v5 = vld [vmem:[%s3143_s12 + $0x40] ss:$28 sps:$4 sm:$0xff]   ;;  %v2952_v7 = vld [vmem:[%s3787_s1 + $0x190] sm:$0xff]  }
  0x1b   : > { %2429 = vmatpush3.bf16.msra.mxu0 %v2863_v13  ;;  %2839 = vmatpush3.bf16.msra.mxu1 %v2863_v13  ;;  %v2935_v60 = vld [vmem:[%s3787_s1 + $0x160] sm:$0xff]   ;;  %v2937_v1 = vld [vmem:[%s3787_s1 + $0x188] sm:$0xff]   ;;  %v2931_v8 = vld [vmem:[%s3143_s12 + $0x7c] ss:$28 sps:$4 sm:$0xff]  }
  0x1c   : > { %2430 = vmatprep.subr.bf16.mxu0 %v2864_v14  ;;  %2832 = vmatprep.subr.bf16.mxu1 %v2864_v14  ;;  %v2936_v61 = vld [vmem:[%s3787_s1 + $0x120] sm:$0xff]   ;;  %v2944_v2 = vld [vmem:[%s3787_s1 + $0x168] sm:$0xff]   ;;  %v2959_v9 = vld [vmem:[%s3787_s1 + $0x170] sm:$0xff]  }
  0x1d   : > { %v2925_v0 = vld [vmem:[%s3143_s12 + $0x44] ss:$28 sps:$4 sm:$0xff]   ;;  %v2945_v3 = vld [vmem:[%s3787_s1 + $0x128] sm:$0xff]   ;;  %v2960_v10 = vld [vmem:[%s3787_s1 + $0x130] sm:$0xff]  }
  0x1e   : > { %v2933_v11 = vld [vmem:[%s3143_s12 + $0x150] ss:$28 sps:$4 sm:$0xff]   ;;  %v2934_v12 = vld [vmem:[%s3143_s12 + $0x78] ss:$28 sps:$4 sm:$0xff]  }
  0x1f   : > { %2431 = vmatpush3.bf16.msra.mxu0 %v2865_v15  ;;  %2840 = vmatpush3.bf16.msra.mxu1 %v2865_v15  ;;  %v2938_v13 = vld [vmem:[%s3143_s12 + $0x18c] ss:$28 sps:$4 sm:$0xff]   ;;  %v2940_v14 = vld [vmem:[%s3143_s12 + $0xb4] ss:$28 sps:$4 sm:$0xff]   ;;  %v2967_v15 = vld [vmem:[%s3787_s1 + $0x178] sm:$0xff]  }
  0x20   : > { %2432 = vmatprep.subr.bf16.mxu0 %v2866_v16  ;;  %2833 = vmatprep.subr.bf16.mxu1 %v2866_v16  ;;  %v2968_v16 = vld [vmem:[%s3787_s1 + $0x198] sm:$0xff]  }
  0x23   : > { %2433 = vmatpush3.bf16.msra.mxu0 %v2867_v17  ;;  %2841 = vmatpush3.bf16.msra.mxu1 %v2867_v17  ;;  %v2969_v17 = vld [vmem:[%s3787_s1 + $0x138] sm:$0xff]  }
  0x24   : > { %2530 = vmatprep.subr.bf16.mxu1 %v2874_v18  ;;  %2642 = vmatprep.subr.bf16.mxu0 %v2875_v21  ;;  %v2942_v18 = vld [vmem:[%s3143_s12 + $0x188] ss:$28 sps:$4 sm:$0xff]  }
  0x25   : > { %v2948_v21 = vld [vmem:[%s3143_s12 + $0xec] ss:$28 sps:$4 sm:$0xff]  }
  0x26   : > { %1384 = vmatmul.mubr.bf16.vlgmr.msra.gmra.mrb[0].mxu0 %v2868_v19  ;;  %1480 = vmatmul.mubr.bf16.vlgmr.msra.gmra.mrb[0].mxu1 %v2871_v20  ;;  %v2943_v19 = vld [vmem:[%s3143_s12 + $0xb0] ss:$28 sps:$4 sm:$0xff]   ;;  %v2946_v20 = vld [vmem:[%s3143_s12 + $0x1c4] ss:$28 sps:$4 sm:$0xff]  }
  0x27   : > { %2531 = vmatpush3.bf16.msra.mxu1 %v2876_v22  ;;  %2643 = vmatpush3.bf16.msra.mxu0 %v2877_v23  ;;  %v2982_v22 = vld [vmem:[%s3787_s1 + $0x1a0] sm:$0xff]  }
  0x28   : > { %2532 = vmatprep.subr.bf16.mxu1 %v2878_v24  ;;  %1391 = vmatprep.mubr.bf16.mxu0 %v2880_v25  ;;  %v2950_v23 = vld [vmem:[%s3143_s12 + $0x1c0] ss:$28 sps:$4 sm:$0xff]   ;;  %v2951_v24 = vld [vmem:[%s3143_s12 + $0xe8] ss:$28 sps:$4 sm:$0xff]  }
  0x29   : > { %1487 = vmatprep.mubr.bf16.mxu1 %v2882_v26  ;;  %2644 = vmatprep.subr.bf16.mxu0 %v2889_v27  ;;  %v2995_v25 = vld [vmem:[%s3787_s1 + $0x1a8] sm:$0xff]   ;;  %v2953_v26 = vld [vmem:[%s3143_s12 + $0x1fc] ss:$28 sps:$4 sm:$0xff]   ;;  %v2955_v27 = vld [vmem:[%s3143_s12 + $0x124] ss:$28 sps:$4 sm:$0xff]  }
  0x2b   : > { %2533 = vmatpush3.bf16.msra.mxu1 %v2879_v28  ;;  %2645 = vmatpush3.bf16.msra.mxu0 %v2891_v29  ;;  %v3008_v28 = vld [vmem:[%s3787_s1 + $0x1b0] sm:$0xff]  }
  0x2c   : > { %2534 = vmatprep.subr.bf16.mxu1 %v2886_v32  ;;  %2646 = vmatprep.subr.bf16.mxu0 %v2909_v41  ;;  %v2957_v29 = vld [vmem:[%s3143_s12 + $0x1f8] ss:$28 sps:$4 sm:$0xff]  }
  0x2d   : > { %v2963_v32 = vld [vmem:[%s3143_s12 + $0x15c] ss:$28 sps:$4 sm:$0xff]   ;;  %v2980_v41 = vld [vmem:[%s3143_s12 + $0x14] ss:$28 sps:$4 sm:$0xff]  }
  0x2e   : > { %1392 = vmatmul.mubr.bf16.gmra.mrb[4].mxu0 %v2884_v30  ;;  %1488 = vmatmul.mubr.bf16.gmra.mrb[4].mxu1 %v2885_v31  ;;  %v2958_v30 = vld [vmem:[%s3143_s12 + $0x120] ss:$28 sps:$4 sm:$0xff]   ;;  %v2961_v31 = vld [vmem:[%s3143_s12 + $0x234] ss:$28 sps:$4 sm:$0xff]  }
  0x2f   : > { %2535 = vmatpush3.bf16.msra.mxu1 %v2887_v33  ;;  %1399 = vmatprep.mubr.bf16.mxu0 %v2892_v35  ;;  %v3021_v33 = vld [vmem:[%s3787_s1 + $0x1b8] sm:$0xff]  }
  0x30   : > { %2536 = vmatprep.subr.bf16.mxu1 %v2888_v34  ;;  %1495 = vmatprep.mubr.bf16.mxu1 %v2894_v36  ;;  %v2965_v34 = vld [vmem:[%s3143_s12 + $0x230] ss:$28 sps:$4 sm:$0xff]   ;;  %v2966_v35 = vld [vmem:[%s3143_s12 + $0x158] ss:$28 sps:$4 sm:$0xff]  }
  0x31   : > { %2647 = vmatpush3.bf16.msra.mxu0 %v2911_v44  ;;  %v2970_v36 = vld [vmem:[%s3143_s12 + $0x26c] ss:$28 sps:$4 sm:$0xff]   ;;  %v2983_v44 = vld [vmem:[%s3143_s12 + $0x204] ss:$28 sps:$4 sm:$0xff]  }
  0x32   : > { %2648 = vmatprep.subr.bf16.mxu0 %v2920_v51  ;;  %v2994_v51 = vld [vmem:[%s3143_s12 + $0x80] ss:$28 sps:$4 sm:$0xff]  }
  0x33   : > { %2537 = vmatpush3.bf16.msra.mxu1 %v2890_v37  ;;  %v2972_v37 = vld [vmem:[%s3143_s12 + $0x194] ss:$28 sps:$4 sm:$0xff]  }
  0x34   : > { %2538 = vmatprep.subr.bf16.mxu1 %v2898_v38  ;;  %v2974_v38 = vld [vmem:[%s3143_s12 + $0x268] ss:$28 sps:$4 sm:$0xff]  }
  0x35   : > { %2649 = vmatpush3.bf16.msra.mxu0 %v2922_v53  ;;  %v2998_v53 = vld [vmem:[%s3143_s12 + $0xbc] ss:$28 sps:$4 sm:$0xff]  }
  0x36   : > { %1400 = vmatmul.mubr.bf16.gmra.mrb[8].mxu0 %v2896_v39  ;;  %1496 = vmatmul.mubr.bf16.gmra.mrb[8].mxu1 %v2897_v40  ;;  %v2975_v39 = vld [vmem:[%s3143_s12 + $0x190] ss:$28 sps:$4 sm:$0xff]  }
  0x37   : > { %2539 = vmatpush3.bf16.msra.mxu1 %v2899_v42  ;;  %1407 = vmatprep.mubr.bf16.mxu0 %v2902_v45  ;;  %v2976_v40 = vld [vmem:[%s3143_s12 + $0x1cc] ss:$28 sps:$4 sm:$0xff]  }
  0x38   : > { %2540 = vmatprep.subr.bf16.mxu1 %v2900_v43  ;;  %1503 = vmatprep.mubr.bf16.mxu1 %v2904_v46  ;;  %v2978_v42 = vld [vmem:[%s3143_s12 + $0x10] ss:$28 sps:$4 sm:$0xff]   ;;  %v2981_v43 = vld [vmem:[%s3143_s12 + $0x1c8] ss:$28 sps:$4 sm:$0xff]   ;;  %v2987_v46 = vld [vmem:[%s3143_s12 + $0x200] ss:$28 sps:$4 sm:$0xff]  }
  0x39   : > { %2650 = vmatprep.subr.bf16.mxu0 %v2935_v60  ;;  %v2985_v45 = vld [vmem:[%s3143_s12 + $0x4c] ss:$28 sps:$4 sm:$0xff]   ;;  %v3009_v60 = vld [vmem:[%s3143_s12 + $0x2e4] ss:$28 sps:$4 sm:$0xff]  }
  0x3a   : > { %2651 = vmatpush3.bf16.msra.mxu0 %v2936_v61  ;;  %v3011_v61 = vld [vmem:[%s3143_s12 + $0x12c] ss:$28 sps:$4 sm:$0xff]  }
  0x3b   : > { %2541 = vmatpush3.bf16.msra.mxu1 %v2901_v47  ;;  %2652 = vmatprep.subr.bf16.mxu0 %v2944_v2  ;;  %v2988_v47 = vld [vmem:[%s3143_s12 + $0x48] ss:$28 sps:$4 sm:$0xff]   ;;  %v3019_v2 = vld [vmem:[%s3143_s12 + $0x318] ss:$28 sps:$4 sm:$0xff]  }
  0x3c   : > { %2542 = vmatprep.subr.bf16.mxu1 %v2908_v48  ;;  %v2989_v48 = vld [vmem:[%s3143_s12 + $0x23c] ss:$28 sps:$4 sm:$0xff]  }
  0x3e   : > { %1408 = vmatmul.mubr.bf16.gmra.mrb[12].mxu0 %v2906_v49  ;;  %1504 = vmatmul.mubr.bf16.gmra.mrb[12].mxu1 %v2907_v50  ;;  %v2991_v49 = vld [vmem:[%s3143_s12 + $0x84] ss:$28 sps:$4 sm:$0xff]   ;;  %v2993_v50 = vld [vmem:[%s3143_s12 + $0x238] ss:$28 sps:$4 sm:$0xff]  }
  0x3f   : > { %2543 = vmatpush3.bf16.msra.mxu1 %v2910_v52  ;;  %1415 = vmatprep.mubr.bf16.mxu0 %v2914_v54  ;;  %v2996_v52 = vld [vmem:[%s3143_s12 + $0x274] ss:$28 sps:$4 sm:$0xff]  }
  0x40   : > { %2544 = vmatprep.subr.bf16.mxu1 %v2912_v55  ;;  %1544 = vmatprep.mubr.bf16.mxu1 %v2918_v56  ;;  %v3000_v54 = vld [vmem:[%s3143_s12 + $0x270] ss:$28 sps:$4 sm:$0xff]   ;;  %v3001_v55 = vld [vmem:[%s3143_s12 + $0xb8] ss:$28 sps:$4 sm:$0xff]  }
  0x41   : > { %2653 = vmatpush3.bf16.msra.mxu0 %v2945_v3  ;;  %v3002_v56 = vld [vmem:[%s3143_s12 + $0x2ac] ss:$28 sps:$4 sm:$0xff]   ;;  %v3020_v3 = vld [vmem:[%s3143_s12 + $0x160] ss:$28 sps:$4 sm:$0xff]  }
  0x42   : > { %2654 = vmatprep.subr.bf16.mxu0 %v2959_v9  ;;  %v3030_v9 = vld [vmem:[%s3143_s12 + $0x18] ss:$28 sps:$4 sm:$0xff]  }
  0x43   : > { %2545 = vmatpush3.bf16.msra.mxu1 %v2913_v57  ;;  %v3004_v57 = vld [vmem:[%s3143_s12 + $0xf4] ss:$28 sps:$4 sm:$0xff]  }
  0x44   : > { %2778 = vmatprep.subr.bf16.mxu1 %v2921_v58 }
  0x45   : > { %2655 = vmatpush3.bf16.msra.mxu0 %v2960_v10  ;;  %v3031_v10 = vld [vmem:[%s3143_s12 + $0x1d0] ss:$28 sps:$4 sm:$0xff]  }
  0x46   : > { %1416 = vmatmul.mubr.bf16.gmra.mrb[16].mxu0 %v2919_v62  ;;  %1545 = vmatmul.mubr.bf16.vlgmr.msra.gmra.mrb[16].mxu1 %v2916_v59  ;;  %v3007_v59 = vld [vmem:[%s3143_s12 + $0xf0] ss:$28 sps:$4 sm:$0xff]   ;;  %v3013_v62 = vld [vmem:[%s3143_s12 + $0x2e0] ss:$28 sps:$4 sm:$0xff]  }
  0x47   : > { %2779 = vmatpush3.bf16.msra.mxu1 %v2921_v58  ;;  %1423 = vmatprep.mubr.bf16.mxu0 %v2923_v63  ;;  %v3006_v58 = vld [vmem:[%s3143_s12 + $0x2a8] ss:$28 sps:$4 sm:$0xff]  }
  0x48   : > { %1552 = vmatprep.mubr.bf16.mxu1 %v2925_v0  ;;  %2780 = vmatprep.subr.bf16.mxu1 %v2937_v1  ;;  %v3014_v63 = vld [vmem:[%s3143_s12 + $0x128] ss:$28 sps:$4 sm:$0xff]   ;;  %v3015_v0 = vld [vmem:[%s3143_s12 + $0x31c] ss:$28 sps:$4 sm:$0xff]  }
  0x49   : > { %2656 = vmatprep.subr.bf16.mxu0 %v2967_v15  ;;  %v3037_v15 = vld [vmem:[%s3143_s12 + $0xc0] ss:$28 sps:$4 sm:$0xff]  }
  0x4a   : > { %2657 = vmatpush3.bf16.msra.mxu0 %v2969_v17  ;;  %v3040_v17 = vld [vmem:[%s3143_s12 + $0xf8] ss:$28 sps:$4 sm:$0xff]  }
  0x4b   : > { %2781 = vmatpush3.bf16.msra.mxu1 %v2937_v1  ;;  %v3017_v1 = vld [vmem:[%s3143_s12 + $0x164] ss:$28 sps:$4 sm:$0xff]  }
  0x4c   : > { %2782 = vmatprep.subr.bf16.mxu1 %v2952_v7 }
  0x4e   : > { %1424 = vmatmul.mubr.bf16.gmra.mrb[20].mxu0 %v2927_v4  ;;  %1553 = vmatmul.mubr.bf16.gmra.mrb[20].mxu1 %v2928_v5  ;;  %v3022_v4 = vld [vmem:[%s3143_s12 + $0x354] ss:$28 sps:$4 sm:$0xff]   ;;  %v3024_v5 = vld [vmem:[%s3143_s12 + $0x19c] ss:$28 sps:$4 sm:$0xff]  }
  0x4f   : > { %1431 = vmatprep.mubr.bf16.mxu0 %v2929_v6  ;;  %1560 = vmatprep.mubr.bf16.mxu1 %v2931_v8  ;;  %v3026_v6 = vld [vmem:[%s3143_s12 + $0x350] ss:$28 sps:$4 sm:$0xff]  }
  0x50   : > { %2783 = vmatpush3.bf16.msra.mxu1 %v2952_v7  ;;  %v3027_v7 = vld [vmem:[%s3143_s12 + $0x198] ss:$28 sps:$4 sm:$0xff]  }
  0x51   : > { %2784 = vmatprep.subr.bf16.mxu1 %v2968_v16  ;;  %v3028_v8 = vld [vmem:[%s3143_s12 + $0x1d4] ss:$28 sps:$4 sm:$0xff]  }
  0x54   : > { %2785 = vmatpush3.bf16.msra.mxu1 %v2968_v16  ;;  %v3038_v16 = vld [vmem:[%s3143_s12 + $0x244] ss:$28 sps:$4 sm:$0xff]  }
  0x55   : > { %2786 = vmatprep.subr.bf16.mxu1 %v2982_v22 }
  0x56   : > { %1432 = vmatmul.mubr.bf16.gmra.mrb[24].mxu0 %v2933_v11  ;;  %1561 = vmatmul.mubr.bf16.gmra.mrb[24].mxu1 %v2934_v12  ;;  %v3032_v11 = vld [vmem:[%s3143_s12 + $0x50] ss:$28 sps:$4 sm:$0xff]  }
  0x57   : > { %1439 = vmatprep.mubr.bf16.mxu0 %v2938_v13  ;;  %1568 = vmatprep.mubr.bf16.mxu1 %v2940_v14  ;;  %v3033_v12 = vld [vmem:[%s3143_s12 + $0x20c] ss:$28 sps:$4 sm:$0xff]  }
  0x58   : > { %2787 = vmatpush3.bf16.msra.mxu1 %v2982_v22  ;;  %v3035_v13 = vld [vmem:[%s3143_s12 + $0x88] ss:$28 sps:$4 sm:$0xff]   ;;  %v3046_v22 = vld [vmem:[%s3143_s12 + $0x278] ss:$28 sps:$4 sm:$0xff]  }
  0x59   : > { %2788 = vmatprep.subr.bf16.mxu1 %v2995_v25  ;;  %v3036_v14 = vld [vmem:[%s3143_s12 + $0x208] ss:$28 sps:$4 sm:$0xff]  }
  0x5c   : > { %2789 = vmatpush3.bf16.msra.mxu1 %v2995_v25  ;;  %v3050_v25 = vld [vmem:[%s3143_s12 + $0x1d8] ss:$28 sps:$4 sm:$0xff]  }
  0x5d   : > { %2790 = vmatprep.subr.bf16.mxu1 %v3008_v28 }
  0x5e   : > { %1440 = vmatmul.mubr.bf16.gmra.mrb[28].mxu0 %v2942_v18  ;;  %1569 = vmatmul.mubr.bf16.gmra.mrb[28].mxu1 %v2943_v19  ;;  %v3041_v18 = vld [vmem:[%s3143_s12 + $0x240] ss:$28 sps:$4 sm:$0xff]   ;;  %v3042_v19 = vld [vmem:[%s3143_s12 + $0x130] ss:$28 sps:$4 sm:$0xff]  }
  0x5f   : > { %1447 = vmatprep.mubr.bf16.mxu0 %v2946_v20  ;;  %1576 = vmatprep.mubr.bf16.mxu1 %v2948_v21  ;;  %v3043_v20 = vld [vmem:[%s3143_s12 + $0x27c] ss:$28 sps:$4 sm:$0xff]   ;;  %v3045_v21 = vld [vmem:[%s3143_s12 + $0x168] ss:$28 sps:$4 sm:$0xff]  }
  0x60   : > { %2791 = vmatpush3.bf16.msra.mxu1 %v3008_v28  ;;  %v3053_v28 = vld [vmem:[%s3143_s12 + $0x2ec] ss:$28 sps:$4 sm:$0xff]  }
  0x61   : > { %2792 = vmatprep.subr.bf16.mxu1 %v3021_v33 }
  0x64   : > { %2793 = vmatpush3.bf16.msra.mxu1 %v3021_v33  ;;  %v3060_v33 = vld [vmem:[%s3143_s12 + $0x2b8] ss:$28 sps:$4 sm:$0xff]  }
  0x66   : > { %1448 = vmatmul.mubr.bf16.gmra.mrb[32].mxu0 %v2950_v23  ;;  %1577 = vmatmul.mubr.bf16.gmra.mrb[32].mxu1 %v2951_v24  ;;  %v3047_v23 = vld [vmem:[%s3143_s12 + $0x1a0] ss:$28 sps:$4 sm:$0xff]   ;;  %v3048_v24 = vld [vmem:[%s3143_s12 + $0x2b4] ss:$28 sps:$4 sm:$0xff]  }
  0x67   : > { %1455 = vmatprep.mubr.bf16.mxu0 %v2953_v26  ;;  %1584 = vmatprep.mubr.bf16.mxu1 %v2955_v27  ;;  %v3051_v26 = vld [vmem:[%s3143_s12 + $0x2b0] ss:$28 sps:$4 sm:$0xff]  }
  0x68   : > { %v3052_v27 = vld [vmem:[%s3143_s12 + $0x210] ss:$28 sps:$4 sm:$0xff]  }
  0x6e   : > { %1456 = vmatmul.mubr.bf16.gmra.mrb[36].mxu0 %v2957_v29  ;;  %1585 = vmatmul.mubr.bf16.gmra.mrb[36].mxu1 %v2958_v30  ;;  %v3055_v29 = vld [vmem:[%s3143_s12 + $0x248] ss:$28 sps:$4 sm:$0xff]  }
  0x6f   : > { %1463 = vmatprep.mubr.bf16.mxu0 %v2961_v31  ;;  %1592 = vmatprep.mubr.bf16.mxu1 %v2963_v32  ;;  %v3056_v30 = vld [vmem:[%s3143_s12 + $0x2e8] ss:$28 sps:$4 sm:$0xff]   ;;  %v3057_v31 = vld [vmem:[%s3143_s12 + $0x280] ss:$28 sps:$4 sm:$0xff]  }
  0x70   : > { %v3058_v32 = vld [vmem:[%s3143_s12 + $0x324] ss:$28 sps:$4 sm:$0xff]  }
  0x76   : > { %1464 = vmatmul.mubr.bf16.gmra.mrb[40].mxu0 %v2965_v34  ;;  %1593 = vmatmul.mubr.bf16.gmra.mrb[40].mxu1 %v2966_v35  ;;  %v3061_v34 = vld [vmem:[%s3143_s12 + $0x320] ss:$28 sps:$4 sm:$0xff]   ;;  %v3062_v35 = vld [vmem:[%s3143_s12 + $0x2f0] ss:$28 sps:$4 sm:$0xff]  }
  0x77   : > { %1471 = vmatprep.mubr.bf16.mxu0 %v2970_v36  ;;  %1600 = vmatprep.mubr.bf16.mxu1 %v2972_v37  ;;  %v3063_v36 = vld [vmem:[%s3143_s12 + $0x35c] ss:$28 sps:$4 sm:$0xff]   ;;  %v3065_v37 = vld [vmem:[%s3143_s12 + $0x328] ss:$28 sps:$4 sm:$0xff]  }
  0x7e   : > { %1472 = vmatmul.mubr.bf16.gmra.mrb[44].mxu0 %v2974_v38  ;;  %1601 = vmatmul.mubr.bf16.gmra.mrb[44].mxu1 %v2975_v39 }
  0x7f   : > { %1608 = vmatprep.mubr.bf16.mxu1 %v2976_v40  ;;  %1705 = vmatprep.mubr.bf16.mxu0 %v2980_v41 }
  0x86   : > { %1609 = vmatmul.mubr.bf16.gmra.mrb[48].mxu1 %v2981_v43  ;;  %1706 = vmatmul.mubr.bf16.vlgmr.msra.gmra.mrb[48].mxu0 %v2978_v42  ;;  %v3066_v42 = vld [vmem:[%s3143_s12 + $0x358] ss:$28 sps:$4 sm:$0xff]   ;;  %v3067_v43 = vld [vmem:[%s3143_s12 + $0x360] ss:$28 sps:$4 sm:$0xff]  }
  0x87   : > { %1616 = vmatprep.mubr.bf16.mxu1 %v2983_v44  ;;  %1713 = vmatprep.mubr.bf16.mxu0 %v2985_v45 }
  0x8e   : > { %1617 = vmatmul.mubr.bf16.gmra.mrb[52].mxu1 %v2987_v46  ;;  %1714 = vmatmul.mubr.bf16.gmra.mrb[52].mxu0 %v2988_v47 }
  0x8f   : > { %1624 = vmatprep.mubr.bf16.mxu1 %v2989_v48  ;;  %1721 = vmatprep.mubr.bf16.mxu0 %v2991_v49 }
  0x96   : > { %1625 = vmatmul.mubr.bf16.gmra.mrb[56].mxu1 %v2993_v50  ;;  %1722 = vmatmul.mubr.bf16.gmra.mrb[56].mxu0 %v2994_v51 }
  0x97   : > { %1632 = vmatprep.mubr.bf16.mxu1 %v2996_v52  ;;  %1729 = vmatprep.mubr.bf16.mxu0 %v2998_v53 }
  0x9e   : > { %1633 = vmatmul.mubr.bf16.gmra.mrb[60].mxu1 %v3000_v54  ;;  %1730 = vmatmul.mubr.bf16.gmra.mrb[60].mxu0 %v3001_v55 }
  0x9f   : > { %1640 = vmatprep.mubr.bf16.mxu1 %v3002_v56  ;;  %1737 = vmatprep.mubr.bf16.mxu0 %v3004_v57 }
  0xa6   : > { %1641 = vmatmul.mubr.bf16.gmra.mrb[64].mxu1 %v3006_v58  ;;  %1738 = vmatmul.mubr.bf16.gmra.mrb[64].mxu0 %v3007_v59 }
  0xa7   : > { %1648 = vmatprep.mubr.bf16.mxu1 %v3009_v60  ;;  %1745 = vmatprep.mubr.bf16.mxu0 %v3011_v61 }
  0xae   : > { %1649 = vmatmul.mubr.bf16.gmra.mrb[68].mxu1 %v3013_v62  ;;  %1746 = vmatmul.mubr.bf16.gmra.mrb[68].mxu0 %v3014_v63 }
  0xaf   : > { %1656 = vmatprep.mubr.bf16.mxu1 %v3015_v0  ;;  %1753 = vmatprep.mubr.bf16.mxu0 %v3017_v1 }
  0xb6   : > { %1657 = vmatmul.mubr.bf16.gmra.mrb[72].mxu1 %v3019_v2  ;;  %1754 = vmatmul.mubr.bf16.gmra.mrb[72].mxu0 %v3020_v3 }
  0xb7   : > { %1664 = vmatprep.mubr.bf16.mxu1 %v3022_v4  ;;  %1761 = vmatprep.mubr.bf16.mxu0 %v3024_v5 }
  0xbe   : > { %1665 = vmatmul.mubr.bf16.gmra.mrb[76].mxu1 %v3026_v6  ;;  %1762 = vmatmul.mubr.bf16.gmra.mrb[76].mxu0 %v3027_v7 }
  0xbf   : > { %1769 = vmatprep.mubr.bf16.mxu0 %v3028_v8  ;;  %2794 = vmatprep.mubr.bf16.mxu1 %v3030_v9 }
  0xc6   : > { %1770 = vmatmul.mubr.bf16.gmra.mrb[80].mxu0 %v3031_v10  ;;  %2795 = vmatmul.mubr.bf16.vlgmr.msra.gmra.mrb[80].mxu1 %v3032_v11 }
  0xc7   : > { %1777 = vmatprep.mubr.bf16.mxu0 %v3033_v12  ;;  %2798 = vmatprep.mubr.bf16.mxu1 %v3035_v13 }
  0xce   : > { %1778 = vmatmul.mubr.bf16.gmra.mrb[84].mxu0 %v3036_v14  ;;  %2799 = vmatmul.mubr.bf16.gmra.mrb[84].mxu1 %v3037_v15 }
  0xcf   : > { %1785 = vmatprep.mubr.bf16.mxu0 %v3038_v16  ;;  %2802 = vmatprep.mubr.bf16.mxu1 %v3040_v17 }
  0xd6   : > { %1786 = vmatmul.mubr.bf16.gmra.mrb[88].mxu0 %v3041_v18  ;;  %2803 = vmatmul.mubr.bf16.gmra.mrb[88].mxu1 %v3042_v19 }
  0xd7   : > { %1793 = vmatprep.mubr.bf16.mxu0 %v3043_v20  ;;  %2806 = vmatprep.mubr.bf16.mxu1 %v3045_v21 }
  0xde   : > { %1794 = vmatmul.mubr.bf16.gmra.mrb[92].mxu0 %v3046_v22  ;;  %2807 = vmatmul.mubr.bf16.gmra.mrb[92].mxu1 %v3047_v23 }
  0xdf   : > { %1801 = vmatprep.mubr.bf16.mxu0 %v3048_v24  ;;  %2810 = vmatprep.mubr.bf16.mxu1 %v3050_v25 }
  0xe6   : > { %1802 = vmatmul.mubr.bf16.gmra.mrb[96].mxu0 %v3051_v26  ;;  %2811 = vmatmul.mubr.bf16.gmra.mrb[96].mxu1 %v3052_v27 }
  0xe7   : > { %1809 = vmatprep.mubr.bf16.mxu0 %v3053_v28  ;;  %2814 = vmatprep.mubr.bf16.mxu1 %v3055_v29 }
  0xee   : > { %1810 = vmatmul.mubr.bf16.gmra.mrb[100].mxu0 %v3056_v30  ;;  %2815 = vmatmul.mubr.bf16.gmra.mrb[100].mxu1 %v3057_v31 }
  0xef   : > { %1817 = vmatprep.mubr.bf16.mxu0 %v3058_v32  ;;  %2818 = vmatprep.mubr.bf16.mxu1 %v3060_v33 }
  0xf6   : > { %1818 = vmatmul.mubr.bf16.gmra.mrb[104].mxu0 %v3061_v34  ;;  %2819 = vmatmul.mubr.bf16.gmra.mrb[104].mxu1 %v3062_v35 }
  0xf7   : > { %1825 = vmatprep.mubr.bf16.mxu0 %v3063_v36  ;;  %2822 = vmatprep.mubr.bf16.mxu1 %v3065_v37 }
  0xf9   : > { %v2434_v38 = vpop.f32.mrb[0].mxu0  ;;  %v2506_v39 = vpop.f32.mrb[0].mxu1 }
  0xfa   : > { %v2435_v40 = vpop.f32.mrb[1].mxu0  ;;  %v2507_v41 = vpop.f32.mrb[1].mxu1 }
  0xfb   : > { %v2436_v44 = vadd.f32 %v2435_v40, %v2434_v38  ;;  %v2437_v45 = vpop.f32.mrb[2].mxu0  ;;  %v3398_v46 = vadd.f32 %v2507_v41, %v2506_v39  ;;  %v2509_v47 = vpop.f32.mrb[2].mxu1 }
  0xfc   : > { %v2438_v48 = vpop.f32.mrb[3].mxu0  ;;  %v2510_v49 = vpop.f32.mrb[3].mxu1 }
  0xfd   : > { %v2439_v50 = vadd.f32 %v2438_v48, %v2437_v45  ;;  %v3400_v51 = vadd.f32 %v2510_v49, %v2509_v47 }
  0xfe   : > { %1826 = vmatmul.mubr.bf16.gmra.mrb[108].mxu0 %v3066_v42  ;;  %2823 = vmatmul.mubr.bf16.gmra.mrb[108].mxu1 %v3067_v43 }
 0x101   : > { %v2440_v52 = vpop.f32.mrb[4].mxu0  ;;  %v2512_v53 = vpop.f32.mrb[4].mxu1 }
 0x102   : > { %v2441_v54 = vpop.f32.mrb[5].mxu0  ;;  %v2513_v55 = vpop.f32.mrb[5].mxu1 }
 0x103   : > { %v2442_v56 = vadd.f32 %v2441_v54, %v2440_v52  ;;  %v2443_v57 = vpop.f32.mrb[6].mxu0  ;;  %v3402_v58 = vadd.f32 %v2513_v55, %v2512_v53  ;;  %v2515_v59 = vpop.f32.mrb[6].mxu1 }
 0x104   : > { %v2444_v60 = vpop.f32.mrb[7].mxu0  ;;  %v2516_v61 = vpop.f32.mrb[7].mxu1 }
 0x105   : > { %v2445_v62 = vadd.f32 %v2444_v60, %v2443_v57  ;;  %v3404_v63 = vadd.f32 %v2516_v61, %v2515_v59 }
 0x109   : > { %v2446_v0 = vpop.f32.mrb[8].mxu0  ;;  %v2518_v1 = vpop.f32.mrb[8].mxu1 }
 0x10a   : > { %v2447_v2 = vpop.f32.mrb[9].mxu0  ;;  %v2519_v3 = vpop.f32.mrb[9].mxu1 }
 0x10b   : > { %v2448_v4 = vadd.f32 %v2447_v2, %v2446_v0  ;;  %v2449_v5 = vpop.f32.mrb[10].mxu0  ;;  %v3406_v6 = vadd.f32 %v2519_v3, %v2518_v1  ;;  %v2521_v7 = vpop.f32.mrb[10].mxu1 }
 0x10c   : > { %v2450_v8 = vpop.f32.mrb[11].mxu0  ;;  %v2522_v9 = vpop.f32.mrb[11].mxu1 }
 0x10d   : > { %v2451_v10 = vadd.f32 %v2450_v8, %v2449_v5  ;;  %v3408_v11 = vadd.f32 %v2522_v9, %v2521_v7 }
 0x111   : > { %v2452_v12 = vpop.f32.mrb[12].mxu0  ;;  %v2524_v13 = vpop.f32.mrb[12].mxu1 }
 0x112   : > { %v2453_v14 = vpop.f32.mrb[13].mxu0  ;;  %v2525_v15 = vpop.f32.mrb[13].mxu1 }
 0x113   : > { %v2454_v16 = vadd.f32 %v2453_v14, %v2452_v12  ;;  %v2455_v17 = vpop.f32.mrb[14].mxu0  ;;  %v3410_v18 = vadd.f32 %v2525_v15, %v2524_v13  ;;  %v2527_v19 = vpop.f32.mrb[14].mxu1 }
 0x114   : > { %v2456_v20 = vpop.f32.mrb[15].mxu0  ;;  %v2528_v21 = vpop.f32.mrb[15].mxu1 }
 0x115   : > { %v2457_v22 = vadd.f32 %v2456_v20, %v2455_v17  ;;  %v3412_v23 = vadd.f32 %v2528_v21, %v2527_v19 }
 0x119   : > { %v2458_v24 = vpop.f32.mrb[16].mxu0  ;;  %v2546_v25 = vpop.f32.mrb[16].mxu1 }
 0x11a   : > { %v2459_v26 = vpop.f32.mrb[17].mxu0  ;;  %v2547_v27 = vpop.f32.mrb[17].mxu1 }
 0x11b   : > { %v2460_v28 = vadd.f32 %v2459_v26, %v2458_v24  ;;  %v2548_v29 = vadd.f32 %v2547_v27, %v2546_v25  ;;  %v2461_v30 = vpop.f32.mrb[18].mxu0  ;;  %v2549_v31 = vpop.f32.mrb[18].mxu1 }
 0x11c   : > { %v2462_v32 = vpop.f32.mrb[19].mxu0  ;;  %v2550_v33 = vpop.f32.mrb[19].mxu1 }
 0x11d   : > { %v3414_v34 = vadd.f32 %v2548_v29, %v2436_v44  ;;  %v2463_v35 = vadd.f32 %v2462_v32, %v2461_v30  ;;  %v2551_v36 = vadd.f32 %v2550_v33, %v2549_v31 }
 0x11f   : > { %v3416_v37 = vadd.f32 %v2551_v36, %v2439_v50 }
 0x121   : > { %v2464_v38 = vpop.f32.mrb[20].mxu0  ;;  %v2552_v39 = vpop.f32.mrb[20].mxu1 }
 0x122   : > { %v2465_v40 = vpop.f32.mrb[21].mxu0  ;;  %v2553_v41 = vpop.f32.mrb[21].mxu1 }
 0x123   : > { %v2466_v42 = vadd.f32 %v2465_v40, %v2464_v38  ;;  %v2554_v43 = vadd.f32 %v2553_v41, %v2552_v39  ;;  %v2467_v45 = vpop.f32.mrb[22].mxu0  ;;  %v2555_v47 = vpop.f32.mrb[22].mxu1 }
 0x124   : > { %v2468_v48 = vpop.f32.mrb[23].mxu0  ;;  %v2556_v49 = vpop.f32.mrb[23].mxu1 }
 0x125   : > { %v3418_v52 = vadd.f32 %v2554_v43, %v2442_v56  ;;  %v2469_v53 = vadd.f32 %v2468_v48, %v2467_v45  ;;  %v2557_v54 = vadd.f32 %v2556_v49, %v2555_v47 }
 0x127   : > { %v3420_v44 = vadd.f32 %v2557_v54, %v2445_v62 }
 0x129   : > { %v2470_v55 = vpop.f32.mrb[24].mxu0  ;;  %v2558_v57 = vpop.f32.mrb[24].mxu1 }
 0x12a   : > { %v2471_v50 = vpop.f32.mrb[25].mxu0  ;;  %v2559_v59 = vpop.f32.mrb[25].mxu1 }
 0x12b   : > { %v2472_v60 = vadd.f32 %v2471_v50, %v2470_v55  ;;  %v2560_v61 = vadd.f32 %v2559_v59, %v2558_v57  ;;  %v2473_v0 = vpop.f32.mrb[26].mxu0  ;;  %v2561_v1 = vpop.f32.mrb[26].mxu1 }
 0x12c   : > { %v2474_v2 = vpop.f32.mrb[27].mxu0  ;;  %v2562_v3 = vpop.f32.mrb[27].mxu1 }
 0x12d   : > { %v3422_v5 = vadd.f32 %v2560_v61, %v2448_v4  ;;  %v2475_v7 = vadd.f32 %v2474_v2, %v2473_v0  ;;  %v2563_v8 = vadd.f32 %v2562_v3, %v2561_v1 }
 0x12f   : > { %v3424_v56 = vadd.f32 %v2563_v8, %v2451_v10 }
 0x131   : > { %v2476_v9 = vpop.f32.mrb[28].mxu0  ;;  %v2564_v12 = vpop.f32.mrb[28].mxu1 }
 0x132   : > { %v2477_v62 = vpop.f32.mrb[29].mxu0  ;;  %v2565_v13 = vpop.f32.mrb[29].mxu1 }
 0x133   : > { %v2478_v14 = vadd.f32 %v2477_v62, %v2476_v9  ;;  %v2566_v15 = vadd.f32 %v2565_v13, %v2564_v12  ;;  %v2479_v17 = vpop.f32.mrb[30].mxu0  ;;  %v2567_v19 = vpop.f32.mrb[30].mxu1 }
 0x134   : > { %v2480_v20 = vpop.f32.mrb[31].mxu0  ;;  %v2568_v21 = vpop.f32.mrb[31].mxu1 }
 0x135   : > { %v3426_v24 = vadd.f32 %v2566_v15, %v2454_v16  ;;  %v2481_v25 = vadd.f32 %v2480_v20, %v2479_v17  ;;  %v2569_v26 = vadd.f32 %v2568_v21, %v2567_v19 }
 0x137   : > { %v3428_v4 = vadd.f32 %v2569_v26, %v2457_v22 }
 0x139   : > { %v2482_v27 = vpop.f32.mrb[32].mxu0  ;;  %v2570_v29 = vpop.f32.mrb[32].mxu1 }
 0x13a   : > { %v2483_v10 = vpop.f32.mrb[33].mxu0  ;;  %v2571_v30 = vpop.f32.mrb[33].mxu1 }
 0x13b   : > { %v2484_v31 = vadd.f32 %v2483_v10, %v2482_v27  ;;  %v2572_v32 = vadd.f32 %v2571_v30, %v2570_v29  ;;  %v2485_v33 = vpop.f32.mrb[34].mxu0  ;;  %v2573_v36 = vpop.f32.mrb[34].mxu1 }
 0x13c   : > { %v2486_v38 = vpop.f32.mrb[35].mxu0  ;;  %v2574_v39 = vpop.f32.mrb[35].mxu1 }
 0x13d   : > { %v3430_v40 = vadd.f32 %v2572_v32, %v2460_v28  ;;  %v2487_v41 = vadd.f32 %v2486_v38, %v2485_v33  ;;  %v2575_v43 = vadd.f32 %v2574_v39, %v2573_v36 }
 0x13f   : > { %v3432_v16 = vadd.f32 %v2575_v43, %v2463_v35 }
 0x141   : > { %v2488_v45 = vpop.f32.mrb[36].mxu0  ;;  %v2576_v47 = vpop.f32.mrb[36].mxu1 }
 0x142   : > { %v2489_v22 = vpop.f32.mrb[37].mxu0  ;;  %v2577_v48 = vpop.f32.mrb[37].mxu1 }
 0x143   : > { %v3434_v49 = vadd.f32 %v2489_v22, %v2488_v45  ;;  %v2578_v54 = vadd.f32 %v2577_v48, %v2576_v47  ;;  %v2491_v55 = vpop.f32.mrb[38].mxu0  ;;  %v2579_v57 = vpop.f32.mrb[38].mxu1 }
 0x144   : > { %v2492_v50 = vpop.f32.mrb[39].mxu0  ;;  %v2580_v59 = vpop.f32.mrb[39].mxu1 }
 0x145   : > { %v3436_v61 = vadd.f32 %v2578_v54, %v2466_v42  ;;  %v2493_v0 = vadd.f32 %v2492_v50, %v2491_v55  ;;  %v2581_v28 = vadd.f32 %v2580_v59, %v2579_v57 }
 0x147   : > { %v3438_v1 = vadd.f32 %v2581_v28, %v2469_v53 }
 0x149   : > { %v2494_v2 = vpop.f32.mrb[40].mxu0  ;;  %v2582_v35 = vpop.f32.mrb[40].mxu1 }
 0x14a   : > { %v2495_v3 = vpop.f32.mrb[41].mxu0  ;;  %v2583_v8 = vpop.f32.mrb[41].mxu1 }
 0x14b   : > { %v3440_v9 = vadd.f32 %v2495_v3, %v2494_v2  ;;  %v2584_v12 = vadd.f32 %v2583_v8, %v2582_v35  ;;  %v2497_v62 = vpop.f32.mrb[42].mxu0  ;;  %v2585_v13 = vpop.f32.mrb[42].mxu1 }
 0x14c   : > { %v2498_v15 = vpop.f32.mrb[43].mxu0  ;;  %v2586_v17 = vpop.f32.mrb[43].mxu1 }
 0x14d   : > { %v3442_v19 = vadd.f32 %v2584_v12, %v2472_v60  ;;  %v3444_v20 = vadd.f32 %v2498_v15, %v2497_v62  ;;  %v2587_v42 = vadd.f32 %v2586_v17, %v2585_v13 }
 0x14f   : > { %v3446_v21 = vadd.f32 %v2587_v42, %v2475_v7 }
 0x151   : > { %v2500_v53 = vpop.f32.mrb[44].mxu0  ;;  %v2588_v26 = vpop.f32.mrb[44].mxu1 }
 0x152   : > { %v2501_v27 = vpop.f32.mrb[45].mxu0  ;;  %v2589_v29 = vpop.f32.mrb[45].mxu1 }
 0x153   : > { %v3448_v10 = vadd.f32 %v2501_v27, %v2500_v53  ;;  %v2590_v30 = vadd.f32 %v2589_v29, %v2588_v26  ;;  %v2503_v32 = vpop.f32.mrb[46].mxu0  ;;  %v2591_v33 = vpop.f32.mrb[46].mxu1 }
 0x154   : > { %v2504_v36 = vpop.f32.mrb[47].mxu0  ;;  %v2592_v38 = vpop.f32.mrb[47].mxu1 }
 0x155   : > { %v3450_v39 = vadd.f32 %v2590_v30, %v2478_v14  ;;  %v3452_v60 = vadd.f32 %v2504_v36, %v2503_v32  ;;  %v2593_v43 = vadd.f32 %v2592_v38, %v2591_v33 }
 0x157   : > { %v3454_v45 = vadd.f32 %v2593_v43, %v2481_v25 }
 0x159   : > { %v2594_v7 = vpop.f32.mrb[48].mxu1  ;;  %v2658_v47 = vpop.f32.mrb[48].mxu0 }
 0x15a   : > { %v2595_v22 = vpop.f32.mrb[49].mxu1  ;;  %v2659_v48 = vpop.f32.mrb[49].mxu0 }
 0x15b   : > { %v2596_v54 = vadd.f32 %v2595_v22, %v2594_v7  ;;  %v2660_v55 = vadd.f32 %v2659_v48, %v2658_v47  ;;  %v2597_v57 = vpop.f32.mrb[50].mxu1  ;;  %v2661_v50 = vpop.f32.mrb[50].mxu0 }
 0x15c   : > { %v2598_v59 = vpop.f32.mrb[51].mxu1  ;;  %v2662_v28 = vpop.f32.mrb[51].mxu0 }
 0x15d   : > { %v3456_v2 = vadd.f32 %v2596_v54, %v2484_v31  ;;  %v2599_v35 = vadd.f32 %v2598_v59, %v2597_v57  ;;  %v2663_v14 = vadd.f32 %v2662_v28, %v2661_v50  ;;  %v3459_v3 = vadd.f32 %v2660_v55, %v3414_v34 }
 0x15f   : > { %v3461_v8 = vadd.f32 %v2599_v35, %v2487_v41  ;;  %v3464_v25 = vadd.f32 %v2663_v14, %v3416_v37 }
 0x161   : > { %v2600_v12 = vpop.f32.mrb[52].mxu1  ;;  %v2664_v62 = vpop.f32.mrb[52].mxu0 }
 0x162   : > { %v2601_v13 = vpop.f32.mrb[53].mxu1  ;;  %v2665_v15 = vpop.f32.mrb[53].mxu0 }
 0x163   : > { %v2602_v17 = vadd.f32 %v2601_v13, %v2600_v12  ;;  %v2666_v42 = vadd.f32 %v2665_v15, %v2664_v62  ;;  %v2603_v53 = vpop.f32.mrb[54].mxu1  ;;  %v2667_v26 = vpop.f32.mrb[54].mxu0 }
 0x164   : > { %v2604_v31 = vpop.f32.mrb[55].mxu1  ;;  %v2668_v27 = vpop.f32.mrb[55].mxu0 }
 0x165   : > { %v3467_v29 = vadd.f32 %v2602_v17, %v3434_v49  ;;  %v2605_v34 = vadd.f32 %v2604_v31, %v2603_v53  ;;  %v2669_v30 = vadd.f32 %v2668_v27, %v2667_v26  ;;  %v3470_v41 = vadd.f32 %v2666_v42, %v3418_v52 }
 0x167   : > { %v3472_v37 = vadd.f32 %v2605_v34, %v2493_v0  ;;  %v3475_v32 = vadd.f32 %v2669_v30, %v3420_v44 }
 0x169   : > { %v2606_v33 = vpop.f32.mrb[56].mxu1  ;;  %v2670_v36 = vpop.f32.mrb[56].mxu0 }
 0x16a   : > { %v2607_v38 = vpop.f32.mrb[57].mxu1  ;;  %v2671_v43 = vpop.f32.mrb[57].mxu0 }
 0x16b   : > { %v2608_v7 = vadd.f32 %v2607_v38, %v2606_v33  ;;  %v2672_v47 = vadd.f32 %v2671_v43, %v2670_v36  ;;  %v2609_v22 = vpop.f32.mrb[58].mxu1  ;;  %v2673_v48 = vpop.f32.mrb[58].mxu0 }
 0x16c   : > { %v2610_v49 = vpop.f32.mrb[59].mxu1  ;;  %v2674_v54 = vpop.f32.mrb[59].mxu0 }
 0x16d   : > { %v3478_v55 = vadd.f32 %v2608_v7, %v3440_v9  ;;  %v2611_v52 = vadd.f32 %v2610_v49, %v2609_v22  ;;  %v2675_v57 = vadd.f32 %v2674_v54, %v2673_v48  ;;  %v3481_v0 = vadd.f32 %v2672_v47, %v3422_v5 }
 0x16f   : > { %v3484_v44 = vadd.f32 %v2611_v52, %v3444_v20  ;;  %v3487_v50 = vadd.f32 %v2675_v57, %v3424_v56 }
 0x171   : > { %v2612_v59 = vpop.f32.mrb[60].mxu1  ;;  %v2676_v28 = vpop.f32.mrb[60].mxu0 }
 0x172   : > { %v2613_v35 = vpop.f32.mrb[61].mxu1  ;;  %v2677_v14 = vpop.f32.mrb[61].mxu0 }
 0x173   : > { %v2614_v12 = vadd.f32 %v2613_v35, %v2612_v59  ;;  %v2678_v62 = vadd.f32 %v2677_v14, %v2676_v28  ;;  %v2615_v13 = vpop.f32.mrb[62].mxu1  ;;  %v2679_v9 = vpop.f32.mrb[62].mxu0 }
 0x174   : > { %v2616_v15 = vpop.f32.mrb[63].mxu1  ;;  %v2680_v17 = vpop.f32.mrb[63].mxu0 }
 0x175   : > { %v3490_v42 = vadd.f32 %v2614_v12, %v3448_v10  ;;  %v2617_v5 = vadd.f32 %v2616_v15, %v2615_v13  ;;  %v2681_v53 = vadd.f32 %v2680_v17, %v2679_v9  ;;  %v3493_v20 = vadd.f32 %v2678_v62, %v3426_v24 }
 0x177   : > { %v3496_v56 = vadd.f32 %v2617_v5, %v3452_v60  ;;  %v3499_v26 = vadd.f32 %v2681_v53, %v3428_v4 }
 0x179   : > { %v2618_v31 = vpop.f32.mrb[64].mxu1  ;;  %v2682_v27 = vpop.f32.mrb[64].mxu0 }
 0x17a   : > { %v2619_v34 = vpop.f32.mrb[65].mxu1  ;;  %v2683_v30 = vpop.f32.mrb[65].mxu0 }
 0x17b   : > { %v2620_v33 = vadd.f32 %v2619_v34, %v2618_v31  ;;  %v2684_v36 = vadd.f32 %v2683_v30, %v2682_v27  ;;  %v2621_v38 = vpop.f32.mrb[66].mxu1  ;;  %v2685_v10 = vpop.f32.mrb[66].mxu0 }
 0x17c   : > { %v2622_v43 = vpop.f32.mrb[67].mxu1  ;;  %v2686_v7 = vpop.f32.mrb[67].mxu0 }
 0x17d   : > { %v3502_v47 = vadd.f32 %v2620_v33, %v3398_v46  ;;  %v2623_v24 = vadd.f32 %v2622_v43, %v2621_v38  ;;  %v2687_v22 = vadd.f32 %v2686_v7, %v2685_v10  ;;  %v3505_v60 = vadd.f32 %v2684_v36, %v3430_v40 }
 0x17f   : > { %v3508_v4 = vadd.f32 %v2623_v24, %v3400_v51  ;;  %v3511_v48 = vadd.f32 %v2687_v22, %v3432_v16 }
 0x181   : > { %v2624_v49 = vpop.f32.mrb[68].mxu1  ;;  %v2688_v54 = vpop.f32.mrb[68].mxu0 }
 0x182   : > { %v2625_v52 = vpop.f32.mrb[69].mxu1  ;;  %v2689_v57 = vpop.f32.mrb[69].mxu0 }
 0x183   : > { %v2626_v59 = vadd.f32 %v2625_v52, %v2624_v49  ;;  %v2690_v28 = vadd.f32 %v2689_v57, %v2688_v54  ;;  %v2627_v35 = vpop.f32.mrb[70].mxu1  ;;  %v2691_v46 = vpop.f32.mrb[70].mxu0 }
 0x184   : > { %v2628_v14 = vpop.f32.mrb[71].mxu1  ;;  %v2692_v12 = vpop.f32.mrb[71].mxu0 }
 0x185   : > { %v3514_v62 = vadd.f32 %v2626_v59, %v3402_v58  ;;  %v2629_v40 = vadd.f32 %v2628_v14, %v2627_v35  ;;  %v2693_v13 = vadd.f32 %v2692_v12, %v2691_v46  ;;  %v3517_v51 = vadd.f32 %v2690_v28, %v3436_v61 }
 0x187   : > { %v3520_v16 = vadd.f32 %v2629_v40, %v3404_v63  ;;  %v3523_v9 = vadd.f32 %v2693_v13, %v3438_v1 }
 0x189   : > { %v2630_v15 = vpop.f32.mrb[72].mxu1  ;;  %v2694_v17 = vpop.f32.mrb[72].mxu0 }
 0x18a   : > { %v2631_v5 = vpop.f32.mrb[73].mxu1  ;;  %v2695_v53 = vpop.f32.mrb[73].mxu0 }
 0x18b   : > { %v2632_v31 = vadd.f32 %v2631_v5, %v2630_v15  ;;  %v2696_v27 = vadd.f32 %v2695_v53, %v2694_v17  ;;  %v2633_v34 = vpop.f32.mrb[74].mxu1  ;;  %v2697_v58 = vpop.f32.mrb[74].mxu0 }
 0x18c   : > { %v2634_v30 = vpop.f32.mrb[75].mxu1  ;;  %v2698_v33 = vpop.f32.mrb[75].mxu0 }
 0x18d   : > { %v3526_v36 = vadd.f32 %v2632_v31, %v3406_v6  ;;  %v2635_v61 = vadd.f32 %v2634_v30, %v2633_v34  ;;  %v2699_v38 = vadd.f32 %v2698_v33, %v2697_v58  ;;  %v3529_v63 = vadd.f32 %v2696_v27, %v3442_v19 }
 0x18f   : > { %v3532_v1 = vadd.f32 %v2635_v61, %v3408_v11  ;;  %v3535_v10 = vadd.f32 %v2699_v38, %v3446_v21 }
 0x191   : > { %v2636_v43 = vpop.f32.mrb[76].mxu1  ;;  %v2700_v7 = vpop.f32.mrb[76].mxu0 }
 0x192   : > { %v2637_v24 = vpop.f32.mrb[77].mxu1  ;;  %v2701_v22 = vpop.f32.mrb[77].mxu0 }
 0x193   : > { %v2638_v49 = vadd.f32 %v2637_v24, %v2636_v43  ;;  %v2702_v54 = vadd.f32 %v2701_v22, %v2700_v7  ;;  %v2639_v52 = vpop.f32.mrb[78].mxu1  ;;  %v2703_v6 = vpop.f32.mrb[78].mxu0 }
 0x194   : > { %v2640_v57 = vpop.f32.mrb[79].mxu1  ;;  %v2704_v59 = vpop.f32.mrb[79].mxu0 }
 0x195   : > { %v3538_v28 = vadd.f32 %v2638_v49, %v3410_v18  ;;  %v2641_v19 = vadd.f32 %v2640_v57, %v2639_v52  ;;  %v2705_v35 = vadd.f32 %v2704_v59, %v2703_v6  ;;  %v1764_v11 = vadd.f32 %v2702_v54, %v3450_v39 }
 0x197   : > { %v3542_v21 = vadd.f32 %v2641_v19, %v3412_v23  ;;  %v3545_v46 = vadd.f32 %v2705_v35, %v3454_v45 }
 0x199   : > { %v2706_v14 = vpop.f32.mrb[80].mxu0  ;;  %v2796_v12 = vpop.f32.mrb[80].mxu1 }
 0x19a   : > { %v3548_v40 = vadd.f32 %v2796_v12, %v3470_v41  ;;  %v2707_v13 = vpop.f32.mrb[81].mxu0  ;;  %v1868_v15 = vpop.f32.mrb[81].mxu1 }
 0x19b   : > { %v2708_v17 = vadd.f32 %v2707_v13, %v2706_v14  ;;  %v3551_v18 = vadd.f32 %v1868_v15, %v3459_v3  ;;  %v2709_v5 = vpop.f32.mrb[82].mxu0  ;;  %v2797_v53 = vpop.f32.mrb[82].mxu1 }
 0x19c   : > { %v3554_v39 = vadd.f32 %v2797_v53, %v3475_v32  ;;  %v2710_v23 = vpop.f32.mrb[83].mxu0  ;;  %v1871_v31 = vpop.f32.mrb[83].mxu1 }
 0x19d   : > { %v2711_v45 = vadd.f32 %v2710_v23, %v2709_v5  ;;  %v3557_v27 = vadd.f32 %v1871_v31, %v3464_v25  ;;  %v3560_v41 = vadd.f32 %v2708_v17, %v3456_v2 }
 0x19f   : > { %v3563_v34 = vadd.f32 %v2711_v45, %v3461_v8 }
 0x1a1   : > { %v2712_v58 = vpop.f32.mrb[84].mxu0  ;;  %v2800_v3 = vpop.f32.mrb[84].mxu1 }
 0x1a2   : > { %v3566_v30 = vadd.f32 %v2800_v3, %v3493_v20  ;;  %v2713_v33 = vpop.f32.mrb[85].mxu0  ;;  %v1884_v32 = vpop.f32.mrb[85].mxu1 }
 0x1a3   : > { %v2714_v61 = vadd.f32 %v2713_v33, %v2712_v58  ;;  %v3569_v38 = vadd.f32 %v1884_v32, %v3481_v0  ;;  %v2715_v43 = vpop.f32.mrb[86].mxu0  ;;  %v2801_v25 = vpop.f32.mrb[86].mxu1 }
 0x1a4   : > { %v3572_v7 = vadd.f32 %v2801_v25, %v3499_v26  ;;  %v2716_v2 = vpop.f32.mrb[87].mxu0  ;;  %v1887_v24 = vpop.f32.mrb[87].mxu1 }
 0x1a5   : > { %v2717_v8 = vadd.f32 %v2716_v2, %v2715_v43  ;;  %v3575_v22 = vadd.f32 %v1887_v24, %v3487_v50  ;;  %v1780_v20 = vadd.f32 %v2714_v61, %v3467_v29 }
 0x1a7   : > { %v1783_v49 = vadd.f32 %v2717_v8, %v3472_v37 }
 0x1a9   : > { %v2718_v54 = vpop.f32.mrb[88].mxu0  ;;  %v2804_v52 = vpop.f32.mrb[88].mxu1 }
 0x1aa   : > { %v3580_v0 = vadd.f32 %v2804_v52, %v3517_v51  ;;  %v2719_v6 = vpop.f32.mrb[89].mxu0  ;;  %v1900_v57 = vpop.f32.mrb[89].mxu1 }
 0x1ab   : > { %v2720_v59 = vadd.f32 %v2719_v6, %v2718_v54  ;;  %v3583_v26 = vadd.f32 %v1900_v57, %v3505_v60  ;;  %v2721_v19 = vpop.f32.mrb[90].mxu0  ;;  %v2805_v35 = vpop.f32.mrb[90].mxu1 }
 0x1ac   : > { %v1997_v50 = vmax.f32 %v3548_v40, %v3580_v0  ;;  %v2021_v29 = vmin.f32 %v3548_v40, %v3580_v0  ;;  %v3590_v37 = vadd.f32 %v2805_v35, %v3523_v9  ;;  %v2722_v14 = vpop.f32.mrb[91].mxu0  ;;  %v1903_v51 = vpop.f32.mrb[91].mxu1  ;;  %v3683_v40 = vld [vmem:[%s3789_s3] ss:$0 sm:$0xff] }
 0x1ad   : > { %v1995_v12 = vmax.f32 %v3551_v18, %v3583_v26  ;;  %v2019_v60 = vmin.f32 %v3551_v18, %v3583_v26  ;;  %v2723_v13 = vadd.f32 %v2722_v14, %v2721_v19  ;;  %v3597_v15 = vadd.f32 %v1903_v51, %v3511_v48 }
 0x1ae   : > { %v1998_v17 = vmax.f32 %v3554_v39, %v3590_v37  ;;  %v2022_v5 = vmin.f32 %v3554_v39, %v3590_v37  ;;  %v1788_v9 = vadd.f32 %v2720_v59, %v3478_v55 }
 0x1af   : > { %v1996_v53 = vmax.f32 %v3557_v27, %v3597_v15  ;;  %v2020_v23 = vmin.f32 %v3557_v27, %v3597_v15  ;;  %v1791_v31 = vadd.f32 %v2723_v13, %v3484_v44 }
 0x1b1   : > { %v2724_v45 = vpop.f32.mrb[92].mxu0  ;;  %v2808_v58 = vpop.f32.mrb[92].mxu1 }
 0x1b2   : > { %v3609_v48 = vadd.f32 %v2808_v58, %v1764_v11  ;;  %v2725_v3 = vpop.f32.mrb[93].mxu0  ;;  %v1916_v33 = vpop.f32.mrb[93].mxu1 }
 0x1b3   : > { %v2726_v32 = vadd.f32 %v2725_v3, %v2724_v45  ;;  %v3612_v61 = vadd.f32 %v1916_v33, %v3529_v63  ;;  %v2727_v43 = vpop.f32.mrb[94].mxu0  ;;  %v2809_v55 = vpop.f32.mrb[94].mxu1 }
 0x1b4   : > { %v3619_v44 = vadd.f32 %v2809_v55, %v3545_v46  ;;  %v2728_v24 = vpop.f32.mrb[95].mxu0  ;;  %v1919_v11 = vpop.f32.mrb[95].mxu1 }
 0x1b5   : > { %v1999_v8 = vmax.f32 %v3569_v38, %v3612_v61  ;;  %v2023_v63 = vmin.f32 %v3569_v38, %v3612_v61  ;;  %v2729_v54 = vadd.f32 %v2728_v24, %v2727_v43  ;;  %v3626_v52 = vadd.f32 %v1919_v11, %v3535_v10 }
 0x1b6   : > { %v1796_v46 = vadd.f32 %v2726_v32, %v3490_v42  ;;  %v2047_v24 = vlaneseq  ;;  %v3791_v38 = vmax.f32 %v3566_v30, %v3609_v48 }
 0x1b7   : > { %v1799_v35 = vadd.f32 %v2729_v54, %v3496_v56 }
 0x1b9   : > { %v2730_v14 = vpop.f32.mrb[96].mxu0  ;;  %v2812_v51 = vpop.f32.mrb[96].mxu1 }
 0x1ba   : > { %v1941_v10 = vadd.f32 %v2812_v51, %v1780_v20  ;;  %v2731_v13 = vpop.f32.mrb[97].mxu0  ;;  %v1932_v45 = vpop.f32.mrb[97].mxu1  ;;  %v2043_v20 = vld [vmem:[%s3788_s2] sm:$0x1] }
 0x1bb   : > { %v2732_v58 = vadd.f32 %v2731_v13, %v2730_v14  ;;  %v1933_v3 = vadd.f32 %v1932_v45, %v3560_v41  ;;  %v2733_v33 = vpop.f32.mrb[98].mxu0  ;;  %v2813_v43 = vpop.f32.mrb[98].mxu1  ;;  %v2048_v41 = vshrl.u32 %v2047_v24, 7  ;;  %vm2045_vm0 = vcmp.ge.f32.partialorder %v2043_v20, 0.0 }
 0x1bc   : > { %v3639_v55 = vadd.f32 %v2813_v43, %v1783_v49  ;;  %v2734_v42 = vpop.f32.mrb[99].mxu0  ;;  %v1935_v32 = vpop.f32.mrb[99].mxu1 }
 0x1bd   : > { %v2735_v11 = vadd.f32 %v2734_v42, %v2733_v33  ;;  %v3642_v19 = vadd.f32 %v1935_v32, %v3563_v34  ;;  %v1804_v56 = vadd.f32 %v2732_v58, %v3502_v47  ;;  %v2049_v59 = vsub.s32 0, %v2048_v41 }
 0x1bf   : > { %v1807_v54 = vadd.f32 %v2735_v11, %v3508_v4 }
 0x1c1   : > { %v2736_v14 = vpop.f32.mrb[100].mxu0  ;;  %v2816_v51 = vpop.f32.mrb[100].mxu1 }
 0x1c2   : > { %v3649_v49 = vadd.f32 %v2816_v51, %v1796_v46  ;;  %v2737_v13 = vpop.f32.mrb[101].mxu0  ;;  %v1948_v45 = vpop.f32.mrb[101].mxu1  ;;  %v3076_v46 = vmov 0  }
 0x1c3   : > { %v2738_v33 = vadd.f32 %v2737_v13, %v2736_v14  ;;  %v3651_v43 = vadd.f32 %v1948_v45, %v1788_v9  ;;  %v2739_v34 = vpop.f32.mrb[102].mxu0  ;;  %v2817_v42 = vpop.f32.mrb[102].mxu1  ;;  %v2068_v11 = vsel %vm2045_vm0, 1, %v3076_v46 }
 0x1c4   : > { %v3653_v47 = vadd.f32 %v2817_v42, %v1799_v35  ;;  %v2740_v58 = vpop.f32.mrb[103].mxu0  ;;  %v1951_v32 = vpop.f32.mrb[103].mxu1  ;;  %v3659_v6 = vrot.slane %v2068_v11, %v2049_v59  ;;  %v3661_v42 = vrot.slane %v2043_v20, %v2049_v59 }
 0x1c5   : > { %v2741_v57 = vadd.f32 %v2740_v58, %v2739_v34  ;;  %v3655_v4 = vadd.f32 %v1951_v32, %v1791_v31  ;;  %v1812_v24 = vadd.f32 %v2738_v33, %v3514_v62 }
 0x1c6   : > { %vm2073_vm1 = vcmp.eq.s32.totalorder %v3659_v6, 1 }
 0x1c7   : > { %v1815_v51 = vadd.f32 %v2741_v57, %v3520_v16 }
 0x1c9   : > { %v2742_v9 = vpop.f32.mrb[104].mxu0  ;;  %v2820_v14 = vpop.f32.mrb[104].mxu1 }
 0x1ca   : > { %v1973_v13 = vadd.f32 %v2820_v14, %v1812_v24  ;;  %v2743_v45 = vpop.f32.mrb[105].mxu0  ;;  %v1964_v35 = vpop.f32.mrb[105].mxu1 }
 0x1cb   : > { %v2744_v2 = vadd.f32 %v2743_v45, %v2742_v9  ;;  %v1965_v41 = vadd.f32 %v1964_v35, %v1804_v56  ;;  %v2745_v34 = vpop.f32.mrb[106].mxu0  ;;  %v2821_v31 = vpop.f32.mrb[106].mxu1 }
 0x1cc   : > { %v2005_v58 = vmax.f32 %v1941_v10, %v1973_v13  ;;  %v2029_v32 = vmin.f32 %v1941_v10, %v1973_v13  ;;  %v1976_v62 = vadd.f32 %v2821_v31, %v1815_v51  ;;  %v2746_v33 = vpop.f32.mrb[107].mxu0  ;;  %v1967_v16 = vpop.f32.mrb[107].mxu1 }
 0x1cd   : > { %v2003_v57 = vmax.f32 %v1933_v3, %v1965_v41  ;;  %v2027_v46 = vmin.f32 %v1933_v3, %v1965_v41  ;;  %v2747_v11 = vadd.f32 %v2746_v33, %v2745_v34  ;;  %v1968_v25 = vadd.f32 %v1967_v16, %v1807_v54 }
 0x1ce   : > { %v2013_v59 = vmax.f32 %v1997_v50, %v2005_v58  ;;  %v2037_v56 = vmin.f32 %v2021_v29, %v2029_v32  ;;  %v2006_v20 = vmax.f32 %v3639_v55, %v1976_v62  ;;  %v2030_v10 = vmin.f32 %v3639_v55, %v1976_v62 }
 0x1cf   : > { %v2011_v24 = vmax.f32 %v1995_v12, %v2003_v57  ;;  %v2035_v3 = vmin.f32 %v2019_v60, %v2027_v46  ;;  %v2004_v54 = vmax.f32 %v3642_v19, %v1968_v25  ;;  %v2028_v50 = vmin.f32 %v3642_v19, %v1968_v25 }
 0x1d0   : > { %v2054_v0 = vmul.f32 %v3661_v42, %v2013_v59  ;;  %v2062_v29 = vmul.f32 %v3661_v42, %v2037_v56  ;;  %v2014_v12 = vmax.f32 %v1998_v17, %v2006_v20  ;;  %v2038_v18 = vmin.f32 %v2022_v5, %v2030_v10 }
 0x1d1   : > { %v2052_v26 = vmul.f32 %v3661_v42, %v2011_v24  ;;  %v2060_v60 = vmul.f32 %v3661_v42, %v2035_v3  ;;  %v2012_v25 = vmax.f32 %v1996_v53, %v2004_v54  ;;  %v2036_v19 = vmin.f32 %v2020_v23, %v2028_v50  ;;  %v2748_v55 = vpop.f32.mrb[108].mxu0  ;;  %v2824_v51 = vpop.f32.mrb[108].mxu1 }
 0x1d2   : > { %v2076_v17 = vsel %vm2073_vm1, %v2054_v0, %v2062_v29  ;;  %v2055_v39 = vmul.f32 %v3661_v42, %v2014_v12  ;;  %v2063_v37 = vmul.f32 %v3661_v42, %v2038_v18  ;;  %v2749_v5 = vpop.f32.mrb[109].mxu0  ;;  %v1820_v9 = vadd.f32 %v2744_v2, %v3526_v36  ;;  %v1980_v14 = vpop.f32.mrb[109].mxu1 }
 0x1d3   : > { %v2090_v53 = vadd.f32 %v3683_v40, %v2076_v17  ;;  %v2074_v27 = vsel %vm2073_vm1, %v2052_v26, %v2060_v60  ;;  %v2053_v15 = vmul.f32 %v3661_v42, %v2012_v25  ;;  %v2061_v23 = vmul.f32 %v3661_v42, %v2036_v19  ;;  %v2751_v13 = vpop.f32.mrb[110].mxu0  ;;  %v2825_v45 = vpop.f32.mrb[110].mxu1 }
 0x1d4   : > { %v2088_v35 = vadd.f32 %v3683_v40, %v2074_v27  ;;  %v2077_v41 = vsel %vm2073_vm1, %v2055_v39, %v2063_v37  ;;  %v2750_v34 = vadd.f32 %v2749_v5, %v2748_v55  ;;  %v1981_v31 = vadd.f32 %v1980_v14, %v1820_v9  ;;  %v2752_v36 = vpop.f32.mrb[111].mxu0  ;;  %v1983_v2 = vpop.f32.mrb[111].mxu1 }
 0x1d5   : > { %v2091_v58 = vadd.f32 %v3683_v40, %v2077_v41  ;;  %v2075_v32 = vsel %vm2073_vm1, %v2053_v15, %v2061_v23  ;;  %v2753_v62 = vadd.f32 %v2752_v36, %v2751_v13  ;;  %v2098_v33 = vmax.f32 %v2090_v53, 0.0 }
 0x1d6   : > { %v2089_v16 = vadd.f32 %v3683_v40, %v2075_v32  ;;  %v1828_v57 = vadd.f32 %v2750_v34, %v3538_v28  ;;  %v2007_v46 = vmax.f32 %v3651_v43, %v1981_v31  ;;  %v2031_v56 = vmin.f32 %v3651_v43, %v1981_v31 }
 0x1d7   : > { %v2099_v59 = vmax.f32 %v2091_v58, 0.0  ;;  %v1831_v20 = vadd.f32 %v2753_v62, %v3542_v21  ;;  %v1823_v10 = vadd.f32 %v2747_v11, %v3532_v1  ;;  %v2096_v24 = vmax.f32 %v2088_v35, 0.0 }
 0x1d8   : > { %v2097_v3 = vmax.f32 %v2089_v16, 0.0  ;;  %v1989_v54 = vadd.f32 %v2824_v51, %v1828_v57  ;;  %v2015_v28 = vmax.f32 %v1999_v8, %v2007_v46  ;;  %v2039_v21 = vmin.f32 %v2023_v63, %v2031_v56 }
 0x1d9   : > { %v2403_v50 = vpack.c.bf16 %v2099_v59, %v2098_v33  ;;  %v1992_v1 = vadd.f32 %v2825_v45, %v1831_v20  ;;  %v1984_v43 = vadd.f32 %v1983_v2, %v1823_v10  ;;  %v3792_v63 = vmin.f32 %v3566_v30, %v3609_v48 }
 0x1da   : > { %v2398_v11 = vpack.c.bf16 %v2097_v3, %v2096_v24  ;;  %v2009_v0 = vmax.f32 %v3649_v49, %v1989_v54  ;;  %v2033_v29 = vmin.f32 %v3649_v49, %v1989_v54  ;;  %v2056_v12 = vmul.f32 %v3661_v42, %v2015_v28 }
 0x1db   : > { %2415 = vst [vmem:[%s3727_s22 + $0x8] sm:$0xff] %v2403_v50   ;;  %v2064_v18 = vmul.f32 %v3661_v42, %v2039_v21  ;;  %v2010_v26 = vmax.f32 %v3653_v47, %v1992_v1  ;;  %v2034_v8 = vmin.f32 %v3653_v47, %v1992_v1  ;;  %v2008_v60 = vmax.f32 %v3655_v4, %v1984_v43 }
 0x1dc   : > { %2399 = vst [vmem:[%s3727_s22] sm:$0xff] %v2398_v11   ;;  %v2017_v61 = vmax.f32 %v3791_v38, %v2009_v0  ;;  %v2041_v49 = vmin.f32 %v3792_v63, %v2033_v29  ;;  %v2032_v25 = vmin.f32 %v3655_v4, %v1984_v43  ;;  %v3793_v55 = vmax.f32 %v3572_v7, %v3619_v44 }
 0x1dd   : > { %v2078_v19 = vsel %vm2073_vm1, %v2056_v12, %v2064_v18  ;;  %v3794_v51 = vmin.f32 %v3572_v7, %v3619_v44  ;;  %v3795_v39 = vmax.f32 %v3575_v22, %v3626_v52  ;;  %v3796_v4 = vmin.f32 %v3575_v22, %v3626_v52 }
 0x1de   : > { %v2018_v47 = vmax.f32 %v3793_v55, %v2010_v26  ;;  %v2058_v30 = vmul.f32 %v3661_v42, %v2017_v61  ;;  %v2066_v48 = vmul.f32 %v3661_v42, %v2041_v49  ;;  %v2092_v15 = vadd.f32 %v3683_v40, %v2078_v19 }
 0x1df   : > { %v2042_v17 = vmin.f32 %v3794_v51, %v2034_v8  ;;  %v2016_v37 = vmax.f32 %v3795_v39, %v2008_v60  ;;  %v2040_v5 = vmin.f32 %v3796_v4, %v2032_v25 }
 0x1e0   : > { %v2059_v9 = vmul.f32 %v3661_v42, %v2018_v47  ;;  %v2080_v44 = vsel %vm2073_vm1, %v2058_v30, %v2066_v48  ;;  %v2100_v41 = vmax.f32 %v2092_v15, 0.0 }
 0x1e1   : > { %v2067_v14 = vmul.f32 %v3661_v42, %v2042_v17  ;;  %v2057_v7 = vmul.f32 %v3661_v42, %v2016_v37  ;;  %v2065_v53 = vmul.f32 %v3661_v42, %v2040_v5  ;;  %v2094_v27 = vadd.f32 %v3683_v40, %v2080_v44 }
 0x1e3   : > { %v2081_v22 = vsel %vm2073_vm1, %v2059_v9, %v2067_v14  ;;  %v2079_v23 = vsel %vm2073_vm1, %v2057_v7, %v2065_v53  ;;  %v2102_v45 = vmax.f32 %v2094_v27, 0.0 }
 0x1e4   : > { %v2095_v52 = vadd.f32 %v3683_v40, %v2081_v22  ;;  %v2093_v13 = vadd.f32 %v3683_v40, %v2079_v23 }
 0x1e6   : > { %v2103_v35 = vmax.f32 %v2095_v52, 0.0  ;;  %v2101_v34 = vmax.f32 %v2093_v13, 0.0 }
 0x1e8   : > { %v2413_v31 = vpack.c.bf16 %v2103_v35, %v2102_v45  ;;  %v2408_v42 = vpack.c.bf16 %v2101_v34, %v2100_v41 }
 0x1ea   : > { %2417 = vst [vmem:[%s3727_s22 + $0x18] sm:$0xff] %v2413_v31   ;;  %2416 = vst [vmem:[%s3727_s22 + $0x10] sm:$0xff] %v2408_v42  }
 0x1eb PF: > { %s14_s15 = sadd.s32 1, %s3074_s15  }
 0x1ec   : > { %p11_p4 = scmp.ge.s32.totalorder %s14_s15, 4  }
 0x1ee   :  { %13 = sbr.rel (!%p11_p4) target bundleno = 1 (0x1), region = 66 }

// kernel: convnet_forward.5
= control target key start
LH: loop header
LB: loop body
LE: loop exit
PB: predicated region body
PF: predicated region fallthrough
CT: control target
= control target key end

     0   :  { %13 = vsyncpa [#allocation3], 0  ;;  %s8115_s0 = inlined_call_operand.vmem [shape: bf16[2,1,4096], index: 0, kind: input, shape index: {}]   ;;  %s8116_s1 = inlined_call_operand.vmem [shape: bf16[4096,256], index: 1, kind: input, shape index: {}]   ;;  %s8117_s2 = inlined_call_operand.vmem [shape: f32[1,256], index: 2, kind: input, shape index: {}]   ;;  %s8118_s3 = inlined_call_operand.vmem [shape: bf16[256,128], index: 3, kind: input, shape index: {}]   ;;  %s8119_s4 = inlined_call_operand.vmem [shape: f32[1,128], index: 4, kind: input, shape index: {}]   ;;  %s8120_s5 = inlined_call_operand.vmem [shape: f32[1,128], index: 5, kind: input, shape index: {}]   ;;  %s8121_s6 = inlined_call_operand.vmem [shape: bf16[128,10], index: 6, kind: input, shape index: {}]   ;;  %s8122_s7 = inlined_call_operand.vmem [shape: f32[1,10], index: 7, kind: input, shape index: {}]   ;;  %s8123_s8 = inlined_call_operand.hbm [shape: f32[2,1,10], index: 8, kind: output, shape index: {}]  }
   0x1   :  { %15 = vsyncpa [#allocation3 + $0x1], 0  ;;  %s6238_s27 = smov 0   ;;  %s6240_s28 = smov 0  }
   0x2   :  { %s6242_s29 = smov 0   ;;  %s6244_s30 = smov 0  }
   0x3 LB: > { %s6259_s9 = sadd.s32 4294967295, %s6187_s30   ;;  %s4630_s10 = sadd.s32 4294967294, %s6187_s30   ;;  %s6187_s30 = sphi %s6244_s30, %s8129_s30   ;;  %s6183_s29 = sphi %s6242_s29, %s8128_s29   ;;  %s6179_s28 = sphi %s6240_s28, %s8127_s28   ;;  %s6175_s27 = sphi %s6238_s27, %s8126_s27  }
   0x4   : > { %s6263_s11 = sadd.s32 1, %s6187_s30   ;;  %s201_s12 = sadd.s32 1, %s6183_s29 }
   0x5   : > { %s198_s13 = ssub.s32 %s6187_s30, %s6263_s11  ;;  %p211_p0 = scmp.ne.s32.totalorder %s6183_s29, %s6179_s28 }
   0x6   : > { %p199_p1 = scmp.eq.s32.totalorder %s198_s13, 0  ;;  %p212_p2 = scmp.eq.s32.totalorder %s6259_s9, 1 }
   0x7   : > { %p217_p3 = scmp.ne.s32.totalorder %s6179_s28, %s6175_s27  ;;  %p218_p4 = scmp.eq.s32.totalorder %s4630_s10, 1 }
   0x8   : > { %s6274_s14 = scalar_select %p199_p1, %s6183_s29, %s201_s12  }
   0x9   : > { %p6276_p5 = por %p212_p2, %p211_p0  ;;  %p6280_p6 = por %p218_p4, %p217_p3 }
   0xa   : > { %p4633_p7 = scmp.ge.s32.totalorder %s6187_s30, 1  ;;  %p264_p8 = scmp.lt.s32.totalorder %s6187_s30, 3 }
   0xc   : > { %p265_p9 = pnand %p4633_p7, %p264_p8 }
   0xd   : > { %v5327_v0 = vld [vmem:[%s8116_s1 + $0x4] ss:$8 sps:$4 sm:$0xff] (!%p265_p9)   ;;  %v5331_v2 = vld [vmem:[%s8116_s1] ss:$8 sps:$4 sm:$0xff] (!%p265_p9)   ;;  %v5333_v4 = vld [vmem:[%s8116_s1 + $0x14] ss:$8 sps:$4 sm:$0xff] (!%p265_p9)   ;;  %v826_v40 = vlaneseq (!%p265_p9) }
   0xe   : > { %268 = sbr.rel (%p265_p9) target bundleno = 1262 (0x4ee), region = 52  ;;  %v5329_v1 = vld [vmem:[%s8116_s1 + $0x704] ss:$8 sps:$4 sm:$0xff] (!%p265_p9)   ;;  %3621 = vmatprep.subr.bf16.mxu1 (!%p265_p9), %v5327_v0  ;;  %v5332_v3 = vld [vmem:[%s8116_s1 + $0x700] ss:$8 sps:$4 sm:$0xff] (!%p265_p9)   ;;  %p296_p10 = scmp.lt.s32.totalorder (!%p265_p9), %s6259_s9, 1 }
   0xf   : > { %3908 = vmatprep.subr.bf16.mxu0 (!%p265_p9), %v5329_v1  ;;  %3622 = vmatpush1.bf16.msra.mxu1 (!%p265_p9), %v5331_v2  ;;  %v5335_v5 = vld [vmem:[%s8116_s1 + $0x714] ss:$8 sps:$4 sm:$0xff] (!%p265_p9)   ;;  %v5337_v6 = vld [vmem:[%s8116_s1 + $0x10] ss:$8 sps:$4 sm:$0xff] (!%p265_p9)   ;;  %v5339_v8 = vld [vmem:[%s8116_s1 + $0x24] ss:$8 sps:$4 sm:$0xff] (!%p265_p9)  }
  0x10   : > { %3909 = vmatpush1.bf16.msra.mxu0 (!%p265_p9), %v5332_v3  ;;  %3623 = vmatprep.subr.bf16.mxu1 (!%p265_p9), %v5333_v4  ;;  %v5338_v7 = vld [vmem:[%s8116_s1 + $0x710] ss:$8 sps:$4 sm:$0xff] (!%p265_p9)   ;;  %v5341_v9 = vld [vmem:[%s8116_s1 + $0x724] ss:$8 sps:$4 sm:$0xff] (!%p265_p9)   ;;  %v5343_v10 = vld [vmem:[%s8116_s1 + $0x20] ss:$8 sps:$4 sm:$0xff] (!%p265_p9)  }
  0x11   : > { %3910 = vmatprep.subr.bf16.mxu0 (!%p265_p9), %v5335_v5  ;;  %v5344_v11 = vld [vmem:[%s8116_s1 + $0x720] ss:$8 sps:$4 sm:$0xff] (!%p265_p9)   ;;  %v5345_v12 = vld [vmem:[%s8116_s1 + $0x34] ss:$8 sps:$4 sm:$0xff] (!%p265_p9)   ;;  %v5349_v14 = vld [vmem:[%s8116_s1 + $0x30] ss:$8 sps:$4 sm:$0xff] (!%p265_p9)  }
  0x12   : > { %v5347_v13 = vld [vmem:[%s8116_s1 + $0x734] ss:$8 sps:$4 sm:$0xff] (!%p265_p9)   ;;  %v5350_v15 = vld [vmem:[%s8116_s1 + $0x730] ss:$8 sps:$4 sm:$0xff] (!%p265_p9)   ;;  %v5351_v16 = vld [vmem:[%s8116_s1 + $0x44] ss:$8 sps:$4 sm:$0xff] (!%p265_p9)  }
  0x13   : > { %3624 = vmatpush1.bf16.msra.mxu1 (!%p265_p9), %v5337_v6  ;;  %v5353_v17 = vld [vmem:[%s8116_s1 + $0x744] ss:$8 sps:$4 sm:$0xff] (!%p265_p9)   ;;  %v5355_v18 = vld [vmem:[%s8116_s1 + $0x40] ss:$8 sps:$4 sm:$0xff] (!%p265_p9)   ;;  %v5357_v20 = vld [vmem:[%s8116_s1 + $0x54] ss:$8 sps:$4 sm:$0xff] (!%p265_p9)  }
  0x14   : > { %3911 = vmatpush1.bf16.msra.mxu0 (!%p265_p9), %v5338_v7  ;;  %3625 = vmatprep.subr.bf16.mxu1 (!%p265_p9), %v5339_v8  ;;  %v5356_v19 = vld [vmem:[%s8116_s1 + $0x740] ss:$8 sps:$4 sm:$0xff] (!%p265_p9)   ;;  %v5359_v21 = vld [vmem:[%s8116_s1 + $0x754] ss:$8 sps:$4 sm:$0xff] (!%p265_p9)   ;;  %v5361_v22 = vld [vmem:[%s8116_s1 + $0x50] ss:$8 sps:$4 sm:$0xff] (!%p265_p9)  }
  0x15   : > { %3912 = vmatprep.subr.bf16.mxu0 %v5341_v9  ;;  %v5362_v23 = vld [vmem:[%s8116_s1 + $0x750] ss:$8 sps:$4 sm:$0xff]   ;;  %v5363_v24 = vld [vmem:[%s8116_s1 + $0x64] ss:$8 sps:$4 sm:$0xff]   ;;  %v5367_v26 = vld [vmem:[%s8116_s1 + $0x60] ss:$8 sps:$4 sm:$0xff]  }
  0x16   : > { %v5365_v25 = vld [vmem:[%s8116_s1 + $0x764] ss:$8 sps:$4 sm:$0xff]   ;;  %v5368_v27 = vld [vmem:[%s8116_s1 + $0x760] ss:$8 sps:$4 sm:$0xff]   ;;  %v5369_v28 = vld [vmem:[%s8116_s1 + $0x74] ss:$8 sps:$4 sm:$0xff]  }
  0x17   : > { %3626 = vmatpush1.bf16.msra.mxu1 %v5343_v10  ;;  %v5371_v29 = vld [vmem:[%s8116_s1 + $0x774] ss:$8 sps:$4 sm:$0xff]   ;;  %v5373_v30 = vld [vmem:[%s8116_s1 + $0x70] ss:$8 sps:$4 sm:$0xff]   ;;  %v5375_v32 = vld [vmem:[%s8116_s1 + $0x84] ss:$8 sps:$4 sm:$0xff]  }
  0x18   : > { %3913 = vmatpush1.bf16.msra.mxu0 %v5344_v11  ;;  %3627 = vmatprep.subr.bf16.mxu1 %v5345_v12  ;;  %v5374_v31 = vld [vmem:[%s8116_s1 + $0x770] ss:$8 sps:$4 sm:$0xff]   ;;  %v5377_v33 = vld [vmem:[%s8116_s1 + $0x784] ss:$8 sps:$4 sm:$0xff]   ;;  %v5379_v34 = vld [vmem:[%s8116_s1 + $0x80] ss:$8 sps:$4 sm:$0xff]  }
  0x19   : > { %3914 = vmatprep.subr.bf16.mxu0 %v5347_v13  ;;  %v5380_v35 = vld [vmem:[%s8116_s1 + $0x780] ss:$8 sps:$4 sm:$0xff]   ;;  %v5381_v36 = vld [vmem:[%s8116_s1 + $0x94] ss:$8 sps:$4 sm:$0xff]   ;;  %v6189_v38 = vmov 1966171168  }
  0x1a   : > { %v5383_v37 = vld [vmem:[%s8116_s1 + $0x794] ss:$8 sps:$4 sm:$0xff]   ;;  %v824_v39 = vunpack.c.l.s4 %v6189_v38  ;;  %s297_s12 = scalar_select %p296_p10, %s6259_s9, 1  ;;  %v5385_v41 = vld [vmem:[%s8116_s1 + $0x90] ss:$8 sps:$4 sm:$0xff]   ;;  %v6414_v46 = vshrl.u32 %v826_v40, 7 }
  0x1b   : > { %3628 = vmatpush1.bf16.msra.mxu1 %v5349_v14  ;;  %v5386_v42 = vld [vmem:[%s8116_s1 + $0x790] ss:$8 sps:$4 sm:$0xff]   ;;  %v5387_v43 = vld [vmem:[%s8116_s1 + $0xa4] ss:$8 sps:$4 sm:$0xff]   ;;  %v5391_v47 = vld [vmem:[%s8116_s1 + $0xa0] ss:$8 sps:$4 sm:$0xff]  }
  0x1c   : > { %3915 = vmatpush1.bf16.msra.mxu0 %v5350_v15  ;;  %3629 = vmatprep.subr.bf16.mxu1 %v5351_v16  ;;  %v5389_v44 = vld [vmem:[%s8116_s1 + $0x7a4] ss:$8 sps:$4 sm:$0xff]   ;;  %v825_v45 = vunpack.c.0.s8 %v824_v39  ;;  %s4634_s24 = sshll.u32 %s297_s12, 5  ;;  %v5392_v48 = vld [vmem:[%s8116_s1 + $0x7a0] ss:$8 sps:$4 sm:$0xff]   ;;  %vm6191_vm0 = vmmov 0  }
  0x1d   : > { %3916 = vmatprep.subr.bf16.mxu0 %v5353_v17  ;;  %v5393_v49 = vld [vmem:[%s8116_s1 + $0xb4] ss:$8 sps:$4 sm:$0xff]   ;;  %s6431_s22 = scalar_lea.vmem %s8115_s0, %s4634_s24  ;;  %v5397_v53 = vld [vmem:[%s8116_s1 + $0xb0] ss:$8 sps:$4 sm:$0xff]   ;;  %v5399_v57 = vld [vmem:[%s8116_s1 + $0xc4] ss:$8 sps:$4 sm:$0xff]  }
  0x1e   : > { %v5395_v50 = vld [vmem:[%s8116_s1 + $0x7b4] ss:$8 sps:$4 sm:$0xff]   ;;  %v6434_v51 = vsub.s32 %v825_v45, %v6414_v46  ;;  %v6437_v52 = vld [vmem:[%s6431_s22] sm:$0xff]  ;;  %v5398_v55 = vld [vmem:[%s8116_s1 + $0x7b0] ss:$8 sps:$4 sm:$0xff]   ;;  %s5171_s17 = sshll.u32 %s6259_s9, 4 }
  0x1f   : > { %3630 = vmatpush1.bf16.msra.mxu1 %v5355_v18  ;;  %v302_v56 = vld [vmem:[%s6431_s22 + $0x8] sm:$0xff]  ;;  %v5405_v1 = vld [vmem:[%s8116_s1 + $0xd4] ss:$8 sps:$4 sm:$0xff]   ;;  %v5409_v5 = vld [vmem:[%s8116_s1 + $0xd0] ss:$8 sps:$4 sm:$0xff]   ;;  %vm4560_vm1 = vcmask 73728   ;;  %s8073_s21 = scalar_lea.hbm %s8123_s8, %s5171_s17 }
  0x20   : > { %3917 = vmatpush1.bf16.msra.mxu0 %v5356_v19  ;;  %3631 = vmatprep.subr.bf16.mxu1 %v5357_v20  ;;  %v829_v54 = vrot.slane %v6437_v52, %v6434_v51  ;;  %v5401_v58 = vld [vmem:[%s8116_s1 + $0x7c4] ss:$8 sps:$4 sm:$0xff]   ;;  %v871_v60 = vcombine.high %v302_v56, %v302_v56  ;;  %v5403_v63 = vld [vmem:[%s8116_s1 + $0xc0] ss:$8 sps:$4 sm:$0xff]   ;;  %v5407_v2 = vld [vmem:[%s8116_s1 + $0x7d4] ss:$8 sps:$4 sm:$0xff]  }
  0x21   : > { %3918 = vmatprep.subr.bf16.mxu0 %v5359_v21  ;;  %v5404_v0 = vld [vmem:[%s8116_s1 + $0x7c0] ss:$8 sps:$4 sm:$0xff]   ;;  %v5410_v6 = vld [vmem:[%s8116_s1 + $0x7d0] ss:$8 sps:$4 sm:$0xff]   ;;  %v5411_v7 = vld [vmem:[%s8116_s1 + $0xe4] ss:$8 sps:$4 sm:$0xff]  }
  0x22   : > { %v837_v59 = vcombine.high %v829_v54, %v829_v54  ;;  %v885_v62 = vrot.slane %v871_v60, %v6434_v51  ;;  %v5413_v8 = vld [vmem:[%s8116_s1 + $0x7e4] ss:$8 sps:$4 sm:$0xff]   ;;  %v5415_v10 = vld [vmem:[%s8116_s1 + $0xe0] ss:$8 sps:$4 sm:$0xff]   ;;  %v5417_v12 = vld [vmem:[%s8116_s1 + $0xf4] ss:$8 sps:$4 sm:$0xff]   ;;  %v6513_v19 = vrot.slane %v829_v54, %v6434_v51 }
  0x23   : > { %3632 = vmatpush1.bf16.msra.mxu1 %v5361_v22  ;;  %v5416_v11 = vld [vmem:[%s8116_s1 + $0x7e0] ss:$8 sps:$4 sm:$0xff]   ;;  %v5419_v13 = vld [vmem:[%s8116_s1 + $0x7f4] ss:$8 sps:$4 sm:$0xff]   ;;  %v5421_v15 = vld [vmem:[%s8116_s1 + $0xf0] ss:$8 sps:$4 sm:$0xff]  }
  0x24   : > { %3919 = vmatpush1.bf16.msra.mxu0 %v5362_v23  ;;  %3633 = vmatprep.subr.bf16.mxu1 %v5363_v24  ;;  %v859_v61 = vrot.slane %v837_v59, %v6434_v51  ;;  %v887_v3 = vcombine.high %v885_v62, %v885_v62  ;;  %v6498_v14 = vrot.slane %v885_v62, %v6434_v51  ;;  %v5422_v16 = vld [vmem:[%s8116_s1 + $0x7f0] ss:$8 sps:$4 sm:$0xff]   ;;  %v5426_v17 = vld [vmem:[%s8116_s1 + $0x104] ss:$8 sps:$4 sm:$0xff]   ;;  %v5424_v21 = vld [vmem:[%s8116_s1 + $0x100] ss:$8 sps:$4 sm:$0xff]  }
  0x25   : > { %3920 = vmatprep.subr.bf16.mxu0 %v5365_v25  ;;  %v5430_v18 = vld [vmem:[%s8116_s1 + $0x804] ss:$8 sps:$4 sm:$0xff]   ;;  %v5428_v22 = vld [vmem:[%s8116_s1 + $0x800] ss:$8 sps:$4 sm:$0xff]   ;;  %v5433_v23 = vld [vmem:[%s8116_s1 + $0x114] ss:$8 sps:$4 sm:$0xff]  }
  0x26   : > { %3653 = vmatprep.mubr.bf16.mxu1 %v859_v61  ;;  %v6469_v4 = vrot.slane %v887_v3, %v6434_v51  ;;  %v917_v20 = vcombine.high %v6498_v14, %v6498_v14  ;;  %v5436_v24 = vld [vmem:[%s8116_s1 + $0x814] ss:$8 sps:$4 sm:$0xff]   ;;  %v869_v25 = vcombine.high %v859_v61, %v859_v61  ;;  %v5449_v38 = vld [vmem:[%s8116_s1 + $0x140] ss:$8 sps:$4 sm:$0xff]   ;;  %v5466_v45 = vld [vmem:[%s8116_s1 + $0x864] ss:$8 sps:$4 sm:$0xff]  }
  0x27   : > { %3634 = vmatpush1.bf16.msra.mxu1 %v5367_v26  ;;  %v5431_v26 = vld [vmem:[%s8116_s1 + $0x110] ss:$8 sps:$4 sm:$0xff]   ;;  %v5452_v39 = vld [vmem:[%s8116_s1 + $0x840] ss:$8 sps:$4 sm:$0xff]   ;;  %v5457_v40 = vld [vmem:[%s8116_s1 + $0x154] ss:$8 sps:$4 sm:$0xff]  }
  0x28   : > { %3921 = vmatpush1.bf16.msra.mxu0 %v5368_v27  ;;  %3635 = vmatprep.subr.bf16.mxu1 %v5369_v28  ;;  %v919_v9 = vcombine.high %v6469_v4, %v6469_v4  ;;  %v5434_v27 = vld [vmem:[%s8116_s1 + $0x810] ss:$8 sps:$4 sm:$0xff]   ;;  %v5439_v28 = vld [vmem:[%s8116_s1 + $0x124] ss:$8 sps:$4 sm:$0xff]   ;;  %v5472_v54 = vld [vmem:[%s8116_s1 + $0x874] ss:$8 sps:$4 sm:$0xff]  }
  0x29   : > { %3922 = vmatprep.subr.bf16.mxu0 %v5371_v29  ;;  %v5442_v29 = vld [vmem:[%s8116_s1 + $0x824] ss:$8 sps:$4 sm:$0xff]   ;;  %v5467_v56 = vld [vmem:[%s8116_s1 + $0x170] ss:$8 sps:$4 sm:$0xff]   ;;  %v5473_v61 = vld [vmem:[%s8116_s1 + $0x180] ss:$8 sps:$4 sm:$0xff]  }
  0x2a   : > { %3940 = vmatprep.mubr.bf16.mxu0 %v919_v9  ;;  %v5478_v60 = vld [vmem:[%s8116_s1 + $0x884] ss:$8 sps:$4 sm:$0xff]   ;;  %v5476_v62 = vld [vmem:[%s8116_s1 + $0x880] ss:$8 sps:$4 sm:$0xff]   ;;  %v5496_v9 = vld [vmem:[%s8116_s1 + $0x8b4] ss:$8 sps:$4 sm:$0xff]  }
  0x2b   : > { %3636 = vmatpush1.bf16.msra.mxu1 %v5373_v30  ;;  %v5437_v30 = vld [vmem:[%s8116_s1 + $0x120] ss:$8 sps:$4 sm:$0xff]   ;;  %v5487_v3 = vld [vmem:[%s8116_s1 + $0x1a4] ss:$8 sps:$4 sm:$0xff]   ;;  %s6192_s25 = smov [#allocation2]  }
  0x2c   : > { %3923 = vmatpush1.bf16.msra.mxu0 %v5374_v31  ;;  %3637 = vmatprep.subr.bf16.mxu1 %v5375_v32  ;;  %v5440_v31 = vld [vmem:[%s8116_s1 + $0x820] ss:$8 sps:$4 sm:$0xff]   ;;  %v5445_v32 = vld [vmem:[%s8116_s1 + $0x134] ss:$8 sps:$4 sm:$0xff]   ;;  %s6129_s26 = sshll.u32 %s6192_s25, 4  ;;  %s6130_s26 = int_to_ptr.vmem [resolvable:$false] %s6129_s26 }
  0x2d   : > { %3924 = vmatprep.subr.bf16.mxu0 %v5377_v33  ;;  %v5448_v33 = vld [vmem:[%s8116_s1 + $0x834] ss:$8 sps:$4 sm:$0xff]   ;;  %s6131_s10 = scalar_lea.vmem %s6130_s26, 32 }
  0x2f   : > { %3638 = vmatpush1.bf16.msra.mxu1 %v5379_v34  ;;  %v5443_v34 = vld [vmem:[%s8116_s1 + $0x130] ss:$8 sps:$4 sm:$0xff]  }
  0x30   : > { %3925 = vmatpush1.bf16.msra.mxu0 %v5380_v35  ;;  %3639 = vmatprep.subr.bf16.mxu1 %v5381_v36  ;;  %v5446_v35 = vld [vmem:[%s8116_s1 + $0x830] ss:$8 sps:$4 sm:$0xff]   ;;  %v5451_v36 = vld [vmem:[%s8116_s1 + $0x144] ss:$8 sps:$4 sm:$0xff]  }
  0x31   : > { %3926 = vmatprep.subr.bf16.mxu0 %v5383_v37  ;;  %v5454_v37 = vld [vmem:[%s8116_s1 + $0x844] ss:$8 sps:$4 sm:$0xff]  }
  0x33   : > { %3640 = vmatpush1.bf16.msra.mxu1 %v5385_v41  ;;  %v5460_v41 = vld [vmem:[%s8116_s1 + $0x854] ss:$8 sps:$4 sm:$0xff]  }
  0x34   : > { %3927 = vmatpush1.bf16.msra.mxu0 %v5386_v42  ;;  %3641 = vmatprep.subr.bf16.mxu1 %v5387_v43  ;;  %v5455_v42 = vld [vmem:[%s8116_s1 + $0x150] ss:$8 sps:$4 sm:$0xff]  }
  0x35   : > { %3928 = vmatprep.subr.bf16.mxu0 %v5389_v44  ;;  %v5458_v43 = vld [vmem:[%s8116_s1 + $0x850] ss:$8 sps:$4 sm:$0xff]   ;;  %v5463_v44 = vld [vmem:[%s8116_s1 + $0x164] ss:$8 sps:$4 sm:$0xff]  }
  0x37   : > { %3642 = vmatpush1.bf16.msra.mxu1 %v5391_v47  ;;  %v5461_v47 = vld [vmem:[%s8116_s1 + $0x160] ss:$8 sps:$4 sm:$0xff]  }
  0x38   : > { %3929 = vmatpush1.bf16.msra.mxu0 %v5392_v48  ;;  %3643 = vmatprep.subr.bf16.mxu1 %v5393_v49  ;;  %v6594_v48 = vld [vmem:[%s6431_s22 + $0x10] sm:$0xff]  ;;  %v5464_v49 = vld [vmem:[%s8116_s1 + $0x860] ss:$8 sps:$4 sm:$0xff]  }
  0x39   : > { %3930 = vmatprep.subr.bf16.mxu0 %v5395_v50  ;;  %v5469_v50 = vld [vmem:[%s8116_s1 + $0x174] ss:$8 sps:$4 sm:$0xff]  }
  0x3b   : > { %3644 = vmatpush1.bf16.msra.mxu1 %v5397_v53  ;;  %v6604_v53 = vrot.slane %v6594_v48, %v6434_v51 }
  0x3c   : > { %3931 = vmatpush1.bf16.msra.mxu0 %v5398_v55  ;;  %3645 = vmatprep.subr.bf16.mxu1 %v5399_v57  ;;  %v5470_v57 = vld [vmem:[%s8116_s1 + $0x870] ss:$8 sps:$4 sm:$0xff]  }
  0x3d   : > { %3932 = vmatprep.subr.bf16.mxu0 %v5401_v58  ;;  %v935_v55 = vcombine.high %v6604_v53, %v6604_v53  ;;  %v5475_v58 = vld [vmem:[%s8116_s1 + $0x184] ss:$8 sps:$4 sm:$0xff]  }
  0x3f   : > { %3646 = vmatpush1.bf16.msra.mxu1 %v5403_v63  ;;  %v6621_v59 = vrot.slane %v935_v55, %v6434_v51  ;;  %v5481_v63 = vld [vmem:[%s8116_s1 + $0x194] ss:$8 sps:$4 sm:$0xff]   ;;  %v5547_v55 = vld [vmem:[%s8116_s1 + $0x244] ss:$8 sps:$4 sm:$0xff]  }
  0x40   : > { %3933 = vmatpush1.bf16.msra.mxu0 %v5404_v0  ;;  %3647 = vmatprep.subr.bf16.mxu1 %v5405_v1  ;;  %v5484_v0 = vld [vmem:[%s8116_s1 + $0x894] ss:$8 sps:$4 sm:$0xff]   ;;  %v5479_v1 = vld [vmem:[%s8116_s1 + $0x190] ss:$8 sps:$4 sm:$0xff]  }
  0x41   : > { %3934 = vmatprep.subr.bf16.mxu0 %v5407_v2  ;;  %v5482_v2 = vld [vmem:[%s8116_s1 + $0x890] ss:$8 sps:$4 sm:$0xff]  }
  0x43   : > { %3648 = vmatpush1.bf16.msra.mxu1 %v5409_v5  ;;  %v5490_v5 = vld [vmem:[%s8116_s1 + $0x8a4] ss:$8 sps:$4 sm:$0xff]  }
  0x44   : > { %3935 = vmatpush1.bf16.msra.mxu0 %v5410_v6  ;;  %3649 = vmatprep.subr.bf16.mxu1 %v5411_v7  ;;  %v5485_v6 = vld [vmem:[%s8116_s1 + $0x1a0] ss:$8 sps:$4 sm:$0xff]  }
  0x45   : > { %3936 = vmatprep.subr.bf16.mxu0 %v5413_v8  ;;  %v5488_v7 = vld [vmem:[%s8116_s1 + $0x8a0] ss:$8 sps:$4 sm:$0xff]   ;;  %v5493_v8 = vld [vmem:[%s8116_s1 + $0x1b4] ss:$8 sps:$4 sm:$0xff]  }
  0x47   : > { %3650 = vmatpush1.bf16.msra.mxu1 %v5415_v10  ;;  %v5491_v10 = vld [vmem:[%s8116_s1 + $0x1b0] ss:$8 sps:$4 sm:$0xff]  }
  0x48   : > { %3937 = vmatpush1.bf16.msra.mxu0 %v5416_v11  ;;  %3651 = vmatprep.subr.bf16.mxu1 %v5417_v12  ;;  %v5494_v11 = vld [vmem:[%s8116_s1 + $0x8b0] ss:$8 sps:$4 sm:$0xff]   ;;  %v5499_v12 = vld [vmem:[%s8116_s1 + $0x1c4] ss:$8 sps:$4 sm:$0xff]  }
  0x49   : > { %3938 = vmatprep.subr.bf16.mxu0 %v5419_v13  ;;  %v5502_v13 = vld [vmem:[%s8116_s1 + $0x8c4] ss:$8 sps:$4 sm:$0xff]  }
  0x4b   : > { %3652 = vmatpush1.bf16.msra.mxu1 %v5421_v15  ;;  %v5497_v15 = vld [vmem:[%s8116_s1 + $0x1c0] ss:$8 sps:$4 sm:$0xff]  }
  0x4c   : > { %3939 = vmatpush1.bf16.msra.mxu0 %v5422_v16  ;;  %3662 = vmatprep.subr.bf16.mxu1 %v5426_v17  ;;  %v5500_v16 = vld [vmem:[%s8116_s1 + $0x8c0] ss:$8 sps:$4 sm:$0xff]   ;;  %v5505_v17 = vld [vmem:[%s8116_s1 + $0x1d4] ss:$8 sps:$4 sm:$0xff]  }
  0x4d   : > { %3949 = vmatprep.subr.bf16.mxu0 %v5430_v18  ;;  %v5508_v18 = vld [vmem:[%s8116_s1 + $0x8d4] ss:$8 sps:$4 sm:$0xff]  }
  0x4e   : > { %3654 = vmatmul.mubr.bf16.vlgmr.msra.gmra.mrb[0].mxu1 %v6513_v19 }
  0x4f   : > { %3941 = vmatmul.mubr.bf16.vlgmr.msra.gmra.mrb[0].mxu0 %v917_v20  ;;  %3663 = vmatpush1.bf16.msra.mxu1 %v5424_v21  ;;  %v5503_v20 = vld [vmem:[%s8116_s1 + $0x1d0] ss:$8 sps:$4 sm:$0xff]  }
  0x50   : > { %3950 = vmatpush1.bf16.msra.mxu0 %v5428_v22  ;;  %3664 = vmatprep.subr.bf16.mxu1 %v5433_v23  ;;  %v5506_v21 = vld [vmem:[%s8116_s1 + $0x8d0] ss:$8 sps:$4 sm:$0xff]   ;;  %v5511_v22 = vld [vmem:[%s8116_s1 + $0x1e4] ss:$8 sps:$4 sm:$0xff]  }
  0x51   : > { %3951 = vmatprep.subr.bf16.mxu0 %v5436_v24  ;;  %3694 = vmatprep.mubr.bf16.mxu1 %v869_v25  ;;  %v5514_v23 = vld [vmem:[%s8116_s1 + $0x8e4] ss:$8 sps:$4 sm:$0xff]   ;;  %v822_v24 = vcombine.high %v6437_v52, %v6437_v52  ;;  %v5509_v25 = vld [vmem:[%s8116_s1 + $0x1e0] ss:$8 sps:$4 sm:$0xff]   ;;  %v5520_v52 = vld [vmem:[%s8116_s1 + $0x8f4] ss:$8 sps:$4 sm:$0xff]  }
  0x52   : > { %3981 = vmatprep.mubr.bf16.mxu0 %v6621_v59 }
  0x53   : > { %3665 = vmatpush1.bf16.msra.mxu1 %v5431_v26  ;;  %v5512_v26 = vld [vmem:[%s8116_s1 + $0x8e0] ss:$8 sps:$4 sm:$0xff]  }
  0x54   : > { %3952 = vmatpush1.bf16.msra.mxu0 %v5434_v27  ;;  %3666 = vmatprep.subr.bf16.mxu1 %v5439_v28  ;;  %v5517_v27 = vld [vmem:[%s8116_s1 + $0x1f4] ss:$8 sps:$4 sm:$0xff]   ;;  %v6714_v28 = vrot.slane %v822_v24, %v6434_v51  ;;  %v5587_v24 = vld [vmem:[%s8116_s1 + $0x2b0] ss:$8 sps:$4 sm:$0xff]  }
  0x55   : > { %3953 = vmatprep.subr.bf16.mxu0 %v5442_v29  ;;  %v5515_v29 = vld [vmem:[%s8116_s1 + $0x1f0] ss:$8 sps:$4 sm:$0xff]  }
  0x57   : > { %3667 = vmatpush1.bf16.msra.mxu1 %v5437_v30  ;;  %v5518_v30 = vld [vmem:[%s8116_s1 + $0x8f0] ss:$8 sps:$4 sm:$0xff]  }
  0x58   : > { %3954 = vmatpush1.bf16.msra.mxu0 %v5440_v31  ;;  %3668 = vmatprep.subr.bf16.mxu1 %v5445_v32  ;;  %v5523_v31 = vld [vmem:[%s8116_s1 + $0x204] ss:$8 sps:$4 sm:$0xff]  }
  0x59   : > { %3955 = vmatprep.subr.bf16.mxu0 %v5448_v33  ;;  %v5526_v32 = vld [vmem:[%s8116_s1 + $0x904] ss:$8 sps:$4 sm:$0xff]   ;;  %v838_v33 = vcombine.high %v6714_v28, %v6714_v28 }
  0x5b   : > { %3669 = vmatpush1.bf16.msra.mxu1 %v5443_v34  ;;  %v867_v34 = vcombine.high %v6513_v19, %v6513_v19  ;;  %v5532_v19 = vld [vmem:[%s8116_s1 + $0x914] ss:$8 sps:$4 sm:$0xff]  }
  0x5c   : > { %3956 = vmatpush1.bf16.msra.mxu0 %v5446_v35  ;;  %3670 = vmatprep.subr.bf16.mxu1 %v5451_v36  ;;  %v5521_v35 = vld [vmem:[%s8116_s1 + $0x200] ss:$8 sps:$4 sm:$0xff]   ;;  %v6737_v36 = vrot.slane %v6604_v53, %v6434_v51  ;;  %v5539_v53 = vld [vmem:[%s8116_s1 + $0x230] ss:$8 sps:$4 sm:$0xff]  }
  0x5d   : > { %3957 = vmatprep.subr.bf16.mxu0 %v5454_v37  ;;  %v5524_v37 = vld [vmem:[%s8116_s1 + $0x900] ss:$8 sps:$4 sm:$0xff]  }
  0x5f   : > { %3671 = vmatpush1.bf16.msra.mxu1 %v5449_v38  ;;  %v5529_v38 = vld [vmem:[%s8116_s1 + $0x214] ss:$8 sps:$4 sm:$0xff]  }
  0x60   : > { %3958 = vmatpush1.bf16.msra.mxu0 %v5452_v39  ;;  %3672 = vmatprep.subr.bf16.mxu1 %v5457_v40  ;;  %v6749_v39 = vrot.slane %v838_v33, %v6434_v51  ;;  %v967_v40 = vcombine.high %v6621_v59, %v6621_v59  ;;  %v5553_v59 = vld [vmem:[%s8116_s1 + $0x254] ss:$8 sps:$4 sm:$0xff]   ;;  %v5602_v33 = vld [vmem:[%s8116_s1 + $0x9d0] ss:$8 sps:$4 sm:$0xff]  }
  0x61   : > { %3959 = vmatprep.subr.bf16.mxu0 %v5460_v41  ;;  %v5527_v41 = vld [vmem:[%s8116_s1 + $0x210] ss:$8 sps:$4 sm:$0xff]  }
  0x63   : > { %3673 = vmatpush1.bf16.msra.mxu1 %v5455_v42  ;;  %v5530_v42 = vld [vmem:[%s8116_s1 + $0x910] ss:$8 sps:$4 sm:$0xff]  }
  0x64   : > { %3960 = vmatpush1.bf16.msra.mxu0 %v5458_v43  ;;  %3674 = vmatprep.subr.bf16.mxu1 %v5463_v44  ;;  %v5535_v43 = vld [vmem:[%s8116_s1 + $0x224] ss:$8 sps:$4 sm:$0xff]  }
  0x65   : > { %3961 = vmatprep.subr.bf16.mxu0 %v5466_v45  ;;  %v5538_v44 = vld [vmem:[%s8116_s1 + $0x924] ss:$8 sps:$4 sm:$0xff]   ;;  %v5533_v45 = vld [vmem:[%s8116_s1 + $0x220] ss:$8 sps:$4 sm:$0xff]  }
  0x67   : > { %3675 = vmatpush1.bf16.msra.mxu1 %v5461_v47  ;;  %v5536_v47 = vld [vmem:[%s8116_s1 + $0x920] ss:$8 sps:$4 sm:$0xff]  }
  0x68   : > { %3962 = vmatpush1.bf16.msra.mxu0 %v5464_v49  ;;  %3676 = vmatprep.subr.bf16.mxu1 %v5469_v50  ;;  %v5541_v49 = vld [vmem:[%s8116_s1 + $0x234] ss:$8 sps:$4 sm:$0xff]  }
  0x69   : > { %3963 = vmatprep.subr.bf16.mxu0 %v5472_v54  ;;  %v5544_v50 = vld [vmem:[%s8116_s1 + $0x934] ss:$8 sps:$4 sm:$0xff]   ;;  %v5542_v54 = vld [vmem:[%s8116_s1 + $0x930] ss:$8 sps:$4 sm:$0xff]  }
  0x6b   : > { %3677 = vmatpush1.bf16.msra.mxu1 %v5467_v56  ;;  %v5550_v56 = vld [vmem:[%s8116_s1 + $0x944] ss:$8 sps:$4 sm:$0xff]  }
  0x6c   : > { %3964 = vmatpush1.bf16.msra.mxu0 %v5470_v57  ;;  %3678 = vmatprep.subr.bf16.mxu1 %v5475_v58  ;;  %v5545_v57 = vld [vmem:[%s8116_s1 + $0x240] ss:$8 sps:$4 sm:$0xff]  }
  0x6d   : > { %3965 = vmatprep.subr.bf16.mxu0 %v5478_v60  ;;  %v5548_v58 = vld [vmem:[%s8116_s1 + $0x940] ss:$8 sps:$4 sm:$0xff]   ;;  %v5556_v60 = vld [vmem:[%s8116_s1 + $0x954] ss:$8 sps:$4 sm:$0xff]  }
  0x6f   : > { %3679 = vmatpush1.bf16.msra.mxu1 %v5473_v61  ;;  %v5551_v61 = vld [vmem:[%s8116_s1 + $0x250] ss:$8 sps:$4 sm:$0xff]  }
  0x70   : > { %3966 = vmatpush1.bf16.msra.mxu0 %v5476_v62  ;;  %3680 = vmatprep.subr.bf16.mxu1 %v5481_v63  ;;  %v5554_v62 = vld [vmem:[%s8116_s1 + $0x950] ss:$8 sps:$4 sm:$0xff]   ;;  %v5559_v63 = vld [vmem:[%s8116_s1 + $0x264] ss:$8 sps:$4 sm:$0xff]  }
  0x71   : > { %3967 = vmatprep.subr.bf16.mxu0 %v5484_v0  ;;  %v5562_v0 = vld [vmem:[%s8116_s1 + $0x964] ss:$8 sps:$4 sm:$0xff]  }
  0x73   : > { %3681 = vmatpush1.bf16.msra.mxu1 %v5479_v1  ;;  %v5557_v1 = vld [vmem:[%s8116_s1 + $0x260] ss:$8 sps:$4 sm:$0xff]  }
  0x74   : > { %3968 = vmatpush1.bf16.msra.mxu0 %v5482_v2  ;;  %3682 = vmatprep.subr.bf16.mxu1 %v5487_v3  ;;  %v5560_v2 = vld [vmem:[%s8116_s1 + $0x960] ss:$8 sps:$4 sm:$0xff]   ;;  %v5565_v3 = vld [vmem:[%s8116_s1 + $0x274] ss:$8 sps:$4 sm:$0xff]  }
  0x75   : > { %3969 = vmatprep.subr.bf16.mxu0 %v5490_v5  ;;  %v5568_v5 = vld [vmem:[%s8116_s1 + $0x974] ss:$8 sps:$4 sm:$0xff]  }
  0x77   : > { %3683 = vmatpush1.bf16.msra.mxu1 %v5485_v6  ;;  %v5563_v6 = vld [vmem:[%s8116_s1 + $0x270] ss:$8 sps:$4 sm:$0xff]  }
  0x78   : > { %3970 = vmatpush1.bf16.msra.mxu0 %v5488_v7  ;;  %3684 = vmatprep.subr.bf16.mxu1 %v5493_v8  ;;  %v5566_v7 = vld [vmem:[%s8116_s1 + $0x970] ss:$8 sps:$4 sm:$0xff]   ;;  %v5571_v8 = vld [vmem:[%s8116_s1 + $0x284] ss:$8 sps:$4 sm:$0xff]  }
  0x79   : > { %3971 = vmatprep.subr.bf16.mxu0 %v5496_v9  ;;  %v5574_v9 = vld [vmem:[%s8116_s1 + $0x984] ss:$8 sps:$4 sm:$0xff]  }
  0x7b   : > { %3685 = vmatpush1.bf16.msra.mxu1 %v5491_v10  ;;  %v5569_v10 = vld [vmem:[%s8116_s1 + $0x280] ss:$8 sps:$4 sm:$0xff]  }
  0x7c   : > { %3972 = vmatpush1.bf16.msra.mxu0 %v5494_v11  ;;  %3686 = vmatprep.subr.bf16.mxu1 %v5499_v12  ;;  %v5572_v11 = vld [vmem:[%s8116_s1 + $0x980] ss:$8 sps:$4 sm:$0xff]   ;;  %v5577_v12 = vld [vmem:[%s8116_s1 + $0x294] ss:$8 sps:$4 sm:$0xff]  }
  0x7d   : > { %3973 = vmatprep.subr.bf16.mxu0 %v5502_v13  ;;  %v5580_v13 = vld [vmem:[%s8116_s1 + $0x994] ss:$8 sps:$4 sm:$0xff]  }
  0x7f   : > { %3687 = vmatpush1.bf16.msra.mxu1 %v5497_v15  ;;  %v5575_v15 = vld [vmem:[%s8116_s1 + $0x290] ss:$8 sps:$4 sm:$0xff]  }
  0x80   : > { %3974 = vmatpush1.bf16.msra.mxu0 %v5500_v16  ;;  %3688 = vmatprep.subr.bf16.mxu1 %v5505_v17  ;;  %v5578_v16 = vld [vmem:[%s8116_s1 + $0x990] ss:$8 sps:$4 sm:$0xff]   ;;  %v5583_v17 = vld [vmem:[%s8116_s1 + $0x2a4] ss:$8 sps:$4 sm:$0xff]  }
  0x81   : > { %3975 = vmatprep.subr.bf16.mxu0 %v5508_v18  ;;  %v5586_v18 = vld [vmem:[%s8116_s1 + $0x9a4] ss:$8 sps:$4 sm:$0xff]  }
  0x83   : > { %3689 = vmatpush1.bf16.msra.mxu1 %v5503_v20  ;;  %v5581_v20 = vld [vmem:[%s8116_s1 + $0x2a0] ss:$8 sps:$4 sm:$0xff]  }
  0x84   : > { %3976 = vmatpush1.bf16.msra.mxu0 %v5506_v21  ;;  %3690 = vmatprep.subr.bf16.mxu1 %v5511_v22  ;;  %v5584_v21 = vld [vmem:[%s8116_s1 + $0x9a0] ss:$8 sps:$4 sm:$0xff]   ;;  %v5589_v22 = vld [vmem:[%s8116_s1 + $0x2b4] ss:$8 sps:$4 sm:$0xff]  }
  0x85   : > { %3977 = vmatprep.subr.bf16.mxu0 %v5514_v23  ;;  %v5592_v23 = vld [vmem:[%s8116_s1 + $0x9b4] ss:$8 sps:$4 sm:$0xff]  }
  0x87   : > { %3691 = vmatpush1.bf16.msra.mxu1 %v5509_v25  ;;  %v5590_v25 = vld [vmem:[%s8116_s1 + $0x9b0] ss:$8 sps:$4 sm:$0xff]  }
  0x88   : > { %3978 = vmatpush1.bf16.msra.mxu0 %v5512_v26  ;;  %3692 = vmatprep.subr.bf16.mxu1 %v5517_v27  ;;  %v5595_v26 = vld [vmem:[%s8116_s1 + $0x2c4] ss:$8 sps:$4 sm:$0xff]  }
  0x89   : > { %3979 = vmatprep.subr.bf16.mxu0 %v5520_v52  ;;  %v5598_v27 = vld [vmem:[%s8116_s1 + $0x9c4] ss:$8 sps:$4 sm:$0xff]   ;;  %v5593_v52 = vld [vmem:[%s8116_s1 + $0x2c0] ss:$8 sps:$4 sm:$0xff]  }
  0x8b   : > { %3693 = vmatpush1.bf16.msra.mxu1 %v5515_v29  ;;  %v5596_v29 = vld [vmem:[%s8116_s1 + $0x9c0] ss:$8 sps:$4 sm:$0xff]  }
  0x8c   : > { %3980 = vmatpush1.bf16.msra.mxu0 %v5518_v30  ;;  %3703 = vmatprep.subr.bf16.mxu1 %v5523_v31  ;;  %v5601_v30 = vld [vmem:[%s8116_s1 + $0x2d4] ss:$8 sps:$4 sm:$0xff]  }
  0x8d   : > { %3990 = vmatprep.subr.bf16.mxu0 %v5526_v32  ;;  %v5604_v31 = vld [vmem:[%s8116_s1 + $0x9d4] ss:$8 sps:$4 sm:$0xff]   ;;  %v5599_v32 = vld [vmem:[%s8116_s1 + $0x2d0] ss:$8 sps:$4 sm:$0xff]  }
  0x8e   : > { %3695 = vmatmul.mubr.bf16.vlgmr.msra.gmra.mrb[0].mxu1 %v867_v34  ;;  %v5607_v34 = vld [vmem:[%s8116_s1 + $0x2e4] ss:$8 sps:$4 sm:$0xff]  }
  0x8f   : > { %3982 = vmatmul.mubr.bf16.vlgmr.msra.gmra.mrb[0].mxu0 %v6737_v36  ;;  %3704 = vmatpush1.bf16.msra.mxu1 %v5521_v35  ;;  %v5610_v35 = vld [vmem:[%s8116_s1 + $0x9e4] ss:$8 sps:$4 sm:$0xff]  }
  0x90   : > { %3991 = vmatpush1.bf16.msra.mxu0 %v5524_v37  ;;  %3705 = vmatprep.subr.bf16.mxu1 %v5529_v38  ;;  %v920_v37 = vcombine.high %v6594_v48, %v6594_v48  ;;  %v5605_v38 = vld [vmem:[%s8116_s1 + $0x2e0] ss:$8 sps:$4 sm:$0xff]   ;;  %v5616_v48 = vld [vmem:[%s8116_s1 + $0x9f4] ss:$8 sps:$4 sm:$0xff]  }
  0x91   : > { %3992 = vmatprep.subr.bf16.mxu0 %v5532_v19  ;;  %3735 = vmatprep.mubr.bf16.mxu1 %v6749_v39  ;;  %v5608_v19 = vld [vmem:[%s8116_s1 + $0x9e0] ss:$8 sps:$4 sm:$0xff]  }
  0x92   : > { %4022 = vmatprep.mubr.bf16.mxu0 %v967_v40  ;;  %v5613_v40 = vld [vmem:[%s8116_s1 + $0x2f4] ss:$8 sps:$4 sm:$0xff]  }
  0x93   : > { %3706 = vmatpush1.bf16.msra.mxu1 %v5527_v41  ;;  %v6926_v41 = vrot.slane %v920_v37, %v6434_v51  ;;  %v5686_v37 = vld [vmem:[%s8116_s1 + $0xab0] ss:$8 sps:$4 sm:$0xff]  }
  0x94   : > { %3993 = vmatpush1.bf16.msra.mxu0 %v5530_v42  ;;  %3707 = vmatprep.subr.bf16.mxu1 %v5535_v43  ;;  %v5611_v42 = vld [vmem:[%s8116_s1 + $0x2f0] ss:$8 sps:$4 sm:$0xff]  }
  0x95   : > { %3994 = vmatprep.subr.bf16.mxu0 %v5538_v44  ;;  %v5614_v43 = vld [vmem:[%s8116_s1 + $0x9f0] ss:$8 sps:$4 sm:$0xff]   ;;  %v5619_v44 = vld [vmem:[%s8116_s1 + $0x304] ss:$8 sps:$4 sm:$0xff]  }
  0x97   : > { %3708 = vmatpush1.bf16.msra.mxu1 %v5533_v45  ;;  %v5622_v45 = vld [vmem:[%s8116_s1 + $0xa04] ss:$8 sps:$4 sm:$0xff]  }
  0x98   : > { %3995 = vmatpush1.bf16.msra.mxu0 %v5536_v47  ;;  %3709 = vmatprep.subr.bf16.mxu1 %v5541_v49  ;;  %v936_v47 = vcombine.high %v6926_v41, %v6926_v41  ;;  %v5617_v49 = vld [vmem:[%s8116_s1 + $0x300] ss:$8 sps:$4 sm:$0xff]  }
  0x99   : > { %3996 = vmatprep.subr.bf16.mxu0 %v5544_v50  ;;  %v6947_v50 = vrot.slane %v6714_v28, %v6434_v51  ;;  %v5628_v28 = vld [vmem:[%s8116_s1 + $0xa14] ss:$8 sps:$4 sm:$0xff]  }
  0x9b   : > { %3710 = vmatpush1.bf16.msra.mxu1 %v5539_v53  ;;  %v965_v53 = vcombine.high %v6737_v36, %v6737_v36  ;;  %v6963_v36 = vrot.slane %v936_v47, %v6434_v51  ;;  %v5703_v47 = vld [vmem:[%s8116_s1 + $0x3e4] ss:$8 sps:$4 sm:$0xff]  }
  0x9c   : > { %3997 = vmatpush1.bf16.msra.mxu0 %v5542_v54  ;;  %3711 = vmatprep.subr.bf16.mxu1 %v5547_v55  ;;  %v5620_v54 = vld [vmem:[%s8116_s1 + $0xa00] ss:$8 sps:$4 sm:$0xff]   ;;  %v5625_v55 = vld [vmem:[%s8116_s1 + $0x314] ss:$8 sps:$4 sm:$0xff]  }
  0x9d   : > { %3998 = vmatprep.subr.bf16.mxu0 %v5550_v56  ;;  %v870_v56 = vcombine.high %v6749_v39, %v6749_v39  ;;  %v5631_v39 = vld [vmem:[%s8116_s1 + $0x324] ss:$8 sps:$4 sm:$0xff]  }
  0x9f   : > { %3712 = vmatpush1.bf16.msra.mxu1 %v5545_v57  ;;  %v5623_v57 = vld [vmem:[%s8116_s1 + $0x310] ss:$8 sps:$4 sm:$0xff]  }
  0xa0   : > { %3999 = vmatpush1.bf16.msra.mxu0 %v5548_v58  ;;  %3713 = vmatprep.subr.bf16.mxu1 %v5553_v59  ;;  %v5626_v58 = vld [vmem:[%s8116_s1 + $0xa10] ss:$8 sps:$4 sm:$0xff]   ;;  %v5634_v59 = vld [vmem:[%s8116_s1 + $0xa24] ss:$8 sps:$4 sm:$0xff]  }
  0xa1   : > { %4000 = vmatprep.subr.bf16.mxu0 %v5556_v60  ;;  %v5629_v60 = vld [vmem:[%s8116_s1 + $0x320] ss:$8 sps:$4 sm:$0xff]  }
  0xa3   : > { %3714 = vmatpush1.bf16.msra.mxu1 %v5551_v61  ;;  %v5632_v61 = vld [vmem:[%s8116_s1 + $0xa20] ss:$8 sps:$4 sm:$0xff]  }
  0xa4   : > { %4001 = vmatpush1.bf16.msra.mxu0 %v5554_v62  ;;  %3715 = vmatprep.subr.bf16.mxu1 %v5559_v63  ;;  %v5637_v62 = vld [vmem:[%s8116_s1 + $0x334] ss:$8 sps:$4 sm:$0xff]  }
  0xa5   : > { %4002 = vmatprep.subr.bf16.mxu0 %v5562_v0  ;;  %v5640_v63 = vld [vmem:[%s8116_s1 + $0xa34] ss:$8 sps:$4 sm:$0xff]   ;;  %v5635_v0 = vld [vmem:[%s8116_s1 + $0x330] ss:$8 sps:$4 sm:$0xff]  }
  0xa7   : > { %3716 = vmatpush1.bf16.msra.mxu1 %v5557_v1  ;;  %v5638_v1 = vld [vmem:[%s8116_s1 + $0xa30] ss:$8 sps:$4 sm:$0xff]  }
  0xa8   : > { %4003 = vmatpush1.bf16.msra.mxu0 %v5560_v2  ;;  %3717 = vmatprep.subr.bf16.mxu1 %v5565_v3  ;;  %v5643_v2 = vld [vmem:[%s8116_s1 + $0x344] ss:$8 sps:$4 sm:$0xff]  }
  0xa9   : > { %4004 = vmatprep.subr.bf16.mxu0 %v5568_v5  ;;  %v5646_v3 = vld [vmem:[%s8116_s1 + $0xa44] ss:$8 sps:$4 sm:$0xff]   ;;  %v5641_v5 = vld [vmem:[%s8116_s1 + $0x340] ss:$8 sps:$4 sm:$0xff]  }
  0xab   : > { %3718 = vmatpush1.bf16.msra.mxu1 %v5563_v6  ;;  %v5644_v6 = vld [vmem:[%s8116_s1 + $0xa40] ss:$8 sps:$4 sm:$0xff]  }
  0xac   : > { %4005 = vmatpush1.bf16.msra.mxu0 %v5566_v7  ;;  %3719 = vmatprep.subr.bf16.mxu1 %v5571_v8  ;;  %v5649_v7 = vld [vmem:[%s8116_s1 + $0x354] ss:$8 sps:$4 sm:$0xff]  }
  0xad   : > { %4006 = vmatprep.subr.bf16.mxu0 %v5574_v9  ;;  %v5652_v8 = vld [vmem:[%s8116_s1 + $0xa54] ss:$8 sps:$4 sm:$0xff]   ;;  %v5647_v9 = vld [vmem:[%s8116_s1 + $0x350] ss:$8 sps:$4 sm:$0xff]  }
  0xaf   : > { %3720 = vmatpush1.bf16.msra.mxu1 %v5569_v10  ;;  %v5650_v10 = vld [vmem:[%s8116_s1 + $0xa50] ss:$8 sps:$4 sm:$0xff]  }
  0xb0   : > { %4007 = vmatpush1.bf16.msra.mxu0 %v5572_v11  ;;  %3721 = vmatprep.subr.bf16.mxu1 %v5577_v12  ;;  %v5655_v11 = vld [vmem:[%s8116_s1 + $0x364] ss:$8 sps:$4 sm:$0xff]  }
  0xb1   : > { %4008 = vmatprep.subr.bf16.mxu0 %v5580_v13  ;;  %v5658_v12 = vld [vmem:[%s8116_s1 + $0xa64] ss:$8 sps:$4 sm:$0xff]   ;;  %v5653_v13 = vld [vmem:[%s8116_s1 + $0x360] ss:$8 sps:$4 sm:$0xff]  }
  0xb3   : > { %3722 = vmatpush1.bf16.msra.mxu1 %v5575_v15  ;;  %v5656_v15 = vld [vmem:[%s8116_s1 + $0xa60] ss:$8 sps:$4 sm:$0xff]  }
  0xb4   : > { %4009 = vmatpush1.bf16.msra.mxu0 %v5578_v16  ;;  %3723 = vmatprep.subr.bf16.mxu1 %v5583_v17  ;;  %v5661_v16 = vld [vmem:[%s8116_s1 + $0x374] ss:$8 sps:$4 sm:$0xff]  }
  0xb5   : > { %4010 = vmatprep.subr.bf16.mxu0 %v5586_v18  ;;  %v5664_v17 = vld [vmem:[%s8116_s1 + $0xa74] ss:$8 sps:$4 sm:$0xff]   ;;  %v5659_v18 = vld [vmem:[%s8116_s1 + $0x370] ss:$8 sps:$4 sm:$0xff]  }
  0xb7   : > { %3724 = vmatpush1.bf16.msra.mxu1 %v5581_v20  ;;  %v5662_v20 = vld [vmem:[%s8116_s1 + $0xa70] ss:$8 sps:$4 sm:$0xff]  }
  0xb8   : > { %4011 = vmatpush1.bf16.msra.mxu0 %v5584_v21  ;;  %3725 = vmatprep.subr.bf16.mxu1 %v5589_v22  ;;  %v5667_v21 = vld [vmem:[%s8116_s1 + $0x384] ss:$8 sps:$4 sm:$0xff]  }
  0xb9   : > { %4012 = vmatprep.subr.bf16.mxu0 %v5592_v23  ;;  %v5670_v22 = vld [vmem:[%s8116_s1 + $0xa84] ss:$8 sps:$4 sm:$0xff]   ;;  %v5665_v23 = vld [vmem:[%s8116_s1 + $0x380] ss:$8 sps:$4 sm:$0xff]  }
  0xbb   : > { %3726 = vmatpush1.bf16.msra.mxu1 %v5587_v24  ;;  %v5668_v24 = vld [vmem:[%s8116_s1 + $0xa80] ss:$8 sps:$4 sm:$0xff]  }
  0xbc   : > { %4013 = vmatpush1.bf16.msra.mxu0 %v5590_v25  ;;  %3727 = vmatprep.subr.bf16.mxu1 %v5595_v26  ;;  %v5673_v25 = vld [vmem:[%s8116_s1 + $0x394] ss:$8 sps:$4 sm:$0xff]  }
  0xbd   : > { %4014 = vmatprep.subr.bf16.mxu0 %v5598_v27  ;;  %v5676_v26 = vld [vmem:[%s8116_s1 + $0xa94] ss:$8 sps:$4 sm:$0xff]   ;;  %v5671_v27 = vld [vmem:[%s8116_s1 + $0x390] ss:$8 sps:$4 sm:$0xff]  }
  0xbf   : > { %3728 = vmatpush1.bf16.msra.mxu1 %v5593_v52  ;;  %v5674_v52 = vld [vmem:[%s8116_s1 + $0xa90] ss:$8 sps:$4 sm:$0xff]  }
  0xc0   : > { %4015 = vmatpush1.bf16.msra.mxu0 %v5596_v29  ;;  %3729 = vmatprep.subr.bf16.mxu1 %v5601_v30  ;;  %v5679_v29 = vld [vmem:[%s8116_s1 + $0x3a4] ss:$8 sps:$4 sm:$0xff]  }
  0xc1   : > { %4016 = vmatprep.subr.bf16.mxu0 %v5604_v31  ;;  %v5682_v30 = vld [vmem:[%s8116_s1 + $0xaa4] ss:$8 sps:$4 sm:$0xff]   ;;  %v5677_v31 = vld [vmem:[%s8116_s1 + $0x3a0] ss:$8 sps:$4 sm:$0xff]  }
  0xc3   : > { %3730 = vmatpush1.bf16.msra.mxu1 %v5599_v32  ;;  %v5680_v32 = vld [vmem:[%s8116_s1 + $0xaa0] ss:$8 sps:$4 sm:$0xff]  }
  0xc4   : > { %4017 = vmatpush1.bf16.msra.mxu0 %v5602_v33  ;;  %3731 = vmatprep.subr.bf16.mxu1 %v5607_v34  ;;  %v5685_v33 = vld [vmem:[%s8116_s1 + $0x3b4] ss:$8 sps:$4 sm:$0xff]  }
  0xc5   : > { %4018 = vmatprep.subr.bf16.mxu0 %v5610_v35  ;;  %v5688_v34 = vld [vmem:[%s8116_s1 + $0xab4] ss:$8 sps:$4 sm:$0xff]   ;;  %v5683_v35 = vld [vmem:[%s8116_s1 + $0x3b0] ss:$8 sps:$4 sm:$0xff]  }
  0xc7   : > { %3732 = vmatpush1.bf16.msra.mxu1 %v5605_v38  ;;  %v5691_v38 = vld [vmem:[%s8116_s1 + $0x3c4] ss:$8 sps:$4 sm:$0xff]  }
  0xc8   : > { %4019 = vmatpush1.bf16.msra.mxu0 %v5608_v19  ;;  %3733 = vmatprep.subr.bf16.mxu1 %v5613_v40  ;;  %v5694_v19 = vld [vmem:[%s8116_s1 + $0xac4] ss:$8 sps:$4 sm:$0xff]   ;;  %v5689_v40 = vld [vmem:[%s8116_s1 + $0x3c0] ss:$8 sps:$4 sm:$0xff]  }
  0xc9   : > { %4020 = vmatprep.subr.bf16.mxu0 %v5616_v48  ;;  %v5692_v48 = vld [vmem:[%s8116_s1 + $0xac0] ss:$8 sps:$4 sm:$0xff]  }
  0xcb   : > { %3734 = vmatpush1.bf16.msra.mxu1 %v5611_v42  ;;  %v5697_v42 = vld [vmem:[%s8116_s1 + $0x3d4] ss:$8 sps:$4 sm:$0xff]  }
  0xcc   : > { %4021 = vmatpush1.bf16.msra.mxu0 %v5614_v43  ;;  %3744 = vmatprep.subr.bf16.mxu1 %v5619_v44  ;;  %v5700_v43 = vld [vmem:[%s8116_s1 + $0xad4] ss:$8 sps:$4 sm:$0xff]   ;;  %v5695_v44 = vld [vmem:[%s8116_s1 + $0x3d0] ss:$8 sps:$4 sm:$0xff]  }
  0xcd   : > { %4031 = vmatprep.subr.bf16.mxu0 %v5622_v45  ;;  %v5698_v45 = vld [vmem:[%s8116_s1 + $0xad0] ss:$8 sps:$4 sm:$0xff]  }
  0xce   : > { %3736 = vmatmul.mubr.bf16.vlgmr.msra.gmra.mrb[0].mxu1 %v6947_v50 }
  0xcf   : > { %4023 = vmatmul.mubr.bf16.vlgmr.msra.gmra.mrb[0].mxu0 %v965_v53  ;;  %3745 = vmatpush1.bf16.msra.mxu1 %v5617_v49  ;;  %v5706_v49 = vld [vmem:[%s8116_s1 + $0xae4] ss:$8 sps:$4 sm:$0xff]   ;;  %v5701_v53 = vld [vmem:[%s8116_s1 + $0x3e0] ss:$8 sps:$4 sm:$0xff]  }
  0xd0   : > { %4032 = vmatpush1.bf16.msra.mxu0 %v5620_v54  ;;  %3746 = vmatprep.subr.bf16.mxu1 %v5625_v55  ;;  %v5704_v54 = vld [vmem:[%s8116_s1 + $0xae0] ss:$8 sps:$4 sm:$0xff]   ;;  %v5709_v55 = vld [vmem:[%s8116_s1 + $0x3f4] ss:$8 sps:$4 sm:$0xff]  }
  0xd1   : > { %4033 = vmatprep.subr.bf16.mxu0 %v5628_v28  ;;  %3776 = vmatprep.mubr.bf16.mxu1 %v870_v56  ;;  %v5712_v28 = vld [vmem:[%s8116_s1 + $0xaf4] ss:$8 sps:$4 sm:$0xff]   ;;  %v7136_v56 = vld.sshfl [vmem:[%s6431_s22 + $0x8] sm:$0xff pattern:$0x75316420] }
  0xd2   : > { %4063 = vmatprep.mubr.bf16.mxu0 %v6963_v36 }
  0xd3   : > { %3747 = vmatpush1.bf16.msra.mxu1 %v5623_v57  ;;  %v5707_v57 = vld [vmem:[%s8116_s1 + $0x3f0] ss:$8 sps:$4 sm:$0xff]  }
  0xd4   : > { %4034 = vmatpush1.bf16.msra.mxu0 %v5626_v58  ;;  %3748 = vmatprep.subr.bf16.mxu1 %v5631_v39  ;;  %v5710_v58 = vld [vmem:[%s8116_s1 + $0xaf0] ss:$8 sps:$4 sm:$0xff]   ;;  %v5715_v39 = vld [vmem:[%s8116_s1 + $0x404] ss:$8 sps:$4 sm:$0xff]  }
  0xd5   : > { %4035 = vmatprep.subr.bf16.mxu0 %v5634_v59  ;;  %v5719_v59 = vld [vmem:[%s8116_s1 + $0xb04] ss:$8 sps:$4 sm:$0xff]  }
  0xd7   : > { %3749 = vmatpush1.bf16.msra.mxu1 %v5629_v60  ;;  %v886_v60 = vcombine.high %v7136_v56, %v7136_v56 }
  0xd8   : > { %4036 = vmatpush1.bf16.msra.mxu0 %v5632_v61  ;;  %3750 = vmatprep.subr.bf16.mxu1 %v5637_v62  ;;  %v5713_v61 = vld [vmem:[%s8116_s1 + $0x400] ss:$8 sps:$4 sm:$0xff]   ;;  %v868_v62 = vcombine.high %v6947_v50, %v6947_v50  ;;  %v5725_v50 = vld [vmem:[%s8116_s1 + $0xb14] ss:$8 sps:$4 sm:$0xff]  }
  0xd9   : > { %4037 = vmatprep.subr.bf16.mxu0 %v5640_v63  ;;  %v7159_v63 = vrot.slane %v6926_v41, %v6434_v51  ;;  %v968_v41 = vcombine.high %v6963_v36, %v6963_v36  ;;  %v5731_v36 = vld [vmem:[%s8116_s1 + $0xb24] ss:$8 sps:$4 sm:$0xff]  }
  0xdb   : > { %3751 = vmatpush1.bf16.msra.mxu1 %v5635_v0  ;;  %v5717_v0 = vld [vmem:[%s8116_s1 + $0xb00] ss:$8 sps:$4 sm:$0xff]  }
  0xdc   : > { %4038 = vmatpush1.bf16.msra.mxu0 %v5638_v1  ;;  %3752 = vmatprep.subr.bf16.mxu1 %v5643_v2  ;;  %v5722_v1 = vld [vmem:[%s8116_s1 + $0x414] ss:$8 sps:$4 sm:$0xff]   ;;  %v7171_v2 = vrot.slane %v886_v60, %v6434_v51  ;;  %v5800_v60 = vld [vmem:[%s8116_s1 + $0x4e4] ss:$8 sps:$4 sm:$0xff]  }
  0xdd   : > { %4039 = vmatprep.subr.bf16.mxu0 %v5646_v3  ;;  %v5720_v3 = vld [vmem:[%s8116_s1 + $0x410] ss:$8 sps:$4 sm:$0xff]  }
  0xdf   : > { %3753 = vmatpush1.bf16.msra.mxu1 %v5641_v5  ;;  %v5723_v5 = vld [vmem:[%s8116_s1 + $0xb10] ss:$8 sps:$4 sm:$0xff]  }
  0xe0   : > { %4040 = vmatpush1.bf16.msra.mxu0 %v5644_v6  ;;  %3754 = vmatprep.subr.bf16.mxu1 %v5649_v7  ;;  %v5728_v6 = vld [vmem:[%s8116_s1 + $0x424] ss:$8 sps:$4 sm:$0xff]   ;;  %v5726_v7 = vld [vmem:[%s8116_s1 + $0x420] ss:$8 sps:$4 sm:$0xff]  }
  0xe1   : > { %4041 = vmatprep.subr.bf16.mxu0 %v5652_v8  ;;  %v5729_v8 = vld [vmem:[%s8116_s1 + $0xb20] ss:$8 sps:$4 sm:$0xff]  }
  0xe3   : > { %3755 = vmatpush1.bf16.msra.mxu1 %v5647_v9  ;;  %v5734_v9 = vld [vmem:[%s8116_s1 + $0x434] ss:$8 sps:$4 sm:$0xff]  }
  0xe4   : > { %4042 = vmatpush1.bf16.msra.mxu0 %v5650_v10  ;;  %3756 = vmatprep.subr.bf16.mxu1 %v5655_v11  ;;  %v5737_v10 = vld [vmem:[%s8116_s1 + $0xb34] ss:$8 sps:$4 sm:$0xff]   ;;  %v5732_v11 = vld [vmem:[%s8116_s1 + $0x430] ss:$8 sps:$4 sm:$0xff]  }
  0xe5   : > { %4043 = vmatprep.subr.bf16.mxu0 %v5658_v12  ;;  %v5735_v12 = vld [vmem:[%s8116_s1 + $0xb30] ss:$8 sps:$4 sm:$0xff]  }
  0xe7   : > { %3757 = vmatpush1.bf16.msra.mxu1 %v5653_v13  ;;  %v5740_v13 = vld [vmem:[%s8116_s1 + $0x444] ss:$8 sps:$4 sm:$0xff]  }
  0xe8   : > { %4044 = vmatpush1.bf16.msra.mxu0 %v5656_v15  ;;  %3758 = vmatprep.subr.bf16.mxu1 %v5661_v16  ;;  %v5743_v15 = vld [vmem:[%s8116_s1 + $0xb44] ss:$8 sps:$4 sm:$0xff]   ;;  %v5738_v16 = vld [vmem:[%s8116_s1 + $0x440] ss:$8 sps:$4 sm:$0xff]  }
  0xe9   : > { %4045 = vmatprep.subr.bf16.mxu0 %v5664_v17  ;;  %v5741_v17 = vld [vmem:[%s8116_s1 + $0xb40] ss:$8 sps:$4 sm:$0xff]  }
  0xeb   : > { %3759 = vmatpush1.bf16.msra.mxu1 %v5659_v18  ;;  %v5746_v18 = vld [vmem:[%s8116_s1 + $0x454] ss:$8 sps:$4 sm:$0xff]  }
  0xec   : > { %4046 = vmatpush1.bf16.msra.mxu0 %v5662_v20  ;;  %3760 = vmatprep.subr.bf16.mxu1 %v5667_v21  ;;  %v5749_v20 = vld [vmem:[%s8116_s1 + $0xb54] ss:$8 sps:$4 sm:$0xff]   ;;  %v5744_v21 = vld [vmem:[%s8116_s1 + $0x450] ss:$8 sps:$4 sm:$0xff]  }
  0xed   : > { %4047 = vmatprep.subr.bf16.mxu0 %v5670_v22  ;;  %v5747_v22 = vld [vmem:[%s8116_s1 + $0xb50] ss:$8 sps:$4 sm:$0xff]  }
  0xef   : > { %3761 = vmatpush1.bf16.msra.mxu1 %v5665_v23  ;;  %v5752_v23 = vld [vmem:[%s8116_s1 + $0x464] ss:$8 sps:$4 sm:$0xff]  }
  0xf0   : > { %4048 = vmatpush1.bf16.msra.mxu0 %v5668_v24  ;;  %3762 = vmatprep.subr.bf16.mxu1 %v5673_v25  ;;  %v5755_v24 = vld [vmem:[%s8116_s1 + $0xb64] ss:$8 sps:$4 sm:$0xff]   ;;  %v5750_v25 = vld [vmem:[%s8116_s1 + $0x460] ss:$8 sps:$4 sm:$0xff]  }
  0xf1   : > { %4049 = vmatprep.subr.bf16.mxu0 %v5676_v26  ;;  %v5753_v26 = vld [vmem:[%s8116_s1 + $0xb60] ss:$8 sps:$4 sm:$0xff]  }
  0xf3   : > { %3763 = vmatpush1.bf16.msra.mxu1 %v5671_v27  ;;  %v5758_v27 = vld [vmem:[%s8116_s1 + $0x474] ss:$8 sps:$4 sm:$0xff]  }
  0xf4   : > { %4050 = vmatpush1.bf16.msra.mxu0 %v5674_v52  ;;  %3764 = vmatprep.subr.bf16.mxu1 %v5679_v29  ;;  %v5761_v52 = vld [vmem:[%s8116_s1 + $0xb74] ss:$8 sps:$4 sm:$0xff]   ;;  %v5756_v29 = vld [vmem:[%s8116_s1 + $0x470] ss:$8 sps:$4 sm:$0xff]  }
  0xf5   : > { %4051 = vmatprep.subr.bf16.mxu0 %v5682_v30  ;;  %v5759_v30 = vld [vmem:[%s8116_s1 + $0xb70] ss:$8 sps:$4 sm:$0xff]  }
  0xf7   : > { %3765 = vmatpush1.bf16.msra.mxu1 %v5677_v31  ;;  %v5764_v31 = vld [vmem:[%s8116_s1 + $0x484] ss:$8 sps:$4 sm:$0xff]  }
  0xf8   : > { %4052 = vmatpush1.bf16.msra.mxu0 %v5680_v32  ;;  %3766 = vmatprep.subr.bf16.mxu1 %v5685_v33  ;;  %v5767_v32 = vld [vmem:[%s8116_s1 + $0xb84] ss:$8 sps:$4 sm:$0xff]   ;;  %v5762_v33 = vld [vmem:[%s8116_s1 + $0x480] ss:$8 sps:$4 sm:$0xff]  }
  0xf9   : > { %4053 = vmatprep.subr.bf16.mxu0 %v5688_v34  ;;  %v5765_v34 = vld [vmem:[%s8116_s1 + $0xb80] ss:$8 sps:$4 sm:$0xff]  }
  0xfb   : > { %3767 = vmatpush1.bf16.msra.mxu1 %v5683_v35  ;;  %v5770_v35 = vld [vmem:[%s8116_s1 + $0x494] ss:$8 sps:$4 sm:$0xff]  }
  0xfc   : > { %4054 = vmatpush1.bf16.msra.mxu0 %v5686_v37  ;;  %3768 = vmatprep.subr.bf16.mxu1 %v5691_v38  ;;  %v5773_v37 = vld [vmem:[%s8116_s1 + $0xb94] ss:$8 sps:$4 sm:$0xff]   ;;  %v5768_v38 = vld [vmem:[%s8116_s1 + $0x490] ss:$8 sps:$4 sm:$0xff]  }
  0xfd   : > { %4055 = vmatprep.subr.bf16.mxu0 %v5694_v19  ;;  %v5771_v19 = vld [vmem:[%s8116_s1 + $0xb90] ss:$8 sps:$4 sm:$0xff]  }
  0xff   : > { %3769 = vmatpush1.bf16.msra.mxu1 %v5689_v40  ;;  %v5776_v40 = vld [vmem:[%s8116_s1 + $0x4a4] ss:$8 sps:$4 sm:$0xff]  }
 0x100   : > { %4056 = vmatpush1.bf16.msra.mxu0 %v5692_v48  ;;  %3770 = vmatprep.subr.bf16.mxu1 %v5697_v42  ;;  %v5779_v48 = vld [vmem:[%s8116_s1 + $0xba4] ss:$8 sps:$4 sm:$0xff]   ;;  %v5774_v42 = vld [vmem:[%s8116_s1 + $0x4a0] ss:$8 sps:$4 sm:$0xff]  }
 0x101   : > { %4057 = vmatprep.subr.bf16.mxu0 %v5700_v43  ;;  %v5777_v43 = vld [vmem:[%s8116_s1 + $0xba0] ss:$8 sps:$4 sm:$0xff]  }
 0x103   : > { %3771 = vmatpush1.bf16.msra.mxu1 %v5695_v44  ;;  %v5782_v44 = vld [vmem:[%s8116_s1 + $0x4b4] ss:$8 sps:$4 sm:$0xff]  }
 0x104   : > { %4058 = vmatpush1.bf16.msra.mxu0 %v5698_v45  ;;  %3772 = vmatprep.subr.bf16.mxu1 %v5703_v47  ;;  %v5785_v45 = vld [vmem:[%s8116_s1 + $0xbb4] ss:$8 sps:$4 sm:$0xff]   ;;  %v5780_v47 = vld [vmem:[%s8116_s1 + $0x4b0] ss:$8 sps:$4 sm:$0xff]  }
 0x105   : > { %4059 = vmatprep.subr.bf16.mxu0 %v5706_v49  ;;  %v5783_v49 = vld [vmem:[%s8116_s1 + $0xbb0] ss:$8 sps:$4 sm:$0xff]  }
 0x107   : > { %3773 = vmatpush1.bf16.msra.mxu1 %v5701_v53  ;;  %v5788_v53 = vld [vmem:[%s8116_s1 + $0x4c4] ss:$8 sps:$4 sm:$0xff]  }
 0x108   : > { %4060 = vmatpush1.bf16.msra.mxu0 %v5704_v54  ;;  %3774 = vmatprep.subr.bf16.mxu1 %v5709_v55  ;;  %v5791_v54 = vld [vmem:[%s8116_s1 + $0xbc4] ss:$8 sps:$4 sm:$0xff]   ;;  %v5786_v55 = vld [vmem:[%s8116_s1 + $0x4c0] ss:$8 sps:$4 sm:$0xff]  }
 0x109   : > { %4061 = vmatprep.subr.bf16.mxu0 %v5712_v28  ;;  %v5789_v28 = vld [vmem:[%s8116_s1 + $0xbc0] ss:$8 sps:$4 sm:$0xff]  }
 0x10b   : > { %3775 = vmatpush1.bf16.msra.mxu1 %v5707_v57  ;;  %v5794_v57 = vld [vmem:[%s8116_s1 + $0x4d4] ss:$8 sps:$4 sm:$0xff]  }
 0x10c   : > { %4062 = vmatpush1.bf16.msra.mxu0 %v5710_v58  ;;  %3785 = vmatprep.subr.bf16.mxu1 %v5715_v39  ;;  %v5797_v58 = vld [vmem:[%s8116_s1 + $0xbd4] ss:$8 sps:$4 sm:$0xff]   ;;  %v5792_v39 = vld [vmem:[%s8116_s1 + $0x4d0] ss:$8 sps:$4 sm:$0xff]  }
 0x10d   : > { %4072 = vmatprep.subr.bf16.mxu0 %v5719_v59  ;;  %v5795_v59 = vld [vmem:[%s8116_s1 + $0xbd0] ss:$8 sps:$4 sm:$0xff]  }
 0x10e   : > { %3777 = vmatmul.mubr.bf16.vlgmr.msra.gmra.mrb[0].mxu1 %v868_v62  ;;  %v7334_v62 = vld [vmem:[%s6431_s22 + $0x18] sm:$0xff]  ;;  %s294_s22 = sand.u32 1, %s6179_s28  }
 0x10f   : > { %4064 = vmatmul.mubr.bf16.vlgmr.msra.gmra.mrb[0].mxu0 %v7159_v63  ;;  %3786 = vmatpush1.bf16.msra.mxu1 %v5713_v61  ;;  %v5803_v61 = vld [vmem:[%s8116_s1 + $0xbe4] ss:$8 sps:$4 sm:$0xff]   ;;  %s295_s18 = scalar_lea.vmem [#allocation2], %s294_s22  ;;  %s4563_s9 = scalar_lea.sflag [#allocation3], %s294_s22 }
 0x110   : > { %4073 = vmatpush1.bf16.msra.mxu0 %v5717_v0  ;;  %3787 = vmatprep.subr.bf16.mxu1 %v5722_v1  ;;  %v5798_v0 = vld [vmem:[%s8116_s1 + $0x4e0] ss:$8 sps:$4 sm:$0xff]   ;;  %s4575_s19 = sshll.u32 %s295_s18, 4  ;;  %s8075_s19 = int_to_ptr.vmem [resolvable:$true] %s4575_s19 }
 0x111   : > { %4074 = vmatprep.subr.bf16.mxu0 %v5725_v50  ;;  %3817 = vmatprep.mubr.bf16.mxu1 %v7171_v2  ;;  %v5801_v1 = vld [vmem:[%s8116_s1 + $0xbe0] ss:$8 sps:$4 sm:$0xff]   ;;  %v5806_v50 = vld [vmem:[%s8116_s1 + $0x4f4] ss:$8 sps:$4 sm:$0xff]   ;;  %s6125_s23 = scalar_lea.vmem %s8075_s19, 16  ;;  %p6132_p0 = scmp.lt.s32.totalorder %s8075_s19, %s6130_s26 }
 0x112   : > { %4104 = vmatprep.mubr.bf16.mxu0 %v968_v41  ;;  %v5809_v41 = vld [vmem:[%s8116_s1 + $0xbf4] ss:$8 sps:$4 sm:$0xff]   ;;  %p6126_p11 = scmp.ne.s32.totalorder %s8075_s19, %s6125_s23  ;;  %p6133_p1 = scmp.lt.s32.totalorder %s6131_s10, %s6125_s23 }
 0x113   : > { %3788 = vmatpush1.bf16.msra.mxu1 %v5720_v3  ;;  %v7350_v3 = vrot.slane %v7334_v62, %v6434_v51 }
 0x114   : > { %4075 = vmatpush1.bf16.msra.mxu0 %v5723_v5  ;;  %3789 = vmatprep.subr.bf16.mxu1 %v5728_v6  ;;  %v5804_v5 = vld [vmem:[%s8116_s1 + $0x4f0] ss:$8 sps:$4 sm:$0xff]   ;;  %p6127_p12 = pnand %p6126_p11, %p6276_p5  ;;  %p6134_p2 = por %p6133_p1, %p6132_p0 }
 0x115   : > { %4076 = vmatprep.subr.bf16.mxu0 %v5731_v36  ;;  %v5807_v6 = vld [vmem:[%s8116_s1 + $0xbf0] ss:$8 sps:$4 sm:$0xff]   ;;  %v5812_v36 = vld [vmem:[%s8116_s1 + $0x504] ss:$8 sps:$4 sm:$0xff]  }
 0x116   : > { %p6128_p13 = pneg %p6127_p12 }
 0x117   : > { %3790 = vmatpush1.bf16.msra.mxu1 %v5726_v7  ;;  %v5815_v7 = vld [vmem:[%s8116_s1 + $0xc04] ss:$8 sps:$4 sm:$0xff]  }
 0x118   : > { %4077 = vmatpush1.bf16.msra.mxu0 %v5729_v8  ;;  %3791 = vmatprep.subr.bf16.mxu1 %v5734_v9  ;;  %v5810_v8 = vld [vmem:[%s8116_s1 + $0x500] ss:$8 sps:$4 sm:$0xff]   ;;  %p6135_p3 = pnand %p6134_p2, %p6128_p13 }
 0x119   : > { %4078 = vmatprep.subr.bf16.mxu0 %v5737_v10  ;;  %v5813_v9 = vld [vmem:[%s8116_s1 + $0xc00] ss:$8 sps:$4 sm:$0xff]   ;;  %v984_v10 = vcombine.high %v7350_v3, %v7350_v3 }
 0x11b   : > { %3792 = vmatpush1.bf16.msra.mxu1 %v5732_v11  ;;  %v7374_v11 = vrot.slane %v7136_v56, %v6434_v51  ;;  %v5816_v56 = vld [vmem:[%s8116_s1 + $0x510] ss:$8 sps:$4 sm:$0xff]  }
 0x11c   : > { %4079 = vmatpush1.bf16.msra.mxu0 %v5735_v12  ;;  %3793 = vmatprep.subr.bf16.mxu1 %v5740_v13  ;;  %v966_v12 = vcombine.high %v7159_v63, %v7159_v63  ;;  %v5818_v13 = vld [vmem:[%s8116_s1 + $0x514] ss:$8 sps:$4 sm:$0xff]   ;;  %v5819_v63 = vld [vmem:[%s8116_s1 + $0xc10] ss:$8 sps:$4 sm:$0xff]  }
 0x11d   : > { %4080 = vmatprep.subr.bf16.mxu0 %v5743_v15  ;;  %v5821_v15 = vld [vmem:[%s8116_s1 + $0xc14] ss:$8 sps:$4 sm:$0xff]  }
 0x11f   : > { %3794 = vmatpush1.bf16.msra.mxu1 %v5738_v16  ;;  %v918_v16 = vcombine.high %v7171_v2, %v7171_v2  ;;  %v5822_v2 = vld [vmem:[%s8116_s1 + $0x520] ss:$8 sps:$4 sm:$0xff]  }
 0x120   : > { %4081 = vmatpush1.bf16.msra.mxu0 %v5741_v17  ;;  %3795 = vmatprep.subr.bf16.mxu1 %v5746_v18  ;;  %v7393_v17 = vrot.slane %v984_v10, %v6434_v51  ;;  %v5824_v18 = vld [vmem:[%s8116_s1 + $0x524] ss:$8 sps:$4 sm:$0xff]  }
 0x121   : > { %4082 = vmatprep.subr.bf16.mxu0 %v5749_v20  ;;  %v5827_v20 = vld [vmem:[%s8116_s1 + $0xc24] ss:$8 sps:$4 sm:$0xff]  }
 0x122   : > { %v5899_v10 = vld [vmem:[%s8116_s1 + $0xce4] ss:$8 sps:$4 sm:$0xff]  }
 0x123   : > { %3796 = vmatpush1.bf16.msra.mxu1 %v5744_v21  ;;  %v5825_v21 = vld [vmem:[%s8116_s1 + $0xc20] ss:$8 sps:$4 sm:$0xff]  }
 0x124   : > { %4083 = vmatpush1.bf16.msra.mxu0 %v5747_v22  ;;  %3797 = vmatprep.subr.bf16.mxu1 %v5752_v23  ;;  %v5830_v22 = vld [vmem:[%s8116_s1 + $0x534] ss:$8 sps:$4 sm:$0xff]  }
 0x125   : > { %4084 = vmatprep.subr.bf16.mxu0 %v5755_v24  ;;  %v5833_v23 = vld [vmem:[%s8116_s1 + $0xc34] ss:$8 sps:$4 sm:$0xff]   ;;  %v5828_v24 = vld [vmem:[%s8116_s1 + $0x530] ss:$8 sps:$4 sm:$0xff]  }
 0x127   : > { %3798 = vmatpush1.bf16.msra.mxu1 %v5750_v25  ;;  %v5831_v25 = vld [vmem:[%s8116_s1 + $0xc30] ss:$8 sps:$4 sm:$0xff]  }
 0x128   : > { %4085 = vmatpush1.bf16.msra.mxu0 %v5753_v26  ;;  %3799 = vmatprep.subr.bf16.mxu1 %v5758_v27  ;;  %v5836_v26 = vld [vmem:[%s8116_s1 + $0x544] ss:$8 sps:$4 sm:$0xff]  }
 0x129   : > { %4086 = vmatprep.subr.bf16.mxu0 %v5761_v52  ;;  %v5839_v27 = vld [vmem:[%s8116_s1 + $0xc44] ss:$8 sps:$4 sm:$0xff]   ;;  %v5834_v52 = vld [vmem:[%s8116_s1 + $0x540] ss:$8 sps:$4 sm:$0xff]  }
 0x12b   : > { %3800 = vmatpush1.bf16.msra.mxu1 %v5756_v29  ;;  %v5837_v29 = vld [vmem:[%s8116_s1 + $0xc40] ss:$8 sps:$4 sm:$0xff]  }
 0x12c   : > { %4087 = vmatpush1.bf16.msra.mxu0 %v5759_v30  ;;  %3801 = vmatprep.subr.bf16.mxu1 %v5764_v31  ;;  %v5842_v30 = vld [vmem:[%s8116_s1 + $0x554] ss:$8 sps:$4 sm:$0xff]  }
 0x12d   : > { %4088 = vmatprep.subr.bf16.mxu0 %v5767_v32  ;;  %v5845_v31 = vld [vmem:[%s8116_s1 + $0xc54] ss:$8 sps:$4 sm:$0xff]   ;;  %v5840_v32 = vld [vmem:[%s8116_s1 + $0x550] ss:$8 sps:$4 sm:$0xff]  }
 0x12f   : > { %3802 = vmatpush1.bf16.msra.mxu1 %v5762_v33  ;;  %v5843_v33 = vld [vmem:[%s8116_s1 + $0xc50] ss:$8 sps:$4 sm:$0xff]  }
 0x130   : > { %4089 = vmatpush1.bf16.msra.mxu0 %v5765_v34  ;;  %3803 = vmatprep.subr.bf16.mxu1 %v5770_v35  ;;  %v5848_v34 = vld [vmem:[%s8116_s1 + $0x564] ss:$8 sps:$4 sm:$0xff]  }
 0x131   : > { %4090 = vmatprep.subr.bf16.mxu0 %v5773_v37  ;;  %v5851_v35 = vld [vmem:[%s8116_s1 + $0xc64] ss:$8 sps:$4 sm:$0xff]   ;;  %v5846_v37 = vld [vmem:[%s8116_s1 + $0x560] ss:$8 sps:$4 sm:$0xff]  }
 0x133   : > { %3804 = vmatpush1.bf16.msra.mxu1 %v5768_v38  ;;  %v5849_v38 = vld [vmem:[%s8116_s1 + $0xc60] ss:$8 sps:$4 sm:$0xff]  }
 0x134   : > { %4091 = vmatpush1.bf16.msra.mxu0 %v5771_v19  ;;  %3805 = vmatprep.subr.bf16.mxu1 %v5776_v40  ;;  %v5854_v19 = vld [vmem:[%s8116_s1 + $0x574] ss:$8 sps:$4 sm:$0xff]  }
 0x135   : > { %4092 = vmatprep.subr.bf16.mxu0 %v5779_v48  ;;  %v5857_v40 = vld [vmem:[%s8116_s1 + $0xc74] ss:$8 sps:$4 sm:$0xff]   ;;  %v5852_v48 = vld [vmem:[%s8116_s1 + $0x570] ss:$8 sps:$4 sm:$0xff]  }
 0x137   : > { %3806 = vmatpush1.bf16.msra.mxu1 %v5774_v42  ;;  %v5855_v42 = vld [vmem:[%s8116_s1 + $0xc70] ss:$8 sps:$4 sm:$0xff]  }
 0x138   : > { %4093 = vmatpush1.bf16.msra.mxu0 %v5777_v43  ;;  %3807 = vmatprep.subr.bf16.mxu1 %v5782_v44  ;;  %v5860_v43 = vld [vmem:[%s8116_s1 + $0x584] ss:$8 sps:$4 sm:$0xff]  }
 0x139   : > { %4094 = vmatprep.subr.bf16.mxu0 %v5785_v45  ;;  %v5863_v44 = vld [vmem:[%s8116_s1 + $0xc84] ss:$8 sps:$4 sm:$0xff]   ;;  %v5858_v45 = vld [vmem:[%s8116_s1 + $0x580] ss:$8 sps:$4 sm:$0xff]  }
 0x13b   : > { %3808 = vmatpush1.bf16.msra.mxu1 %v5780_v47  ;;  %v5861_v47 = vld [vmem:[%s8116_s1 + $0xc80] ss:$8 sps:$4 sm:$0xff]  }
 0x13c   : > { %4095 = vmatpush1.bf16.msra.mxu0 %v5783_v49  ;;  %3809 = vmatprep.subr.bf16.mxu1 %v5788_v53  ;;  %v5866_v49 = vld [vmem:[%s8116_s1 + $0x594] ss:$8 sps:$4 sm:$0xff]  }
 0x13d   : > { %4096 = vmatprep.subr.bf16.mxu0 %v5791_v54  ;;  %v5869_v53 = vld [vmem:[%s8116_s1 + $0xc94] ss:$8 sps:$4 sm:$0xff]   ;;  %v5864_v54 = vld [vmem:[%s8116_s1 + $0x590] ss:$8 sps:$4 sm:$0xff]  }
 0x13f   : > { %3810 = vmatpush1.bf16.msra.mxu1 %v5786_v55  ;;  %v5867_v55 = vld [vmem:[%s8116_s1 + $0xc90] ss:$8 sps:$4 sm:$0xff]  }
 0x140   : > { %4097 = vmatpush1.bf16.msra.mxu0 %v5789_v28  ;;  %3811 = vmatprep.subr.bf16.mxu1 %v5794_v57  ;;  %v5872_v28 = vld [vmem:[%s8116_s1 + $0x5a4] ss:$8 sps:$4 sm:$0xff]  }
 0x141   : > { %4098 = vmatprep.subr.bf16.mxu0 %v5797_v58  ;;  %v5875_v57 = vld [vmem:[%s8116_s1 + $0xca4] ss:$8 sps:$4 sm:$0xff]   ;;  %v5870_v58 = vld [vmem:[%s8116_s1 + $0x5a0] ss:$8 sps:$4 sm:$0xff]  }
 0x143   : > { %3812 = vmatpush1.bf16.msra.mxu1 %v5792_v39  ;;  %v5873_v39 = vld [vmem:[%s8116_s1 + $0xca0] ss:$8 sps:$4 sm:$0xff]  }
 0x144   : > { %4099 = vmatpush1.bf16.msra.mxu0 %v5795_v59  ;;  %3813 = vmatprep.subr.bf16.mxu1 %v5800_v60  ;;  %v5878_v59 = vld [vmem:[%s8116_s1 + $0x5b4] ss:$8 sps:$4 sm:$0xff]  }
 0x145   : > { %4100 = vmatprep.subr.bf16.mxu0 %v5803_v61  ;;  %v5881_v60 = vld [vmem:[%s8116_s1 + $0xcb4] ss:$8 sps:$4 sm:$0xff]   ;;  %v5876_v61 = vld [vmem:[%s8116_s1 + $0x5b0] ss:$8 sps:$4 sm:$0xff]  }
 0x147   : > { %3814 = vmatpush1.bf16.msra.mxu1 %v5798_v0  ;;  %v5879_v0 = vld [vmem:[%s8116_s1 + $0xcb0] ss:$8 sps:$4 sm:$0xff]  }
 0x148   : > { %4101 = vmatpush1.bf16.msra.mxu0 %v5801_v1  ;;  %3815 = vmatprep.subr.bf16.mxu1 %v5806_v50  ;;  %v5884_v1 = vld [vmem:[%s8116_s1 + $0x5c4] ss:$8 sps:$4 sm:$0xff]  }
 0x149   : > { %4102 = vmatprep.subr.bf16.mxu0 %v5809_v41  ;;  %v5887_v50 = vld [vmem:[%s8116_s1 + $0xcc4] ss:$8 sps:$4 sm:$0xff]   ;;  %v5882_v41 = vld [vmem:[%s8116_s1 + $0x5c0] ss:$8 sps:$4 sm:$0xff]  }
 0x14b   : > { %3816 = vmatpush1.bf16.msra.mxu1 %v5804_v5  ;;  %v5885_v5 = vld [vmem:[%s8116_s1 + $0xcc0] ss:$8 sps:$4 sm:$0xff]  }
 0x14c   : > { %4103 = vmatpush1.bf16.msra.mxu0 %v5807_v6  ;;  %3826 = vmatprep.subr.bf16.mxu1 %v5812_v36  ;;  %v5890_v6 = vld [vmem:[%s8116_s1 + $0x5d4] ss:$8 sps:$4 sm:$0xff]  }
 0x14d   : > { %4113 = vmatprep.subr.bf16.mxu0 %v5815_v7  ;;  %v5893_v36 = vld [vmem:[%s8116_s1 + $0xcd4] ss:$8 sps:$4 sm:$0xff]   ;;  %v5888_v7 = vld [vmem:[%s8116_s1 + $0x5d0] ss:$8 sps:$4 sm:$0xff]  }
 0x14e   : > { %3818 = vmatmul.mubr.bf16.vlgmr.msra.gmra.mrb[0].mxu1 %v7374_v11 }
 0x14f   : > { %4105 = vmatmul.mubr.bf16.vlgmr.msra.gmra.mrb[0].mxu0 %v966_v12  ;;  %3827 = vmatpush1.bf16.msra.mxu1 %v5810_v8  ;;  %v5891_v8 = vld [vmem:[%s8116_s1 + $0xcd0] ss:$8 sps:$4 sm:$0xff]   ;;  %v5894_v12 = vld [vmem:[%s8116_s1 + $0x5e0] ss:$8 sps:$4 sm:$0xff]  }
 0x150   : > { %4114 = vmatpush1.bf16.msra.mxu0 %v5813_v9  ;;  %3828 = vmatprep.subr.bf16.mxu1 %v5818_v13  ;;  %v5896_v9 = vld [vmem:[%s8116_s1 + $0x5e4] ss:$8 sps:$4 sm:$0xff]   ;;  %v5897_v13 = vld [vmem:[%s8116_s1 + $0xce0] ss:$8 sps:$4 sm:$0xff]  }
 0x151   : > { %4115 = vmatprep.subr.bf16.mxu0 %v5821_v15  ;;  %3858 = vmatprep.mubr.bf16.mxu1 %v918_v16  ;;  %v5902_v15 = vld [vmem:[%s8116_s1 + $0x5f4] ss:$8 sps:$4 sm:$0xff]   ;;  %v5903_v16 = vld [vmem:[%s8116_s1 + $0xcf0] ss:$8 sps:$4 sm:$0xff]  }
 0x152   : > { %4145 = vmatprep.mubr.bf16.mxu0 %v7393_v17 }
 0x153   : > { %3829 = vmatpush1.bf16.msra.mxu1 %v5816_v56  ;;  %v5905_v56 = vld [vmem:[%s8116_s1 + $0xcf4] ss:$8 sps:$4 sm:$0xff]  }
 0x154   : > { %4116 = vmatpush1.bf16.msra.mxu0 %v5819_v63  ;;  %3830 = vmatprep.subr.bf16.mxu1 %v5824_v18  ;;  %v5900_v63 = vld [vmem:[%s8116_s1 + $0x5f0] ss:$8 sps:$4 sm:$0xff]   ;;  %v5908_v18 = vld [vmem:[%s8116_s1 + $0x604] ss:$8 sps:$4 sm:$0xff]  }
 0x155   : > { %4117 = vmatprep.subr.bf16.mxu0 %v5827_v20  ;;  %v5911_v20 = vld [vmem:[%s8116_s1 + $0xd04] ss:$8 sps:$4 sm:$0xff]  }
 0x157   : > { %3831 = vmatpush1.bf16.msra.mxu1 %v5822_v2  ;;  %v916_v2 = vcombine.high %v7374_v11, %v7374_v11  ;;  %v5914_v11 = vld [vmem:[%s8116_s1 + $0x614] ss:$8 sps:$4 sm:$0xff]  }
 0x158   : > { %4118 = vmatpush1.bf16.msra.mxu0 %v5825_v21  ;;  %3832 = vmatprep.subr.bf16.mxu1 %v5830_v22  ;;  %v7575_v21 = vrot.slane %v7350_v3, %v6434_v51  ;;  %v5906_v22 = vld [vmem:[%s8116_s1 + $0x600] ss:$8 sps:$4 sm:$0xff]   ;;  %v5917_v3 = vld [vmem:[%s8116_s1 + $0xd14] ss:$8 sps:$4 sm:$0xff]  }
 0x159   : > { %4119 = vmatprep.subr.bf16.mxu0 %v5833_v23  ;;  %v5909_v23 = vld [vmem:[%s8116_s1 + $0xd00] ss:$8 sps:$4 sm:$0xff]  }
 0x15b   : > { %3833 = vmatpush1.bf16.msra.mxu1 %v5828_v24  ;;  %v1016_v24 = vcombine.high %v7393_v17, %v7393_v17  ;;  %v5923_v17 = vld [vmem:[%s8116_s1 + $0xd24] ss:$8 sps:$4 sm:$0xff]  }
 0x15c   : > { %4120 = vmatpush1.bf16.msra.mxu0 %v5831_v25  ;;  %3834 = vmatprep.subr.bf16.mxu1 %v5836_v26  ;;  %v5912_v25 = vld [vmem:[%s8116_s1 + $0x610] ss:$8 sps:$4 sm:$0xff]  }
 0x15d   : > { %4121 = vmatprep.subr.bf16.mxu0 %v5839_v27  ;;  %v5915_v26 = vld [vmem:[%s8116_s1 + $0xd10] ss:$8 sps:$4 sm:$0xff]   ;;  %v5920_v27 = vld [vmem:[%s8116_s1 + $0x624] ss:$8 sps:$4 sm:$0xff]  }
 0x15f   : > { %3835 = vmatpush1.bf16.msra.mxu1 %v5834_v52  ;;  %v5918_v52 = vld [vmem:[%s8116_s1 + $0x620] ss:$8 sps:$4 sm:$0xff]  }
 0x160   : > { %4122 = vmatpush1.bf16.msra.mxu0 %v5837_v29  ;;  %3836 = vmatprep.subr.bf16.mxu1 %v5842_v30  ;;  %v5921_v29 = vld [vmem:[%s8116_s1 + $0xd20] ss:$8 sps:$4 sm:$0xff]   ;;  %v5926_v30 = vld [vmem:[%s8116_s1 + $0x634] ss:$8 sps:$4 sm:$0xff]  }
 0x161   : > { %4123 = vmatprep.subr.bf16.mxu0 %v5845_v31  ;;  %v5924_v31 = vld [vmem:[%s8116_s1 + $0x630] ss:$8 sps:$4 sm:$0xff]  }
 0x163   : > { %3837 = vmatpush1.bf16.msra.mxu1 %v5840_v32  ;;  %v5927_v32 = vld [vmem:[%s8116_s1 + $0xd30] ss:$8 sps:$4 sm:$0xff]  }
 0x164   : > { %4124 = vmatpush1.bf16.msra.mxu0 %v5843_v33  ;;  %3838 = vmatprep.subr.bf16.mxu1 %v5848_v34  ;;  %v5932_v33 = vld [vmem:[%s8116_s1 + $0x644] ss:$8 sps:$4 sm:$0xff]  }
 0x165   : > { %4125 = vmatprep.subr.bf16.mxu0 %v5851_v35  ;;  %v5935_v34 = vld [vmem:[%s8116_s1 + $0xd44] ss:$8 sps:$4 sm:$0xff]   ;;  %v5930_v35 = vld [vmem:[%s8116_s1 + $0x640] ss:$8 sps:$4 sm:$0xff]  }
 0x167   : > { %3839 = vmatpush1.bf16.msra.mxu1 %v5846_v37  ;;  %v5933_v37 = vld [vmem:[%s8116_s1 + $0xd40] ss:$8 sps:$4 sm:$0xff]  }
 0x168   : > { %4126 = vmatpush1.bf16.msra.mxu0 %v5849_v38  ;;  %3840 = vmatprep.subr.bf16.mxu1 %v5854_v19  ;;  %v5938_v38 = vld [vmem:[%s8116_s1 + $0x654] ss:$8 sps:$4 sm:$0xff]  }
 0x169   : > { %4127 = vmatprep.subr.bf16.mxu0 %v5857_v40  ;;  %v5941_v19 = vld [vmem:[%s8116_s1 + $0xd54] ss:$8 sps:$4 sm:$0xff]   ;;  %v5936_v40 = vld [vmem:[%s8116_s1 + $0x650] ss:$8 sps:$4 sm:$0xff]  }
 0x16b   : > { %3841 = vmatpush1.bf16.msra.mxu1 %v5852_v48  ;;  %v5939_v48 = vld [vmem:[%s8116_s1 + $0xd50] ss:$8 sps:$4 sm:$0xff]  }
 0x16c   : > { %4128 = vmatpush1.bf16.msra.mxu0 %v5855_v42  ;;  %3842 = vmatprep.subr.bf16.mxu1 %v5860_v43  ;;  %v5944_v42 = vld [vmem:[%s8116_s1 + $0x664] ss:$8 sps:$4 sm:$0xff]  }
 0x16d   : > { %4129 = vmatprep.subr.bf16.mxu0 %v5863_v44  ;;  %v5947_v43 = vld [vmem:[%s8116_s1 + $0xd64] ss:$8 sps:$4 sm:$0xff]   ;;  %v5942_v44 = vld [vmem:[%s8116_s1 + $0x660] ss:$8 sps:$4 sm:$0xff]  }
 0x16f   : > { %3843 = vmatpush1.bf16.msra.mxu1 %v5858_v45  ;;  %v5945_v45 = vld [vmem:[%s8116_s1 + $0xd60] ss:$8 sps:$4 sm:$0xff]  }
 0x170   : > { %4130 = vmatpush1.bf16.msra.mxu0 %v5861_v47  ;;  %3844 = vmatprep.subr.bf16.mxu1 %v5866_v49  ;;  %v5950_v47 = vld [vmem:[%s8116_s1 + $0x674] ss:$8 sps:$4 sm:$0xff]  }
 0x171   : > { %4131 = vmatprep.subr.bf16.mxu0 %v5869_v53  ;;  %v5953_v49 = vld [vmem:[%s8116_s1 + $0xd74] ss:$8 sps:$4 sm:$0xff]   ;;  %v5948_v53 = vld [vmem:[%s8116_s1 + $0x670] ss:$8 sps:$4 sm:$0xff]  }
 0x173   : > { %3845 = vmatpush1.bf16.msra.mxu1 %v5864_v54  ;;  %v5951_v54 = vld [vmem:[%s8116_s1 + $0xd70] ss:$8 sps:$4 sm:$0xff]  }
 0x174   : > { %4132 = vmatpush1.bf16.msra.mxu0 %v5867_v55  ;;  %3846 = vmatprep.subr.bf16.mxu1 %v5872_v28  ;;  %v5956_v55 = vld [vmem:[%s8116_s1 + $0x684] ss:$8 sps:$4 sm:$0xff]  }
 0x175   : > { %4133 = vmatprep.subr.bf16.mxu0 %v5875_v57  ;;  %v5959_v28 = vld [vmem:[%s8116_s1 + $0xd84] ss:$8 sps:$4 sm:$0xff]   ;;  %v5954_v57 = vld [vmem:[%s8116_s1 + $0x680] ss:$8 sps:$4 sm:$0xff]  }
 0x177   : > { %3847 = vmatpush1.bf16.msra.mxu1 %v5870_v58  ;;  %v5957_v58 = vld [vmem:[%s8116_s1 + $0xd80] ss:$8 sps:$4 sm:$0xff]  }
 0x178   : > { %4134 = vmatpush1.bf16.msra.mxu0 %v5873_v39  ;;  %3848 = vmatprep.subr.bf16.mxu1 %v5878_v59  ;;  %v5962_v39 = vld [vmem:[%s8116_s1 + $0x694] ss:$8 sps:$4 sm:$0xff]  }
 0x179   : > { %4135 = vmatprep.subr.bf16.mxu0 %v5881_v60  ;;  %v5965_v59 = vld [vmem:[%s8116_s1 + $0xd94] ss:$8 sps:$4 sm:$0xff]   ;;  %v5960_v60 = vld [vmem:[%s8116_s1 + $0x690] ss:$8 sps:$4 sm:$0xff]  }
 0x17b   : > { %3849 = vmatpush1.bf16.msra.mxu1 %v5876_v61  ;;  %v5963_v61 = vld [vmem:[%s8116_s1 + $0xd90] ss:$8 sps:$4 sm:$0xff]  }
 0x17c   : > { %4136 = vmatpush1.bf16.msra.mxu0 %v5879_v0  ;;  %3850 = vmatprep.subr.bf16.mxu1 %v5884_v1  ;;  %v5968_v0 = vld [vmem:[%s8116_s1 + $0x6a4] ss:$8 sps:$4 sm:$0xff]  }
 0x17d   : > { %4137 = vmatprep.subr.bf16.mxu0 %v5887_v50  ;;  %v5971_v1 = vld [vmem:[%s8116_s1 + $0xda4] ss:$8 sps:$4 sm:$0xff]   ;;  %v5966_v50 = vld [vmem:[%s8116_s1 + $0x6a0] ss:$8 sps:$4 sm:$0xff]  }
 0x17f   : > { %3851 = vmatpush1.bf16.msra.mxu1 %v5882_v41  ;;  %v5969_v41 = vld [vmem:[%s8116_s1 + $0xda0] ss:$8 sps:$4 sm:$0xff]  }
 0x180   : > { %4138 = vmatpush1.bf16.msra.mxu0 %v5885_v5  ;;  %3852 = vmatprep.subr.bf16.mxu1 %v5890_v6  ;;  %v5974_v5 = vld [vmem:[%s8116_s1 + $0x6b4] ss:$8 sps:$4 sm:$0xff]  }
 0x181   : > { %4139 = vmatprep.subr.bf16.mxu0 %v5893_v36  ;;  %v5977_v6 = vld [vmem:[%s8116_s1 + $0xdb4] ss:$8 sps:$4 sm:$0xff]   ;;  %v5972_v36 = vld [vmem:[%s8116_s1 + $0x6b0] ss:$8 sps:$4 sm:$0xff]  }
 0x183   : > { %3853 = vmatpush1.bf16.msra.mxu1 %v5888_v7  ;;  %v5975_v7 = vld [vmem:[%s8116_s1 + $0xdb0] ss:$8 sps:$4 sm:$0xff]  }
 0x184   : > { %4140 = vmatpush1.bf16.msra.mxu0 %v5891_v8  ;;  %3854 = vmatprep.subr.bf16.mxu1 %v5896_v9  ;;  %v5980_v8 = vld [vmem:[%s8116_s1 + $0x6c4] ss:$8 sps:$4 sm:$0xff]  }
 0x185   : > { %4141 = vmatprep.subr.bf16.mxu0 %v5899_v10  ;;  %v5983_v9 = vld [vmem:[%s8116_s1 + $0xdc4] ss:$8 sps:$4 sm:$0xff]   ;;  %v5978_v10 = vld [vmem:[%s8116_s1 + $0x6c0] ss:$8 sps:$4 sm:$0xff]  }
 0x187   : > { %3855 = vmatpush1.bf16.msra.mxu1 %v5894_v12  ;;  %v5981_v12 = vld [vmem:[%s8116_s1 + $0xdc0] ss:$8 sps:$4 sm:$0xff]  }
 0x188   : > { %4142 = vmatpush1.bf16.msra.mxu0 %v5897_v13  ;;  %3856 = vmatprep.subr.bf16.mxu1 %v5902_v15  ;;  %v5986_v13 = vld [vmem:[%s8116_s1 + $0x6d4] ss:$8 sps:$4 sm:$0xff]  }
 0x189   : > { %4143 = vmatprep.subr.bf16.mxu0 %v5905_v56  ;;  %v5989_v15 = vld [vmem:[%s8116_s1 + $0xdd4] ss:$8 sps:$4 sm:$0xff]   ;;  %v5984_v56 = vld [vmem:[%s8116_s1 + $0x6d0] ss:$8 sps:$4 sm:$0xff]  }
 0x18b   : > { %3857 = vmatpush1.bf16.msra.mxu1 %v5900_v63  ;;  %v5987_v63 = vld [vmem:[%s8116_s1 + $0xdd0] ss:$8 sps:$4 sm:$0xff]  }
 0x18c   : > { %4144 = vmatpush1.bf16.msra.mxu0 %v5903_v16  ;;  %3867 = vmatprep.subr.bf16.mxu1 %v5908_v18  ;;  %v969_v16 = vcombine.high %v7334_v62, %v7334_v62  ;;  %v5992_v18 = vld [vmem:[%s8116_s1 + $0x6e4] ss:$8 sps:$4 sm:$0xff]   ;;  %v5993_v62 = vld [vmem:[%s8116_s1 + $0xde0] ss:$8 sps:$4 sm:$0xff]  }
 0x18d   : > { %4154 = vmatprep.subr.bf16.mxu0 %v5911_v20  ;;  %v5995_v20 = vld [vmem:[%s8116_s1 + $0xde4] ss:$8 sps:$4 sm:$0xff]  }
 0x18e   : > { %3859 = vmatmul.mubr.bf16.vlgmr.msra.gmra.mrb[0].mxu1 %v916_v2  ;;  %v5990_v2 = vld [vmem:[%s8116_s1 + $0x6e0] ss:$8 sps:$4 sm:$0xff]  }
 0x18f   : > { %4146 = vmatmul.mubr.bf16.vlgmr.msra.gmra.mrb[0].mxu0 %v7575_v21  ;;  %3868 = vmatpush1.bf16.msra.mxu1 %v5906_v22  ;;  %v7758_v22 = vrot.slane %v969_v16, %v6434_v51  ;;  %v6100_v16 = vld [vmem:[%s8118_s3] sm:$0xff]  }
 0x190   : > { %4155 = vmatpush1.bf16.msra.mxu0 %v5909_v23  ;;  %3869 = vmatprep.subr.bf16.mxu1 %v5914_v11  ;;  %v5998_v23 = vld [vmem:[%s8116_s1 + $0x6f4] ss:$8 sps:$4 sm:$0xff]  }
 0x191   : > { %4156 = vmatprep.subr.bf16.mxu0 %v5917_v3  ;;  %3899 = vmatprep.mubr.bf16.mxu1 %v6469_v4  ;;  %v5929_v4 = vld [vmem:[%s8116_s1 + $0xd34] ss:$8 sps:$4 sm:$0xff]   ;;  %v5996_v3 = vld [vmem:[%s8116_s1 + $0x6f0] ss:$8 sps:$4 sm:$0xff]  }
 0x192   : > { %4186 = vmatprep.mubr.bf16.mxu0 %v1016_v24  ;;  %v6001_v11 = vld [vmem:[%s8116_s1 + $0xdf4] ss:$8 sps:$4 sm:$0xff]   ;;  %v5999_v24 = vld [vmem:[%s8116_s1 + $0xdf0] ss:$8 sps:$4 sm:$0xff]  }
 0x193   : > { %3870 = vmatpush1.bf16.msra.mxu1 %v5912_v25  ;;  %v985_v25 = vcombine.high %v7758_v22, %v7758_v22 }
 0x194   : > { %4157 = vmatpush1.bf16.msra.mxu0 %v5915_v26  ;;  %3871 = vmatprep.subr.bf16.mxu1 %v5920_v27  ;;  %v6004_v26 = vld [vmem:[%s8116_s1 + $0xe04] ss:$8 sps:$4 sm:$0xff]   ;;  %v1014_v27 = vcombine.high %v7575_v21, %v7575_v21  ;;  %v6005_v21 = vld [vmem:[%s8116_s1 + $0xe10] ss:$8 sps:$4 sm:$0xff]  }
 0x195   : > { %4158 = vmatprep.subr.bf16.mxu0 %v5923_v17  ;;  %v6002_v17 = vld [vmem:[%s8116_s1 + $0xe00] ss:$8 sps:$4 sm:$0xff]  }
 0x197   : > { %3872 = vmatpush1.bf16.msra.mxu1 %v5918_v52  ;;  %v7783_v52 = vrot.slane %v985_v25, %v6434_v51  ;;  %v6078_v25 = vld [vmem:[%s8116_s1 + $0xf90] ss:$8 sps:$4 sm:$0xff]  }
 0x198   : > { %4159 = vmatpush1.bf16.msra.mxu0 %v5921_v29  ;;  %3873 = vmatprep.subr.bf16.mxu1 %v5926_v30  ;;  %v6007_v29 = vld [vmem:[%s8116_s1 + $0xe14] ss:$8 sps:$4 sm:$0xff]   ;;  %v6010_v30 = vld [vmem:[%s8116_s1 + $0xe24] ss:$8 sps:$4 sm:$0xff]  }
 0x199   : > { %4160 = vmatprep.subr.bf16.mxu0 %v5929_v4  ;;  %v6008_v4 = vld [vmem:[%s8116_s1 + $0xe20] ss:$8 sps:$4 sm:$0xff]  }
 0x19b   : > { %3874 = vmatpush1.bf16.msra.mxu1 %v5924_v31  ;;  %v6011_v31 = vld [vmem:[%s8116_s1 + $0xe30] ss:$8 sps:$4 sm:$0xff]  }
 0x19c   : > { %4161 = vmatpush1.bf16.msra.mxu0 %v5927_v32  ;;  %3875 = vmatprep.subr.bf16.mxu1 %v5932_v33  ;;  %v6016_v32 = vld [vmem:[%s8116_s1 + $0xe44] ss:$8 sps:$4 sm:$0xff]   ;;  %v6014_v33 = vld [vmem:[%s8116_s1 + $0xe40] ss:$8 sps:$4 sm:$0xff]  }
 0x19d   : > { %4162 = vmatprep.subr.bf16.mxu0 %v5935_v34  ;;  %v6019_v34 = vld [vmem:[%s8116_s1 + $0xe54] ss:$8 sps:$4 sm:$0xff]  }
 0x19f   : > { %3876 = vmatpush1.bf16.msra.mxu1 %v5930_v35  ;;  %v6017_v35 = vld [vmem:[%s8116_s1 + $0xe50] ss:$8 sps:$4 sm:$0xff]  }
 0x1a0   : > { %4163 = vmatpush1.bf16.msra.mxu0 %v5933_v37  ;;  %3877 = vmatprep.subr.bf16.mxu1 %v5938_v38  ;;  %v6022_v37 = vld [vmem:[%s8116_s1 + $0xe64] ss:$8 sps:$4 sm:$0xff]   ;;  %v6020_v38 = vld [vmem:[%s8116_s1 + $0xe60] ss:$8 sps:$4 sm:$0xff]  }
 0x1a1   : > { %4164 = vmatprep.subr.bf16.mxu0 %v5941_v19  ;;  %v6025_v19 = vld [vmem:[%s8116_s1 + $0xe74] ss:$8 sps:$4 sm:$0xff]  }
 0x1a3   : > { %3878 = vmatpush1.bf16.msra.mxu1 %v5936_v40  ;;  %v6023_v40 = vld [vmem:[%s8116_s1 + $0xe70] ss:$8 sps:$4 sm:$0xff]  }
 0x1a4   : > { %4165 = vmatpush1.bf16.msra.mxu0 %v5939_v48  ;;  %3879 = vmatprep.subr.bf16.mxu1 %v5944_v42  ;;  %v6028_v48 = vld [vmem:[%s8116_s1 + $0xe84] ss:$8 sps:$4 sm:$0xff]   ;;  %v6026_v42 = vld [vmem:[%s8116_s1 + $0xe80] ss:$8 sps:$4 sm:$0xff]  }
 0x1a5   : > { %4166 = vmatprep.subr.bf16.mxu0 %v5947_v43  ;;  %v6031_v43 = vld [vmem:[%s8116_s1 + $0xe94] ss:$8 sps:$4 sm:$0xff]  }
 0x1a7   : > { %3880 = vmatpush1.bf16.msra.mxu1 %v5942_v44  ;;  %v6029_v44 = vld [vmem:[%s8116_s1 + $0xe90] ss:$8 sps:$4 sm:$0xff]  }
 0x1a8   : > { %4167 = vmatpush1.bf16.msra.mxu0 %v5945_v45  ;;  %3881 = vmatprep.subr.bf16.mxu1 %v5950_v47  ;;  %v6034_v45 = vld [vmem:[%s8116_s1 + $0xea4] ss:$8 sps:$4 sm:$0xff]   ;;  %v6032_v47 = vld [vmem:[%s8116_s1 + $0xea0] ss:$8 sps:$4 sm:$0xff]  }
 0x1a9   : > { %4168 = vmatprep.subr.bf16.mxu0 %v5953_v49  ;;  %v6037_v49 = vld [vmem:[%s8116_s1 + $0xeb4] ss:$8 sps:$4 sm:$0xff]  }
 0x1ab   : > { %3882 = vmatpush1.bf16.msra.mxu1 %v5948_v53  ;;  %v6035_v53 = vld [vmem:[%s8116_s1 + $0xeb0] ss:$8 sps:$4 sm:$0xff]  }
 0x1ac   : > { %4169 = vmatpush1.bf16.msra.mxu0 %v5951_v54  ;;  %3883 = vmatprep.subr.bf16.mxu1 %v5956_v55  ;;  %v6040_v54 = vld [vmem:[%s8116_s1 + $0xec4] ss:$8 sps:$4 sm:$0xff]   ;;  %v6038_v55 = vld [vmem:[%s8116_s1 + $0xec0] ss:$8 sps:$4 sm:$0xff]  }
 0x1ad   : > { %4170 = vmatprep.subr.bf16.mxu0 %v5959_v28  ;;  %v6043_v28 = vld [vmem:[%s8116_s1 + $0xed4] ss:$8 sps:$4 sm:$0xff]  }
 0x1af   : > { %3884 = vmatpush1.bf16.msra.mxu1 %v5954_v57  ;;  %v6041_v57 = vld [vmem:[%s8116_s1 + $0xed0] ss:$8 sps:$4 sm:$0xff]  }
 0x1b0   : > { %4171 = vmatpush1.bf16.msra.mxu0 %v5957_v58  ;;  %3885 = vmatprep.subr.bf16.mxu1 %v5962_v39  ;;  %v6046_v58 = vld [vmem:[%s8116_s1 + $0xee4] ss:$8 sps:$4 sm:$0xff]   ;;  %v6044_v39 = vld [vmem:[%s8116_s1 + $0xee0] ss:$8 sps:$4 sm:$0xff]  }
 0x1b1   : > { %4172 = vmatprep.subr.bf16.mxu0 %v5965_v59  ;;  %v6049_v59 = vld [vmem:[%s8116_s1 + $0xef4] ss:$8 sps:$4 sm:$0xff]  }
 0x1b3   : > { %3886 = vmatpush1.bf16.msra.mxu1 %v5960_v60  ;;  %v6047_v60 = vld [vmem:[%s8116_s1 + $0xef0] ss:$8 sps:$4 sm:$0xff]  }
 0x1b4   : > { %4173 = vmatpush1.bf16.msra.mxu0 %v5963_v61  ;;  %3887 = vmatprep.subr.bf16.mxu1 %v5968_v0  ;;  %v6053_v61 = vld [vmem:[%s8116_s1 + $0xf04] ss:$8 sps:$4 sm:$0xff]   ;;  %v7882_v0 = vrot.slane %v7758_v22, %v6434_v51  ;;  %v6054_v51 = vld [vmem:[%s8116_s1 + $0xf10] ss:$8 sps:$4 sm:$0xff]  }
 0x1b5   : > { %4174 = vmatprep.subr.bf16.mxu0 %v5971_v1  ;;  %v6051_v1 = vld [vmem:[%s8116_s1 + $0xf00] ss:$8 sps:$4 sm:$0xff]   ;;  %v6103_v22 = vld [vmem:[%s8118_s3 + $0x50] sm:$0xff]  }
 0x1b7   : > { %3888 = vmatpush1.bf16.msra.mxu1 %v5966_v50  ;;  %v1017_v50 = vcombine.high %v7783_v52, %v7783_v52 }
 0x1b8   : > { %4175 = vmatpush1.bf16.msra.mxu0 %v5969_v41  ;;  %3889 = vmatprep.subr.bf16.mxu1 %v5974_v5  ;;  %v6056_v41 = vld [vmem:[%s8116_s1 + $0xf14] ss:$8 sps:$4 sm:$0xff]   ;;  %v6059_v5 = vld [vmem:[%s8116_s1 + $0xf24] ss:$8 sps:$4 sm:$0xff]  }
 0x1b9   : > { %4176 = vmatprep.subr.bf16.mxu0 %v5977_v6  ;;  %v6057_v6 = vld [vmem:[%s8116_s1 + $0xf20] ss:$8 sps:$4 sm:$0xff]  }
 0x1bb   : > { %3890 = vmatpush1.bf16.msra.mxu1 %v5972_v36  ;;  %v6062_v36 = vld [vmem:[%s8116_s1 + $0xf34] ss:$8 sps:$4 sm:$0xff]  }
 0x1bc   : > { %4177 = vmatpush1.bf16.msra.mxu0 %v5975_v7  ;;  %3891 = vmatprep.subr.bf16.mxu1 %v5980_v8  ;;  %v6060_v7 = vld [vmem:[%s8116_s1 + $0xf30] ss:$8 sps:$4 sm:$0xff]   ;;  %v6065_v8 = vld [vmem:[%s8116_s1 + $0xf44] ss:$8 sps:$4 sm:$0xff]  }
 0x1bd   : > { %4178 = vmatprep.subr.bf16.mxu0 %v5983_v9  ;;  %v6063_v9 = vld [vmem:[%s8116_s1 + $0xf40] ss:$8 sps:$4 sm:$0xff]  }
 0x1bf   : > { %3892 = vmatpush1.bf16.msra.mxu1 %v5978_v10  ;;  %v6068_v10 = vld [vmem:[%s8116_s1 + $0xf54] ss:$8 sps:$4 sm:$0xff]  }
 0x1c0   : > { %4179 = vmatpush1.bf16.msra.mxu0 %v5981_v12  ;;  %3893 = vmatprep.subr.bf16.mxu1 %v5986_v13  ;;  %v6066_v12 = vld [vmem:[%s8116_s1 + $0xf50] ss:$8 sps:$4 sm:$0xff]   ;;  %v6071_v13 = vld [vmem:[%s8116_s1 + $0xf64] ss:$8 sps:$4 sm:$0xff]  }
 0x1c1   : > { %4180 = vmatprep.subr.bf16.mxu0 %v5989_v15  ;;  %v6069_v15 = vld [vmem:[%s8116_s1 + $0xf60] ss:$8 sps:$4 sm:$0xff]  }
 0x1c3   : > { %3894 = vmatpush1.bf16.msra.mxu1 %v5984_v56  ;;  %v6074_v56 = vld [vmem:[%s8116_s1 + $0xf74] ss:$8 sps:$4 sm:$0xff]  }
 0x1c4   : > { %4181 = vmatpush1.bf16.msra.mxu0 %v5987_v63  ;;  %3895 = vmatprep.subr.bf16.mxu1 %v5992_v18  ;;  %v6099_v63 = vld [vmem:[%s8118_s3 + $0x40] sm:$0xff]   ;;  %v6101_v18 = vld [vmem:[%s8118_s3 + $0x48] sm:$0xff]  }
 0x1c5   : > { %4182 = vmatprep.subr.bf16.mxu0 %v5995_v20  ;;  %v6072_v20 = vld [vmem:[%s8116_s1 + $0xf70] ss:$8 sps:$4 sm:$0xff]  }
 0x1c7   : > { %3896 = vmatpush1.bf16.msra.mxu1 %v5990_v2  ;;  %v6102_v2 = vld [vmem:[%s8118_s3 + $0x8] sm:$0xff]  }
 0x1c8   : > { %4183 = vmatpush1.bf16.msra.mxu0 %v5993_v62  ;;  %3897 = vmatprep.subr.bf16.mxu1 %v5998_v23  ;;  %v6077_v62 = vld [vmem:[%s8116_s1 + $0xf84] ss:$8 sps:$4 sm:$0xff]   ;;  %v6075_v23 = vld [vmem:[%s8116_s1 + $0xf80] ss:$8 sps:$4 sm:$0xff]  }
 0x1c9   : > { %4184 = vmatprep.subr.bf16.mxu0 %v6001_v11  ;;  %v6104_v11 = vld [vmem:[%s8118_s3 + $0x10] sm:$0xff]  }
 0x1cb   : > { %3898 = vmatpush1.bf16.msra.mxu1 %v5996_v3  ;;  %v6080_v3 = vld [vmem:[%s8116_s1 + $0xf94] ss:$8 sps:$4 sm:$0xff]  }
 0x1cc   : > { %4185 = vmatpush1.bf16.msra.mxu0 %v5999_v24  ;;  %5174 = vmatprep.subr.bf16.mxu1 %v6099_v63  ;;  %v6105_v24 = vld [vmem:[%s8118_s3 + $0x58] sm:$0xff]  }
 0x1cd   : > { %4195 = vmatprep.subr.bf16.mxu0 %v6004_v26  ;;  %v6106_v26 = vld [vmem:[%s8118_s3 + $0x18] sm:$0xff]  }
 0x1ce   : > { %3900 = vmatmul.mubr.bf16.vlgmr.msra.gmra.mrb[0].mxu1 %v6498_v14  ;;  %v6013_v14 = vld [vmem:[%s8116_s1 + $0xe34] ss:$8 sps:$4 sm:$0xff]  }
 0x1cf   : > { %4187 = vmatmul.mubr.bf16.vlgmr.msra.gmra.mrb[0].mxu0 %v1014_v27  ;;  %5175 = vmatpush3.bf16.msra.mxu1 %v6100_v16  ;;  %v6083_v27 = vld [vmem:[%s8116_s1 + $0xfa4] ss:$8 sps:$4 sm:$0xff]  }
 0x1d0   : > { %4196 = vmatpush1.bf16.msra.mxu0 %v6002_v17  ;;  %4227 = vmatprep.mubr.bf16.mxu0 %v7783_v52  ;;  %v6107_v17 = vld [vmem:[%s8118_s3 + $0x60] sm:$0xff]  }
 0x1d1   : > { %4197 = vmatprep.subr.bf16.mxu0 %v6007_v29  ;;  %5176 = vmatprep.subr.bf16.mxu1 %v6101_v18  ;;  %v6081_v52 = vld [vmem:[%s8116_s1 + $0xfa0] ss:$8 sps:$4 sm:$0xff]  }
 0x1d2   : > { %v6108_v29 = vld [vmem:[%s8118_s3 + $0x20] sm:$0xff]  }
 0x1d3   : > { %5177 = vmatpush3.bf16.msra.mxu1 %v6102_v2  ;;  %v4449_v18 = vld [vmem:[%s8119_s4] sm:$0x1] }
 0x1d4   : > { %4198 = vmatpush1.bf16.msra.mxu0 %v6005_v21  ;;  %5178 = vmatprep.subr.bf16.mxu1 %v6103_v22  ;;  %v6086_v21 = vld [vmem:[%s8116_s1 + $0xfb4] ss:$8 sps:$4 sm:$0xff]  }
 0x1d5   : > { %4199 = vmatprep.subr.bf16.mxu0 %v6010_v30  ;;  %v6109_v30 = vld [vmem:[%s8118_s3 + $0x68] sm:$0xff]  }
 0x1d7   : > { %5179 = vmatpush3.bf16.msra.mxu1 %v6104_v11 }
 0x1d8   : > { %4200 = vmatpush1.bf16.msra.mxu0 %v6008_v4  ;;  %5180 = vmatprep.subr.bf16.mxu1 %v6105_v24  ;;  %v6084_v4 = vld [vmem:[%s8116_s1 + $0xfb0] ss:$8 sps:$4 sm:$0xff]  }
 0x1d9   : > { %4201 = vmatprep.subr.bf16.mxu0 %v6013_v14  ;;  %v6110_v14 = vld [vmem:[%s8118_s3 + $0x28] sm:$0xff]  }
 0x1db   : > { %5181 = vmatpush3.bf16.msra.mxu1 %v6106_v26 }
 0x1dc   : > { %4202 = vmatpush1.bf16.msra.mxu0 %v6011_v31  ;;  %5182 = vmatprep.subr.bf16.mxu1 %v6107_v17  ;;  %v6089_v31 = vld [vmem:[%s8116_s1 + $0xfc4] ss:$8 sps:$4 sm:$0xff]  }
 0x1dd   : > { %4203 = vmatprep.subr.bf16.mxu0 %v6016_v32  ;;  %v6087_v32 = vld [vmem:[%s8116_s1 + $0xfc0] ss:$8 sps:$4 sm:$0xff]  }
 0x1df   : > { %5183 = vmatpush3.bf16.msra.mxu1 %v6108_v29 }
 0x1e0   : > { %4204 = vmatpush1.bf16.msra.mxu0 %v6014_v33  ;;  %5184 = vmatprep.subr.bf16.mxu1 %v6109_v30  ;;  %v6092_v33 = vld [vmem:[%s8116_s1 + $0xfd4] ss:$8 sps:$4 sm:$0xff]  }
 0x1e1   : > { %4205 = vmatprep.subr.bf16.mxu0 %v6019_v34  ;;  %v6090_v34 = vld [vmem:[%s8116_s1 + $0xfd0] ss:$8 sps:$4 sm:$0xff]  }
 0x1e3   : > { %5185 = vmatpush3.bf16.msra.mxu1 %v6110_v14 }
 0x1e4   : > { %4206 = vmatpush1.bf16.msra.mxu0 %v6017_v35  ;;  %v6095_v35 = vld [vmem:[%s8116_s1 + $0xfe4] ss:$8 sps:$4 sm:$0xff]  }
 0x1e5   : > { %4207 = vmatprep.subr.bf16.mxu0 %v6022_v37  ;;  %v6093_v37 = vld [vmem:[%s8116_s1 + $0xfe0] ss:$8 sps:$4 sm:$0xff]  }
 0x1e8   : > { %4208 = vmatpush1.bf16.msra.mxu0 %v6020_v38  ;;  %v6098_v38 = vld [vmem:[%s8116_s1 + $0xff4] ss:$8 sps:$4 sm:$0xff]  }
 0x1e9   : > { %4209 = vmatprep.subr.bf16.mxu0 %v6025_v19  ;;  %v6096_v19 = vld [vmem:[%s8116_s1 + $0xff0] ss:$8 sps:$4 sm:$0xff]  }
 0x1ec   : > { %4210 = vmatpush1.bf16.msra.mxu0 %v6023_v40  ;;  %v1015_v40 = vcombine.high %v7882_v0, %v7882_v0 }
 0x1ed   : > { %4211 = vmatprep.subr.bf16.mxu0 %v6028_v48  ;;  %v6111_v48 = vld [vmem:[%s8118_s3 + $0x70] sm:$0xff]  }
 0x1ee   : > { %5186 = vmatprep.subr.bf16.mxu1 %v6111_v48 }
 0x1f0   : > { %4212 = vmatpush1.bf16.msra.mxu0 %v6026_v42 }
 0x1f1   : > { %4213 = vmatprep.subr.bf16.mxu0 %v6031_v43  ;;  %v6112_v43 = vld [vmem:[%s8118_s3 + $0x30] sm:$0xff]  }
 0x1f2   : > { %5187 = vmatpush3.bf16.msra.mxu1 %v6112_v43 }
 0x1f4   : > { %4214 = vmatpush1.bf16.msra.mxu0 %v6029_v44 }
 0x1f5   : > { %4215 = vmatprep.subr.bf16.mxu0 %v6034_v45 }
 0x1f8   : > { %4216 = vmatpush1.bf16.msra.mxu0 %v6032_v47 }
 0x1f9   : > { %4217 = vmatprep.subr.bf16.mxu0 %v6037_v49  ;;  %v6113_v49 = vld [vmem:[%s8118_s3 + $0x78] sm:$0xff]  }
 0x1fa   : > { %5188 = vmatprep.subr.bf16.mxu1 %v6113_v49 }
 0x1fc   : > { %4218 = vmatpush1.bf16.msra.mxu0 %v6035_v53  ;;  %v6114_v53 = vld [vmem:[%s8118_s3 + $0x38] sm:$0xff]  }
 0x1fd   : > { %4219 = vmatprep.subr.bf16.mxu0 %v6040_v54  ;;  %5189 = vmatpush3.bf16.msra.mxu1 %v6114_v53  ;;  %v6190_v54 = vmov 0.0  }
 0x1fe   : > { %5205 = vmatprep.subr.bf16.mxu1 %v6190_v54 }
 0x200   : > { %4220 = vmatpush1.bf16.msra.mxu0 %v6038_v55  ;;  %v3613_v55 = vsub.s32 0, %v6414_v46 }
 0x201   : > { %4221 = vmatprep.subr.bf16.mxu0 %v6043_v28  ;;  %v817_v28 = vld [vmem:[%s8117_s2] sm:$0x3] }
 0x204   : > { %4222 = vmatpush1.bf16.msra.mxu0 %v6041_v57  ;;  %v3617_v57 = vsub.s32 1, %v6414_v46  ;;  %v6116_v46 = vld [vmem:[%s8121_s6 + $0x8] sm:$0xff]  }
 0x205   : > { %4223 = vmatprep.subr.bf16.mxu0 %v6046_v58  ;;  %v3614_v58 = vrot.slane %v817_v28, %v3613_v55 }
 0x208   : > { %4224 = vmatpush1.bf16.msra.mxu0 %v6044_v39  ;;  %v3618_v39 = vrot.slane %v817_v28, %v3617_v57 }
 0x209   : > { %4225 = vmatprep.subr.bf16.mxu0 %v6049_v59 }
 0x20c   : > { %4226 = vmatpush1.bf16.msra.mxu0 %v6047_v60 }
 0x20d   : > { %4236 = vmatprep.subr.bf16.mxu0 %v6053_v61 }
 0x20f   : > { %4228 = vmatmul.mubr.bf16.vlgmr.msra.gmra.mrb[0].mxu0 %v7882_v0 }
 0x210   : > { %4237 = vmatpush1.bf16.msra.mxu0 %v6051_v1  ;;  %4268 = vmatprep.mubr.bf16.mxu0 %v1017_v50 }
 0x211   : > { %4238 = vmatprep.subr.bf16.mxu0 %v6056_v41 }
 0x214   : > { %4239 = vmatpush1.bf16.msra.mxu0 %v6054_v51 }
 0x215   : > { %4240 = vmatprep.subr.bf16.mxu0 %v6059_v5 }
 0x218   : > { %4241 = vmatpush1.bf16.msra.mxu0 %v6057_v6 }
 0x219   : > { %4242 = vmatprep.subr.bf16.mxu0 %v6062_v36 }
 0x21c   : > { %4243 = vmatpush1.bf16.msra.mxu0 %v6060_v7  ;;  %v6115_v7 = vld [vmem:[%s8121_s6] sm:$0xff]  }
 0x21d   : > { %4244 = vmatprep.subr.bf16.mxu0 %v6065_v8 }
 0x220   : > { %4245 = vmatpush1.bf16.msra.mxu0 %v6063_v9  ;;  %v6117_v9 = vld [vmem:[%s8121_s6 + $0x10] sm:$0xff]  }
 0x221   : > { %4246 = vmatprep.subr.bf16.mxu0 %v6068_v10  ;;  %v6118_v10 = vld [vmem:[%s8121_s6 + $0x18] sm:$0xff]  }
 0x224   : > { %4247 = vmatpush1.bf16.msra.mxu0 %v6066_v12  ;;  %v6119_v12 = vld [vmem:[%s8121_s6 + $0x20] sm:$0xff]  }
 0x225   : > { %4248 = vmatprep.subr.bf16.mxu0 %v6071_v13  ;;  %v6120_v13 = vld [vmem:[%s8121_s6 + $0x28] sm:$0xff]  }
 0x228   : > { %4249 = vmatpush1.bf16.msra.mxu0 %v6069_v15  ;;  %v6121_v15 = vld [vmem:[%s8121_s6 + $0x30] sm:$0xff]  }
 0x229   : > { %4250 = vmatprep.subr.bf16.mxu0 %v6074_v56  ;;  %v6122_v56 = vld [vmem:[%s8121_s6 + $0x38] sm:$0xff]  }
 0x22c   : > { %4251 = vmatpush1.bf16.msra.mxu0 %v6072_v20 }
 0x22d   : > { %4252 = vmatprep.subr.bf16.mxu0 %v6077_v62  ;;  %v4451_v62 = vld [vmem:[%s8120_s5] sm:$0x1] }
 0x230   : > { %4253 = vmatpush1.bf16.msra.mxu0 %v6075_v23 }
 0x231   : > { %4254 = vmatprep.subr.bf16.mxu0 %v6080_v3 }
 0x234   : > { %4255 = vmatpush1.bf16.msra.mxu0 %v6078_v25  ;;  %v4471_v25 = vld [vmem:[%s8122_s7] sm:$0x1] }
 0x235   : > { %4256 = vmatprep.subr.bf16.mxu0 %v6083_v27 }
 0x238   : > { %4257 = vmatpush1.bf16.msra.mxu0 %v6081_v52 }
 0x239   : > { %4258 = vmatprep.subr.bf16.mxu0 %v6086_v21 }
 0x23c   : > { %4259 = vmatpush1.bf16.msra.mxu0 %v6084_v4 }
 0x23d   : > { %4260 = vmatprep.subr.bf16.mxu0 %v6089_v31 }
 0x240   : > { %4261 = vmatpush1.bf16.msra.mxu0 %v6087_v32 }
 0x241   : > { %4262 = vmatprep.subr.bf16.mxu0 %v6092_v33 }
 0x244   : > { %4263 = vmatpush1.bf16.msra.mxu0 %v6090_v34 }
 0x245   : > { %4264 = vmatprep.subr.bf16.mxu0 %v6095_v35 }
 0x248   : > { %4265 = vmatpush1.bf16.msra.mxu0 %v6093_v37 }
 0x249   : > { %4266 = vmatprep.subr.bf16.mxu0 %v6098_v38 }
 0x24c   : > { %4267 = vmatpush1.bf16.msra.mxu0 %v6096_v19 }
 0x24f   : > { %4269 = vmatmul.mubr.bf16.vlgmr.msra.gmra.mrb[0].mxu0 %v1015_v40 }
 0x2a1   : > { %v3901_v42 = vpop.f32.mrb[0].mxu1 }
 0x2a2   : > { %v3903_v44 = vpop.f32.mrb[1].mxu1  ;;  %v5225_v59 = vadd.f32 %v3901_v42, %v3614_v58 }
 0x2a3   : > { %v3905_v45 = vpop.f32.mrb[2].mxu1  ;;  %v5227_v60 = vadd.f32 %v3903_v44, %v3618_v39 }
 0x2a4   : > { %v3906_v47 = vpop.f32.mrb[3].mxu1 }
 0x322   : > { %v4270_v61 = vpop.f32.mrb[0].mxu0 }
 0x323   : > { %v5226_v0 = vadd.f32 %v5225_v59, %v4270_v61  ;;  %v4272_v1 = vpop.f32.mrb[1].mxu0 }
 0x324   : > { %v5228_v50 = vadd.f32 %v5227_v60, %v4272_v1  ;;  %v4274_v41 = vpop.f32.mrb[2].mxu0 }
 0x325   : > { %v4277_v51 = vmax.f32 %v5226_v0, 0.0  ;;  %v4275_v5 = vpop.f32.mrb[3].mxu0 }
 0x326   : > { %v4278_v6 = vmax.f32 %v5228_v50, 0.0 }
 0x327   : > { %v4279_v8 = vpack.c.bf16 %v4277_v51, %v4277_v51 }
 0x328   : > { %v4280_v36 = vpack.c.bf16 %v4278_v6, %v4278_v6 }
 0x32a   : > { %4441 = vmatprep.mubr.bf16.mxu1 %v4280_v36 }
 0x32b   : > { %4442 = vmatmul.mubr.bf16.vlgmr.msra.gmra.mrb[4].mxu1 %v4279_v8 }
 0x32c   : > { %5206 = vmatpush3.bf16.msra.mxu1 %v6115_v7  ;;  %5221 = vmatprep.mubr.msk.bf16.mxu1 %vm6191_vm0, %v6190_v54 }
 0x32d   : > { %5207 = vmatprep.subr.bf16.mxu1 %v6190_v54 }
 0x330   : > { %5208 = vmatpush3.bf16.msra.mxu1 %v6116_v46 }
 0x331   : > { %5209 = vmatprep.subr.bf16.mxu1 %v6190_v54 }
 0x334   : > { %5210 = vmatpush3.bf16.msra.mxu1 %v6117_v9 }
 0x335   : > { %5211 = vmatprep.subr.bf16.mxu1 %v6190_v54 }
 0x338   : > { %5212 = vmatpush3.bf16.msra.mxu1 %v6118_v10 }
 0x339   : > { %5213 = vmatprep.subr.bf16.mxu1 %v6190_v54 }
 0x33c   : > { %5214 = vmatpush3.bf16.msra.mxu1 %v6119_v12 }
 0x33d   : > { %5215 = vmatprep.subr.bf16.mxu1 %v6190_v54 }
 0x340   : > { %5216 = vmatpush3.bf16.msra.mxu1 %v6120_v13 }
 0x341   : > { %5217 = vmatprep.subr.bf16.mxu1 %v6190_v54 }
 0x344   : > { %5218 = vmatpush3.bf16.msra.mxu1 %v6121_v15 }
 0x345   : > { %5219 = vmatprep.subr.bf16.mxu1 %v6190_v54 }
 0x348   : > { %5220 = vmatpush3.bf16.msra.mxu1 %v6122_v56 }
 0x3fe   : > { %v5190_v63 = vpop.f32.mrb[4].mxu1 }
 0x3ff   : > { %v5191_v16 = vpop.f32.mrb[5].mxu1 }
 0x400   : > { %v5192_v20 = vadd.f32 %v5191_v16, %v5190_v63  ;;  %v5193_v2 = vpop.f32.mrb[6].mxu1 }
 0x401   : > { %v5194_v22 = vpop.f32.mrb[7].mxu1 }
 0x402   : > { %v4450_v23 = vmul.f32 %v5192_v20, %v4449_v18 }
 0x404   : > { %v4452_v11 = vadd.f32 %v4451_v62, %v4450_v23 }
 0x406   : > { %v4453_v3 = vmax.f32 %v4452_v11, 0.0 }
 0x408   : > { %v4454_v24 = vpack.c.bf16 %v4453_v3, %v4453_v3 }
 0x40a   : > { %5222 = vmatmul.mubr.bf16.vlgmr.msra.gmra.mrb[8].mxu1 %v4454_v24 }
 0x4dd   : > { %v4554_v26 = vpop.f32.mrb[8].mxu1 }
 0x4de   : > { %v4555_v27 = vadd.f32 %v4554_v26, %v4471_v25  ;;  %v5223_v17 = vpop.f32.mrb[9].mxu1 }
 0x4df   : > { %v4557_v52 = vpop.f32.mrb[10].mxu1 }
 0x4e0   : > { %v5224_v29 = vpop.f32.mrb[11].mxu1  ;;  %4561 = vst.msk [vmem:[%s295_s18] sm:$0x1] %vm4560_vm1, %v4555_v27 }
 0x4e1   : > { %6138 = shalt.err (!%p6135_p3)
}
 0x4e2   : > { %s6139_s22 = scalar_lea.hbm %s8073_s21, 16  ;;  %s6143_s17 = scalar_lea.hbm %s8123_s8, 32 }
 0x4e3   : > { %p6140_p4 = scmp.ne.s32.totalorder %s8073_s21, %s6139_s22  ;;  %p6144_p9 = scmp.lt.u32.totalorder %s8073_s21, %s8123_s8 }
 0x4e4   : > { %p6145_p10 = scmp.lt.u32.totalorder %s6143_s17, %s6139_s22  ;;  %p6147_p12 = scmp.lt.u32.totalorder %s6139_s22, %s8073_s21 }
 0x4e5   : > { %p6141_p7 = pnand %p6140_p4, %p6276_p5 }
 0x4e6   : > { %p6146_p11 = por %p6145_p10, %p6144_p9 }
 0x4e7   : > { %p6142_p8 = pneg %p6141_p7 }
 0x4e8   : > { %p6148_p13 = por %p6147_p12, %p6146_p11 }
 0x4ea   : > { %p6149_p0 = pnand %p6148_p13, %p6142_p8 }
 0x4ec   : > { %6152 = shalt.err (!%p6149_p0)
}
 0x4ed   : > { %5285 = dma.vmem_to_hbm [thread:$0]  (%p6276_p5), %s8075_s19, 16, %s8073_s21, %s4563_s9  }
 0x4ee PF: > { %p5291_p1 = scmp.ge.s32.totalorder %s6187_s30, 2  ;;  %s4587_s12 = sand.u32 1, %s6175_s27  }
 0x4ef   : > { %s4588_s23 = scalar_lea.sflag [#allocation3], %s4587_s12 }
 0x4f0   : > { %p5288_p2 = pnand %p5291_p1, %p6280_p6 }
 0x4f2   : > { %6170 = dma.done.wait (!%p5288_p2), %s4588_s23, 16  }
 0x4f3   : > { %6172 = vsyncadd (!%p5288_p2), %s4588_s23, 4294967280  ;;  %p18_p3 = scmp.ge.s32.totalorder %s6263_s11, 4   ;;  %s8126_s27 = smov %s6179_s28 }
 0x4f4   : > { %s8127_s28 = smov %s6183_s29  ;;  %s8128_s29 = smov %s6274_s14 }
 0x4f5   : > { %s8129_s30 = smov %s6263_s11  ;;  %20 = sbr.rel (!%p18_p3) target bundleno = 3 (0x3), region = 87 }
 0x4fc   :  { %4592 = vsyncpa [#allocation3], 1 }
 0x4fd   :  { %4594 = vsyncpa [#allocation3 + $0x1], 1 }

</bundles_post_ra>
